<compile_context>
chip_gen: v6e
topology: v6e:2x2x1
jax: 0.10.0
libtpu: 0.0.40
codegen_flags: <defaults>
</compile_context>

<pallas_src>
import functools

import numpy as np
import jax
import jax.numpy as jnp
from jax import lax
from jax.experimental import pallas as pl
from jax.experimental.pallas import tpu as pltpu


# ----------------------------------------------------------------------------
# In-kernel helper: one (bi)directional LSTM layer, fully VMEM resident.
# ----------------------------------------------------------------------------
def _run_layer(inp_ref, wx_ref, wh_ref, b_ref, dst_ref,
               stage_ref, p_ref, pr_ref, mask_ref, fwd_lane,
               *, B, T, H, D, F_in):
    """inp_ref  : [T*B, F_in]      layer input, row = t*B + b (time-major, flat)
       wx_ref   : [D*F_in, 4*D*H]  input weights, rows = [x_fwd | x_rev]
       wh_ref   : [D*H,    4*D*H]  recurrent weights, rows = [h_fwd | h_rev]
       b_ref    : [1, 4*D*H]       fused bias (b_ih + b_hh per direction)
       dst_ref  : [T*B, D*H]       layer output
       stage_ref: [T*B, D*H]       per-step staging (before fwd/rev realignment)
       p_ref    : [T*B, 4*D*H]     hoisted pre-activation slab
       pr_ref   : [T*B, 4*D*H]     reverse-direction projection (D == 2 only)
       mask_ref : [T*B, D*H] f32   1.0 where (t, direction) is a valid packed step
       fwd_lane : [B, D*H] bool    lane < H (D == 2 only)
       Gate columns ordered [ i | f | o | g ], each gate block = [fwd | rev].
    """
    SW = D * H
    GW = 4 * SW

    # ---- Hoisted input projection + bias: dense matmuls OFF the serial path.
    x_all = inp_ref[...]                                            # [T*B, F_in]
    p_fwd = jnp.dot(x_all, wx_ref[pl.ds(0, F_in), :],
                    preferred_element_type=jnp.float32)
    p_ref[...] = p_fwd + b_ref[...]                                 # bias folded once
    if D == 2:
        pr_ref[...] = jnp.dot(x_all, wx_ref[pl.ds(F_in, F_in), :],
                              preferred_element_type=jnp.float32)
        # Reverse direction consumes x[T-1-s] at step s: fold the time-reversed
        # projection into the slab once, outside the recurrence.
        for t in range(T):
            rows = pl.ds(t * B, B)
            p_ref[rows, :] = (p_ref[rows, :]
                              + pr_ref[pl.ds((T - 1 - t) * B, B), :])

    wh = wh_ref[...]           # hoisted recurrent RHS load (no per-step slicing)
    # TODO(synk): on v6e/v7x keep `wh` resident in the MXU staging registers for
    # all T steps via pltpu.matmul_push_rhs / matmul_acc_lhs / matmul_pop.
    # TODO(synk): cast `wh` / `h` to bf16 for larger H (kept f32 here for accuracy).

    h = jnp.zeros((B, SW), jnp.float32)
    c = jnp.zeros((B, SW), jnp.float32)

    # Serial recurrence: ONE [B,SW]x[SW,GW] matmul + elementwise per step.
    # T is the static max(lengths); small -> full unroll with static indices.
    # TODO(synk): for long sequences switch to lax.fori_loop(..., unroll=2..4)
    # with pl.ds/pl.multiple_of time indexing to bound code size / vreg pressure.
    for s in range(T):
        rows = pl.ds(s * B, B)
        gates = p_ref[rows, :] + jnp.dot(h, wh,
                                         preferred_element_type=jnp.float32)

        # [ i | f | o ] contiguous -> one sigmoid over 3*SW lanes, one tanh on SW.
        sig = jax.nn.sigmoid(gates[:, 0:3 * SW])
        i_g = sig[:, 0 * SW:1 * SW]
        f_g = sig[:, 1 * SW:2 * SW]
        o_g = sig[:, 2 * SW:3 * SW]
        g_g = jnp.tanh(gates[:, 3 * SW:4 * SW])

        c_new = f_g * c + i_g * g_g
        h_new = o_g * jnp.tanh(c_new)

        # Packed-sequence semantics via the precomputed {0,1} mask: past a
        # sequence's length the state is held and the output is zeroed.
        m = mask_ref[rows, :]
        im = 1.0 - m
        c = m * c_new + im * c
        h = m * h_new + im * h
        stage_ref[rows, :] = m * h_new      # single full-width store per step

    # ---- Merge staging into the per-time-step [fwd|rev] layer output, once:
    # dst[t, fwd] = stage[t, fwd] ; dst[t, rev] = stage[T-1-t, rev].
    if D == 2:
        for t in range(T):
            dst_ref[pl.ds(t * B, B), :] = jnp.where(
                fwd_lane,
                stage_ref[pl.ds(t * B, B), :],
                stage_ref[pl.ds((T - 1 - t) * B, B), :])
    else:
        dst_ref[...] = stage_ref[...]


def _lstm_encoder_kernel(*refs, B, T, F, H, D, L):
    # refs = (lens_tiled, x, wx_0, wh_0, b_0, ..., wx_{L-1}, wh_{L-1}, b_{L-1},
    #         out, mid..., stage, p, [pr,] mask)
    lens_ref = refs[0]                       # [T*B, 1] int32 (length of batch row)
    x_ref = refs[1]                          # [T*B, F]
    out_ref = refs[2 + 3 * L]                # [T*B, D*H]
    scratch = refs[3 + 3 * L:]

    n_mid = 0 if L == 1 else min(L - 1, 2)
    mid_refs = scratch[:n_mid]
    idx = n_mid
    stage_ref = scratch[idx]; idx += 1
    p_ref = scratch[idx]; idx += 1
    pr_ref = None
    if D == 2:
        pr_ref = scratch[idx]; idx += 1
    mask_ref = scratch[idx]

    SW = D * H
    TB = T * B

    # Validity mask is layer-independent: build it ONCE, store in VMEM, and
    # index mask_ref[s*B:(s+1)*B] inside the recurrence (no per-step broadcasts).
    lens_rows = lens_ref[...] * B                                # [T*B, 1]
    row = lax.broadcasted_iota(jnp.int32, (TB, SW), 0)
    fwd_ok = (row < lens_rows).astype(jnp.float32)               # t < len
    fwd_lane = None
    if D == 2:
        rev_ok = (row >= TB - lens_rows).astype(jnp.float32)     # (T-1-t) < len
        lane = lax.broadcasted_iota(jnp.int32, (TB, SW), 1)
        mask_ref[...] = jnp.where(lane < H, fwd_ok, rev_ok)
        fwd_lane = lax.broadcasted_iota(jnp.int32, (B, SW), 1) < H
    else:
        mask_ref[...] = fwd_ok

    cur_in, cur_F = x_ref, F
    for l in range(L):
        wx_ref = refs[2 + 3 * l]
        wh_ref = refs[3 + 3 * l]
        b_ref = refs[4 + 3 * l]
        dst = out_ref if l == L - 1 else mid_refs[l % 2]
        _run_layer(cur_in, wx_ref, wh_ref, b_ref, dst,
                   stage_ref, p_ref, pr_ref, mask_ref, fwd_lane,
                   B=B, T=T, H=H, D=D, F_in=cur_F)
        cur_in, cur_F = dst, SW


# ----------------------------------------------------------------------------
# Host-side weight fusion (one-time setup, not per-step compute).
# ----------------------------------------------------------------------------
def _build_fused_layer_weights(layer_params, in_size, H):
    """Fuse one layer's per-direction PyTorch-style LSTM weights into
       Wx: [D*in_size, 4*D*H]  rows = [x_fwd | x_rev]
       Wh: [D*H,       4*D*H]  rows = [h_fwd | h_rev]   (standalone recurrent weight)
       b : [1, 4*D*H]          b_ih + b_hh per direction
    Columns ordered [ i | f | o | g ] (one contiguous sigmoid slice; the two
    128-lane halves are [i|f] and [o|g]), each gate block = [fwd | rev]."""
    D = len(layer_params)
    SW = D * H
    GW = 4 * SW
    gate_col = (0, 1, 3, 2)     # PyTorch gate order (i, f, g, o) -> [ i | f | o | g ]
    Wx = np.zeros((D * in_size, GW), np.float32)
    Wh = np.zeros((SW, GW), np.float32)
    b = np.zeros((1, GW), np.float32)
    for d, (wih, whh, bih, bhh) in enumerate(layer_params):
        wih = np.asarray(wih, np.float32)    # [4H, in_size]
        whh = np.asarray(whh, np.float32)    # [4H, H]
        bih = np.asarray(bih, np.float32)    # [4H]
        bhh = np.asarray(bhh, np.float32)    # [4H]
        x_rows = slice(d * in_size, (d + 1) * in_size)
        h_rows = slice(d * H, (d + 1) * H)
        for q in range(4):                   # PyTorch order: i, f, g, o
            c0 = gate_col[q] * SW + d * H
            cols = slice(c0, c0 + H)
            Wx[x_rows, cols] = wih[q * H:(q + 1) * H, :].T
            Wh[h_rows, cols] = whh[q * H:(q + 1) * H, :].T
            b[0, cols] = bih[q * H:(q + 1) * H] + bhh[q * H:(q + 1) * H]
    # TODO(synk): return bf16 copies of Wx/Wh for larger H (MXU-native dtype).
    return jnp.asarray(Wx), jnp.asarray(Wh), jnp.asarray(b)


# ----------------------------------------------------------------------------
# Wrapper: multi-layer (optionally bidirectional) LSTM support-set encoder.
# ----------------------------------------------------------------------------
def lstm_support_set_encoder_forward(sequences, lengths, params, hidden_size,
                                     bidirectional=True, max_len=None):
    """sequences: [B, T, F] float32 (batch_first), lengths: [B] int.
    Returns (encoded [B, T_out, D*hidden_size], lengths) with
    T_out = min(max_len, T) (static host int; pass max(lengths)) or T.
    Positions >= length are zero, matching
    pack_padded_sequence -> LSTM -> pad_packed_sequence."""
    B, T, F = sequences.shape
    H = hidden_size
    D = 2 if bidirectional else 1
    L = len(params)
    SW = D * H
    GW = 4 * SW
    assert all(len(layer) == D for layer in params)

    # Static time bound (= pad_packed_sequence output length); the kernel runs
    # only T_k serial steps so there are no stale rows past max(lengths).
    T_k = T if max_len is None else max(1, min(int(max_len), T))

    # Pad batch to a full 8-sublane tile; padded rows get length 0 -> zero output.
    B_pad = ((B + 7) // 8) * 8

    fused, in_size = [], F
    for layer in params:
        fused.append(_build_fused_layer_weights(layer, in_size, H))
        in_size = SW
    flat_wb = [a for wb in fused for a in wb]

    # Time-major, batch-padded, flattened to 2-D (row = t*B_pad + b): every
    # in-kernel per-step access is then a sublane-aligned row window.
    x = jnp.transpose(sequences.astype(jnp.float32)[:, :T_k], (1, 0, 2))  # [T_k,B,F]
    if B_pad != B:
        x = jnp.pad(x, ((0, 0), (0, B_pad - B), (0, 0)))
    x_flat = x.reshape(T_k * B_pad, F)

    lens = jnp.asarray(lengths, jnp.int32).reshape(B, 1)
    if B_pad != B:
        lens = jnp.pad(lens, ((0, B_pad - B), (0, 0)))
    lens_tiled = jnp.tile(lens, (T_k, 1))                # [T_k*B_pad, 1] metadata

    n_mid = 0 if L == 1 else min(L - 1, 2)
    scratch = ([pltpu.VMEM((T_k * B_pad, SW), jnp.float32)] * n_mid   # inter-layer
               + [pltpu.VMEM((T_k * B_pad, SW), jnp.float32)]          # staging
               + [pltpu.VMEM((T_k * B_pad, GW), jnp.float32)])         # pre-activation
    if D == 2:
        scratch += [pltpu.VMEM((T_k * B_pad, GW), jnp.float32)]        # rev projection
    scratch += [pltpu.VMEM((T_k * B_pad, SW), jnp.float32)]            # validity mask

    kernel = functools.partial(_lstm_encoder_kernel,
                               B=B_pad, T=T_k, F=F, H=H, D=D, L=L)
    vmem = pl.BlockSpec(memory_space=pltpu.MemorySpace.VMEM)

    # TODO(synk): for large B/T/H, tile T/B with BlockSpecs (double-buffered DMA)
    # and expose a "parallel" batch grid axis for v7x's second TensorCore; also
    # pad the output last dim to >=128 lanes for a fully dense writeback.
    out_flat = pl.pallas_call(
        kernel,
        out_shape=jax.ShapeDtypeStruct((T_k * B_pad, SW), jnp.float32),
        in_specs=[vmem] * (2 + 3 * L),
        out_specs=vmem,
        scratch_shapes=scratch,
    )(lens_tiled, x_flat, *flat_wb)

    out = out_flat.reshape(T_k, B_pad, SW)[:, :B]
    out = jnp.transpose(out, (1, 0, 2))                  # [B, T_k, D*H]
    return out, lengths


# ----------------------------------------------------------------------------
# Deterministic parameter init (same shapes as nn.LSTM, uniform(-1/sqrt(H), .)).
# ----------------------------------------------------------------------------
def init_lstm_params(key, input_size, hidden_size, num_layers, bidirectional):
    D = 2 if bidirectional else 1
    k = 1.0 / np.sqrt(hidden_size)
    params = []
    for layer in range(num_layers):
        in_size = input_size if layer == 0 else D * hidden_size
        dirs = []
        for _ in range(D):
            key, k1, k2, k3, k4 = jax.random.split(key, 5)
            wih = jax.random.uniform(k1, (4 * hidden_size, in_size), jnp.float32, -k, k)
            whh = jax.random.uniform(k2, (4 * hidden_size, hidden_size), jnp.float32, -k, k)
            bih = jax.random.uniform(k3, (4 * hidden_size,), jnp.float32, -k, k)
            bhh = jax.random.uniform(k4, (4 * hidden_size,), jnp.float32, -k, k)
            dirs.append((wih, whh, bih, bhh))
        params.append(dirs)
    return params


# ----------------------------------------------------------------------------
# Pure-numpy reference (packed-sequence LSTM semantics) for validation.
# ----------------------------------------------------------------------------
def _sigmoid(x):
    return 1.0 / (1.0 + np.exp(-x))


def ref_forward(sequences, lengths, params, H):
    seq = np.asarray(sequences, np.float64)
    lens = np.asarray(lengths)
    B, T, _ = seq.shape
    layer_in = seq
    for layer in params:
        outs = []
        for d, (wih, whh, bih, bhh) in enumerate(layer):
            wih = np.asarray(wih, np.float64)
            whh = np.asarray(whh, np.float64)
            bih = np.asarray(bih, np.float64)
            bhh = np.asarray(bhh, np.float64)
            out = np.zeros((B, T, H), np.float64)
            for b in range(B):
                Lb = int(lens[b])
                h = np.zeros(H)
                c = np.zeros(H)
                ts = range(Lb) if d == 0 else range(Lb - 1, -1, -1)
                for t in ts:
                    g = wih @ layer_in[b, t] + whh @ h + bih + bhh
                    i_ = _sigmoid(g[0:H])
                    f_ = _sigmoid(g[H:2 * H])
                    gg = np.tanh(g[2 * H:3 * H])
                    o_ = _sigmoid(g[3 * H:4 * H])
                    c = f_ * c + i_ * gg
                    h = o_ * np.tanh(c)
                    out[b, t] = h
            outs.append(out)
        layer_in = np.concatenate(outs, axis=-1)
    max_len = int(lens.max())
    return layer_in[:, :max_len]


if __name__ == "__main__":
    # Module config: input_size=8, hidden_size=32, num_layers=2, bidirectional=True
    B, T, F, H = 4, 8, 8, 32
    num_layers, bidirectional = 2, True

    key = jax.random.PRNGKey(0)
    k_seq, k_par = jax.random.split(key)
    sequences = jax.random.normal(k_seq, (B, T, F), jnp.float32)
    lengths_np = np.array([8, 5, 8, 3], np.int32)   # variable-length support series
    lengths = jnp.asarray(lengths_np)

    params = init_lstm_params(k_par, F, H, num_layers, bidirectional)

    # pad_packed_sequence truncation to max(lengths) -- static host-side value.
    max_len = int(lengths_np.max())

    out, out_lens = lstm_support_set_encoder_forward(
        sequences, lengths, params, H,
        bidirectional=bidirectional, max_len=max_len)
    out = jax.block_until_ready(out)

    ref = ref_forward(np.asarray(sequences), lengths_np, params, H)
    np.testing.assert_allclose(np.asarray(out), ref, rtol=1e-2, atol=1e-2)

    print("KERNEL_OK")
</pallas_src>

<mosaic_0001>
module attributes {stable_mosaic.version = 11 : i64} {
  func.func @_lstm_encoder_kernel(%arg0: memref<64x1xi32, #tpu.memory_space<vmem>>, %arg1: memref<64x8xf32, #tpu.memory_space<vmem>>, %arg2: memref<16x256xf32, #tpu.memory_space<vmem>>, %arg3: memref<64x256xf32, #tpu.memory_space<vmem>>, %arg4: memref<1x256xf32, #tpu.memory_space<vmem>>, %arg5: memref<128x256xf32, #tpu.memory_space<vmem>>, %arg6: memref<64x256xf32, #tpu.memory_space<vmem>>, %arg7: memref<1x256xf32, #tpu.memory_space<vmem>>, %arg8: memref<64x64xf32, #tpu.memory_space<vmem>>, %arg9: memref<64x64xf32, #tpu.memory_space<vmem>>, %arg10: memref<64x64xf32, #tpu.memory_space<vmem>>, %arg11: memref<64x256xf32, #tpu.memory_space<vmem>>, %arg12: memref<64x256xf32, #tpu.memory_space<vmem>>, %arg13: memref<64x64xf32, #tpu.memory_space<vmem>>) attributes {dimension_semantics = [], scalar_prefetch = 0 : i64, scratch_operands = 5 : i64, tpu.core_type = #tpu.core_type<tc>} {
    %c0 = arith.constant 0 : index
    %c0_0 = arith.constant 0 : index
    %0 = vector.load %arg0[%c0, %c0_0] : memref<64x1xi32, #tpu.memory_space<vmem>>, vector<64x1xi32>
    %c8_i32 = arith.constant 8 : i32
    %1 = vector.broadcast %c8_i32 : i32 to vector<64x1xi32>
    %2 = arith.muli %0, %1 : vector<64x1xi32>
    %3 = tpu.iota {dimensions = array<i32: 0>} : vector<64x64xi32>
    %4 = vector.broadcast %2 : vector<64x1xi32> to vector<64x64xi32>
    %5 = arith.cmpi slt, %3, %4 : vector<64x64xi32>
    %6 = arith.extui %5 : vector<64x64xi1> to vector<64x64xi32>
    %7 = arith.sitofp %6 : vector<64x64xi32> to vector<64x64xf32>
    %c64_i32 = arith.constant 64 : i32
    %8 = vector.broadcast %c64_i32 : i32 to vector<64x1xi32>
    %9 = arith.subi %8, %2 : vector<64x1xi32>
    %10 = vector.broadcast %9 : vector<64x1xi32> to vector<64x64xi32>
    %11 = arith.cmpi sge, %3, %10 : vector<64x64xi32>
    %12 = arith.extui %11 : vector<64x64xi1> to vector<64x64xi32>
    %13 = arith.sitofp %12 : vector<64x64xi32> to vector<64x64xf32>
    %14 = tpu.iota {dimensions = array<i32: 1>} : vector<64x64xi32>
    %c32_i32 = arith.constant 32 : i32
    %15 = vector.broadcast %c32_i32 : i32 to vector<64x64xi32>
    %16 = arith.cmpi slt, %14, %15 : vector<64x64xi32>
    %17 = arith.select %16, %7, %13 : vector<64x64xi1>, vector<64x64xf32>
    %c0_1 = arith.constant 0 : index
    %c0_2 = arith.constant 0 : index
    %18 = vector.load %arg13[%c0_1, %c0_2] : memref<64x64xf32, #tpu.memory_space<vmem>>, vector<64x64xf32>
    tpu.vector_store %arg13[%c0_1, %c0_2], %17 {strides = array<i32>} : memref<64x64xf32, #tpu.memory_space<vmem>>, vector<64x64xf32>,
    %19 = tpu.iota {dimensions = array<i32: 1>} : vector<8x64xi32>
    %c32_i32_3 = arith.constant 32 : i32
    %20 = vector.broadcast %c32_i32_3 : i32 to vector<8x64xi32>
    %21 = arith.cmpi slt, %19, %20 : vector<8x64xi32>
    %c0_4 = arith.constant 0 : index
    %c0_5 = arith.constant 0 : index
    %22 = vector.load %arg1[%c0_4, %c0_5] : memref<64x8xf32, #tpu.memory_space<vmem>>, vector<64x8xf32>
    %c0_6 = arith.constant 0 : index
    %c0_7 = arith.constant 0 : index
    %23 = vector.load %arg2[%c0_6, %c0_7] : memref<16x256xf32, #tpu.memory_space<vmem>>, vector<8x256xf32>
    %cst = arith.constant dense<0.000000e+00> : vector<64x256xf32>
    %24 = tpu.matmul %22, %23, %cst {dimension_numbers = #tpu.dot_dimension_numbers<[1], [0], [0], [1], [0, 0, 1, 1], [], []>} : vector<64x8xf32>, vector<8x256xf32>, vector<64x256xf32> -> vector<64x256xf32>
    %c0_8 = arith.constant 0 : index
    %c0_9 = arith.constant 0 : index
    %25 = vector.load %arg4[%c0_8, %c0_9] : memref<1x256xf32, #tpu.memory_space<vmem>>, vector<1x256xf32>
    %26 = vector.broadcast %25 : vector<1x256xf32> to vector<64x256xf32>
    %27 = arith.addf %24, %26 : vector<64x256xf32>
    %c0_10 = arith.constant 0 : index
    %c0_11 = arith.constant 0 : index
    %28 = vector.load %arg11[%c0_10, %c0_11] : memref<64x256xf32, #tpu.memory_space<vmem>>, vector<64x256xf32>
    tpu.vector_store %arg11[%c0_10, %c0_11], %27 {strides = array<i32>} : memref<64x256xf32, #tpu.memory_space<vmem>>, vector<64x256xf32>,
    %c8 = arith.constant 8 : index
    %c0_12 = arith.constant 0 : index
    %29 = vector.load %arg2[%c8, %c0_12] : memref<16x256xf32, #tpu.memory_space<vmem>>, vector<8x256xf32>
    %cst_13 = arith.constant dense<0.000000e+00> : vector<64x256xf32>
    %30 = tpu.matmul %22, %29, %cst_13 {dimension_numbers = #tpu.dot_dimension_numbers<[1], [0], [0], [1], [0, 0, 1, 1], [], []>} : vector<64x8xf32>, vector<8x256xf32>, vector<64x256xf32> -> vector<64x256xf32>
    %c0_14 = arith.constant 0 : index
    %c0_15 = arith.constant 0 : index
    %31 = vector.load %arg12[%c0_14, %c0_15] : memref<64x256xf32, #tpu.memory_space<vmem>>, vector<64x256xf32>
    tpu.vector_store %arg12[%c0_14, %c0_15], %30 {strides = array<i32>} : memref<64x256xf32, #tpu.memory_space<vmem>>, vector<64x256xf32>,
    %c0_16 = arith.constant 0 : index
    %c0_17 = arith.constant 0 : index
    %32 = vector.load %arg11[%c0_16, %c0_17] : memref<64x256xf32, #tpu.memory_space<vmem>>, vector<8x256xf32>
    %c56 = arith.constant 56 : index
    %c0_18 = arith.constant 0 : index
    %33 = vector.load %arg12[%c56, %c0_18] : memref<64x256xf32, #tpu.memory_space<vmem>>, vector<8x256xf32>
    %34 = arith.addf %32, %33 : vector<8x256xf32>
    %c0_19 = arith.constant 0 : index
    %c0_20 = arith.constant 0 : index
    %35 = vector.load %arg11[%c0_19, %c0_20] : memref<64x256xf32, #tpu.memory_space<vmem>>, vector<8x256xf32>
    tpu.vector_store %arg11[%c0_19, %c0_20], %34 {strides = array<i32>} : memref<64x256xf32, #tpu.memory_space<vmem>>, vector<8x256xf32>,
    %c8_21 = arith.constant 8 : index
    %c0_22 = arith.constant 0 : index
    %36 = vector.load %arg11[%c8_21, %c0_22] : memref<64x256xf32, #tpu.memory_space<vmem>>, vector<8x256xf32>
    %c48 = arith.constant 48 : index
    %c0_23 = arith.constant 0 : index
    %37 = vector.load %arg12[%c48, %c0_23] : memref<64x256xf32, #tpu.memory_space<vmem>>, vector<8x256xf32>
    %38 = arith.addf %36, %37 : vector<8x256xf32>
    %c8_24 = arith.constant 8 : index
    %c0_25 = arith.constant 0 : index
    %39 = vector.load %arg11[%c8_24, %c0_25] : memref<64x256xf32, #tpu.memory_space<vmem>>, vector<8x256xf32>
    tpu.vector_store %arg11[%c8_24, %c0_25], %38 {strides = array<i32>} : memref<64x256xf32, #tpu.memory_space<vmem>>, vector<8x256xf32>,
    %c16 = arith.constant 16 : index
    %c0_26 = arith.constant 0 : index
    %40 = vector.load %arg11[%c16, %c0_26] : memref<64x256xf32, #tpu.memory_space<vmem>>, vector<8x256xf32>
    %c40 = arith.constant 40 : index
    %c0_27 = arith.constant 0 : index
    %41 = vector.load %arg12[%c40, %c0_27] : memref<64x256xf32, #tpu.memory_space<vmem>>, vector<8x256xf32>
    %42 = arith.addf %40, %41 : vector<8x256xf32>
    %c16_28 = arith.constant 16 : index
    %c0_29 = arith.constant 0 : index
    %43 = vector.load %arg11[%c16_28, %c0_29] : memref<64x256xf32, #tpu.memory_space<vmem>>, vector<8x256xf32>
    tpu.vector_store %arg11[%c16_28, %c0_29], %42 {strides = array<i32>} : memref<64x256xf32, #tpu.memory_space<vmem>>, vector<8x256xf32>,
    %c24 = arith.constant 24 : index
    %c0_30 = arith.constant 0 : index
    %44 = vector.load %arg11[%c24, %c0_30] : memref<64x256xf32, #tpu.memory_space<vmem>>, vector<8x256xf32>
    %c32 = arith.constant 32 : index
    %c0_31 = arith.constant 0 : index
    %45 = vector.load %arg12[%c32, %c0_31] : memref<64x256xf32, #tpu.memory_space<vmem>>, vector<8x256xf32>
    %46 = arith.addf %44, %45 : vector<8x256xf32>
    %c24_32 = arith.constant 24 : index
    %c0_33 = arith.constant 0 : index
    %47 = vector.load %arg11[%c24_32, %c0_33] : memref<64x256xf32, #tpu.memory_space<vmem>>, vector<8x256xf32>
    tpu.vector_store %arg11[%c24_32, %c0_33], %46 {strides = array<i32>} : memref<64x256xf32, #tpu.memory_space<vmem>>, vector<8x256xf32>,
    %c32_34 = arith.constant 32 : index
    %c0_35 = arith.constant 0 : index
    %48 = vector.load %arg11[%c32_34, %c0_35] : memref<64x256xf32, #tpu.memory_space<vmem>>, vector<8x256xf32>
    %c24_36 = arith.constant 24 : index
    %c0_37 = arith.constant 0 : index
    %49 = vector.load %arg12[%c24_36, %c0_37] : memref<64x256xf32, #tpu.memory_space<vmem>>, vector<8x256xf32>
    %50 = arith.addf %48, %49 : vector<8x256xf32>
    %c32_38 = arith.constant 32 : index
    %c0_39 = arith.constant 0 : index
    %51 = vector.load %arg11[%c32_38, %c0_39] : memref<64x256xf32, #tpu.memory_space<vmem>>, vector<8x256xf32>
    tpu.vector_store %arg11[%c32_38, %c0_39], %50 {strides = array<i32>} : memref<64x256xf32, #tpu.memory_space<vmem>>, vector<8x256xf32>,
    %c40_40 = arith.constant 40 : index
    %c0_41 = arith.constant 0 : index
    %52 = vector.load %arg11[%c40_40, %c0_41] : memref<64x256xf32, #tpu.memory_space<vmem>>, vector<8x256xf32>
    %c16_42 = arith.constant 16 : index
    %c0_43 = arith.constant 0 : index
    %53 = vector.load %arg12[%c16_42, %c0_43] : memref<64x256xf32, #tpu.memory_space<vmem>>, vector<8x256xf32>
    %54 = arith.addf %52, %53 : vector<8x256xf32>
    %c40_44 = arith.constant 40 : index
    %c0_45 = arith.constant 0 : index
    %55 = vector.load %arg11[%c40_44, %c0_45] : memref<64x256xf32, #tpu.memory_space<vmem>>, vector<8x256xf32>
    tpu.vector_store %arg11[%c40_44, %c0_45], %54 {strides = array<i32>} : memref<64x256xf32, #tpu.memory_space<vmem>>, vector<8x256xf32>,
    %c48_46 = arith.constant 48 : index
    %c0_47 = arith.constant 0 : index
    %56 = vector.load %arg11[%c48_46, %c0_47] : memref<64x256xf32, #tpu.memory_space<vmem>>, vector<8x256xf32>
    %c8_48 = arith.constant 8 : index
    %c0_49 = arith.constant 0 : index
    %57 = vector.load %arg12[%c8_48, %c0_49] : memref<64x256xf32, #tpu.memory_space<vmem>>, vector<8x256xf32>
    %58 = arith.addf %56, %57 : vector<8x256xf32>
    %c48_50 = arith.constant 48 : index
    %c0_51 = arith.constant 0 : index
    %59 = vector.load %arg11[%c48_50, %c0_51] : memref<64x256xf32, #tpu.memory_space<vmem>>, vector<8x256xf32>
    tpu.vector_store %arg11[%c48_50, %c0_51], %58 {strides = array<i32>} : memref<64x256xf32, #tpu.memory_space<vmem>>, vector<8x256xf32>,
    %c56_52 = arith.constant 56 : index
    %c0_53 = arith.constant 0 : index
    %60 = vector.load %arg11[%c56_52, %c0_53] : memref<64x256xf32, #tpu.memory_space<vmem>>, vector<8x256xf32>
    %c0_54 = arith.constant 0 : index
    %c0_55 = arith.constant 0 : index
    %61 = vector.load %arg12[%c0_54, %c0_55] : memref<64x256xf32, #tpu.memory_space<vmem>>, vector<8x256xf32>
    %62 = arith.addf %60, %61 : vector<8x256xf32>
    %c56_56 = arith.constant 56 : index
    %c0_57 = arith.constant 0 : index
    %63 = vector.load %arg11[%c56_56, %c0_57] : memref<64x256xf32, #tpu.memory_space<vmem>>, vector<8x256xf32>
    tpu.vector_store %arg11[%c56_56, %c0_57], %62 {strides = array<i32>} : memref<64x256xf32, #tpu.memory_space<vmem>>, vector<8x256xf32>,
    %c0_58 = arith.constant 0 : index
    %c0_59 = arith.constant 0 : index
    %64 = vector.load %arg3[%c0_58, %c0_59] : memref<64x256xf32, #tpu.memory_space<vmem>>, vector<64x256xf32>
    %cst_60 = arith.constant 0.000000e+00 : f32
    %65 = vector.broadcast %cst_60 : f32 to vector<8x64xf32>
    %cst_61 = arith.constant 0.000000e+00 : f32
    %66 = vector.broadcast %cst_61 : f32 to vector<8x64xf32>
    %c0_62 = arith.constant 0 : index
    %c0_63 = arith.constant 0 : index
    %67 = vector.load %arg11[%c0_62, %c0_63] : memref<64x256xf32, #tpu.memory_space<vmem>>, vector<8x256xf32>
    %cst_64 = arith.constant dense<0.000000e+00> : vector<8x256xf32>
    %68 = tpu.matmul %65, %64, %cst_64 {dimension_numbers = #tpu.dot_dimension_numbers<[1], [0], [0], [1], [0, 0, 1, 1], [], []>} : vector<8x64xf32>, vector<64x256xf32>, vector<8x256xf32> -> vector<8x256xf32>
    %69 = arith.addf %67, %68 : vector<8x256xf32>
    %70 = vector.extract_strided_slice %69 {offsets = [0, 0], sizes = [8, 192], strides = [1, 1]} : vector<8x256xf32> to vector<8x192xf32>
    %71 = arith.negf %70 : vector<8x192xf32>
    %72 = math.exp %71 : vector<8x192xf32>
    %cst_65 = arith.constant 1.000000e+00 : f32
    %73 = vector.broadcast %cst_65 : f32 to vector<8x192xf32>
    %74 = arith.addf %73, %72 : vector<8x192xf32>
    %75 = arith.divf %73, %74 : vector<8x192xf32>
    %76 = vector.extract_strided_slice %75 {offsets = [0, 0], sizes = [8, 64], strides = [1, 1]} : vector<8x192xf32> to vector<8x64xf32>
    %77 = vector.extract_strided_slice %75 {offsets = [0, 64], sizes = [8, 64], strides = [1, 1]} : vector<8x192xf32> to vector<8x64xf32>
    %78 = vector.extract_strided_slice %75 {offsets = [0, 128], sizes = [8, 64], strides = [1, 1]} : vector<8x192xf32> to vector<8x64xf32>
    %79 = vector.extract_strided_slice %69 {offsets = [0, 192], sizes = [8, 64], strides = [1, 1]} : vector<8x256xf32> to vector<8x64xf32>
    %80 = math.tanh %79 : vector<8x64xf32>
    %81 = arith.mulf %77, %66 : vector<8x64xf32>
    %82 = arith.mulf %76, %80 : vector<8x64xf32>
    %83 = arith.addf %81, %82 : vector<8x64xf32>
    %84 = math.tanh %83 : vector<8x64xf32>
    %85 = arith.mulf %78, %84 : vector<8x64xf32>
    %c0_66 = arith.constant 0 : index
    %c0_67 = arith.constant 0 : index
    %86 = vector.load %arg13[%c0_66, %c0_67] : memref<64x64xf32, #tpu.memory_space<vmem>>, vector<8x64xf32>
    %cst_68 = arith.constant 1.000000e+00 : f32
    %87 = vector.broadcast %cst_68 : f32 to vector<8x64xf32>
    %88 = arith.subf %87, %86 : vector<8x64xf32>
    %89 = arith.mulf %86, %83 : vector<8x64xf32>
    %90 = arith.mulf %88, %66 : vector<8x64xf32>
    %91 = arith.addf %89, %90 : vector<8x64xf32>
    %92 = arith.mulf %86, %85 : vector<8x64xf32>
    %93 = arith.mulf %88, %65 : vector<8x64xf32>
    %94 = arith.addf %92, %93 : vector<8x64xf32>
    %95 = arith.mulf %86, %85 : vector<8x64xf32>
    %c0_69 = arith.constant 0 : index
    %c0_70 = arith.constant 0 : index
    %96 = vector.load %arg10[%c0_69, %c0_70] : memref<64x64xf32, #tpu.memory_space<vmem>>, vector<8x64xf32>
    tpu.vector_store %arg10[%c0_69, %c0_70], %95 {strides = array<i32>} : memref<64x64xf32, #tpu.memory_space<vmem>>, vector<8x64xf32>,
    %c8_71 = arith.constant 8 : index
    %c0_72 = arith.constant 0 : index
    %97 = vector.load %arg11[%c8_71, %c0_72] : memref<64x256xf32, #tpu.memory_space<vmem>>, vector<8x256xf32>
    %cst_73 = arith.constant dense<0.000000e+00> : vector<8x256xf32>
    %98 = tpu.matmul %94, %64, %cst_73 {dimension_numbers = #tpu.dot_dimension_numbers<[1], [0], [0], [1], [0, 0, 1, 1], [], []>} : vector<8x64xf32>, vector<64x256xf32>, vector<8x256xf32> -> vector<8x256xf32>
    %99 = arith.addf %97, %98 : vector<8x256xf32>
    %100 = vector.extract_strided_slice %99 {offsets = [0, 0], sizes = [8, 192], strides = [1, 1]} : vector<8x256xf32> to vector<8x192xf32>
    %101 = arith.negf %100 : vector<8x192xf32>
    %102 = math.exp %101 : vector<8x192xf32>
    %cst_74 = arith.constant 1.000000e+00 : f32
    %103 = vector.broadcast %cst_74 : f32 to vector<8x192xf32>
    %104 = arith.addf %103, %102 : vector<8x192xf32>
    %105 = arith.divf %103, %104 : vector<8x192xf32>
    %106 = vector.extract_strided_slice %105 {offsets = [0, 0], sizes = [8, 64], strides = [1, 1]} : vector<8x192xf32> to vector<8x64xf32>
    %107 = vector.extract_strided_slice %105 {offsets = [0, 64], sizes = [8, 64], strides = [1, 1]} : vector<8x192xf32> to vector<8x64xf32>
    %108 = vector.extract_strided_slice %105 {offsets = [0, 128], sizes = [8, 64], strides = [1, 1]} : vector<8x192xf32> to vector<8x64xf32>
    %109 = vector.extract_strided_slice %99 {offsets = [0, 192], sizes = [8, 64], strides = [1, 1]} : vector<8x256xf32> to vector<8x64xf32>
    %110 = math.tanh %109 : vector<8x64xf32>
    %111 = arith.mulf %107, %91 : vector<8x64xf32>
    %112 = arith.mulf %106, %110 : vector<8x64xf32>
    %113 = arith.addf %111, %112 : vector<8x64xf32>
    %114 = math.tanh %113 : vector<8x64xf32>
    %115 = arith.mulf %108, %114 : vector<8x64xf32>
    %c8_75 = arith.constant 8 : index
    %c0_76 = arith.constant 0 : index
    %116 = vector.load %arg13[%c8_75, %c0_76] : memref<64x64xf32, #tpu.memory_space<vmem>>, vector<8x64xf32>
    %cst_77 = arith.constant 1.000000e+00 : f32
    %117 = vector.broadcast %cst_77 : f32 to vector<8x64xf32>
    %118 = arith.subf %117, %116 : vector<8x64xf32>
    %119 = arith.mulf %116, %113 : vector<8x64xf32>
    %120 = arith.mulf %118, %91 : vector<8x64xf32>
    %121 = arith.addf %119, %120 : vector<8x64xf32>
    %122 = arith.mulf %116, %115 : vector<8x64xf32>
    %123 = arith.mulf %118, %94 : vector<8x64xf32>
    %124 = arith.addf %122, %123 : vector<8x64xf32>
    %125 = arith.mulf %116, %115 : vector<8x64xf32>
    %c8_78 = arith.constant 8 : index
    %c0_79 = arith.constant 0 : index
    %126 = vector.load %arg10[%c8_78, %c0_79] : memref<64x64xf32, #tpu.memory_space<vmem>>, vector<8x64xf32>
    tpu.vector_store %arg10[%c8_78, %c0_79], %125 {strides = array<i32>} : memref<64x64xf32, #tpu.memory_space<vmem>>, vector<8x64xf32>,
    %c16_80 = arith.constant 16 : index
    %c0_81 = arith.constant 0 : index
    %127 = vector.load %arg11[%c16_80, %c0_81] : memref<64x256xf32, #tpu.memory_space<vmem>>, vector<8x256xf32>
    %cst_82 = arith.constant dense<0.000000e+00> : vector<8x256xf32>
    %128 = tpu.matmul %124, %64, %cst_82 {dimension_numbers = #tpu.dot_dimension_numbers<[1], [0], [0], [1], [0, 0, 1, 1], [], []>} : vector<8x64xf32>, vector<64x256xf32>, vector<8x256xf32> -> vector<8x256xf32>
    %129 = arith.addf %127, %128 : vector<8x256xf32>
    %130 = vector.extract_strided_slice %129 {offsets = [0, 0], sizes = [8, 192], strides = [1, 1]} : vector<8x256xf32> to vector<8x192xf32>
    %131 = arith.negf %130 : vector<8x192xf32>
    %132 = math.exp %131 : vector<8x192xf32>
    %cst_83 = arith.constant 1.000000e+00 : f32
    %133 = vector.broadcast %cst_83 : f32 to vector<8x192xf32>
    %134 = arith.addf %133, %132 : vector<8x192xf32>
    %135 = arith.divf %133, %134 : vector<8x192xf32>
    %136 = vector.extract_strided_slice %135 {offsets = [0, 0], sizes = [8, 64], strides = [1, 1]} : vector<8x192xf32> to vector<8x64xf32>
    %137 = vector.extract_strided_slice %135 {offsets = [0, 64], sizes = [8, 64], strides = [1, 1]} : vector<8x192xf32> to vector<8x64xf32>
    %138 = vector.extract_strided_slice %135 {offsets = [0, 128], sizes = [8, 64], strides = [1, 1]} : vector<8x192xf32> to vector<8x64xf32>
    %139 = vector.extract_strided_slice %129 {offsets = [0, 192], sizes = [8, 64], strides = [1, 1]} : vector<8x256xf32> to vector<8x64xf32>
    %140 = math.tanh %139 : vector<8x64xf32>
    %141 = arith.mulf %137, %121 : vector<8x64xf32>
    %142 = arith.mulf %136, %140 : vector<8x64xf32>
    %143 = arith.addf %141, %142 : vector<8x64xf32>
    %144 = math.tanh %143 : vector<8x64xf32>
    %145 = arith.mulf %138, %144 : vector<8x64xf32>
    %c16_84 = arith.constant 16 : index
    %c0_85 = arith.constant 0 : index
    %146 = vector.load %arg13[%c16_84, %c0_85] : memref<64x64xf32, #tpu.memory_space<vmem>>, vector<8x64xf32>
    %cst_86 = arith.constant 1.000000e+00 : f32
    %147 = vector.broadcast %cst_86 : f32 to vector<8x64xf32>
    %148 = arith.subf %147, %146 : vector<8x64xf32>
    %149 = arith.mulf %146, %143 : vector<8x64xf32>
    %150 = arith.mulf %148, %121 : vector<8x64xf32>
    %151 = arith.addf %149, %150 : vector<8x64xf32>
    %152 = arith.mulf %146, %145 : vector<8x64xf32>
    %153 = arith.mulf %148, %124 : vector<8x64xf32>
    %154 = arith.addf %152, %153 : vector<8x64xf32>
    %155 = arith.mulf %146, %145 : vector<8x64xf32>
    %c16_87 = arith.constant 16 : index
    %c0_88 = arith.constant 0 : index
    %156 = vector.load %arg10[%c16_87, %c0_88] : memref<64x64xf32, #tpu.memory_space<vmem>>, vector<8x64xf32>
    tpu.vector_store %arg10[%c16_87, %c0_88], %155 {strides = array<i32>} : memref<64x64xf32, #tpu.memory_space<vmem>>, vector<8x64xf32>,
    %c24_89 = arith.constant 24 : index
    %c0_90 = arith.constant 0 : index
    %157 = vector.load %arg11[%c24_89, %c0_90] : memref<64x256xf32, #tpu.memory_space<vmem>>, vector<8x256xf32>
    %cst_91 = arith.constant dense<0.000000e+00> : vector<8x256xf32>
    %158 = tpu.matmul %154, %64, %cst_91 {dimension_numbers = #tpu.dot_dimension_numbers<[1], [0], [0], [1], [0, 0, 1, 1], [], []>} : vector<8x64xf32>, vector<64x256xf32>, vector<8x256xf32> -> vector<8x256xf32>
    %159 = arith.addf %157, %158 : vector<8x256xf32>
    %160 = vector.extract_strided_slice %159 {offsets = [0, 0], sizes = [8, 192], strides = [1, 1]} : vector<8x256xf32> to vector<8x192xf32>
    %161 = arith.negf %160 : vector<8x192xf32>
    %162 = math.exp %161 : vector<8x192xf32>
    %cst_92 = arith.constant 1.000000e+00 : f32
    %163 = vector.broadcast %cst_92 : f32 to vector<8x192xf32>
    %164 = arith.addf %163, %162 : vector<8x192xf32>
    %165 = arith.divf %163, %164 : vector<8x192xf32>
    %166 = vector.extract_strided_slice %165 {offsets = [0, 0], sizes = [8, 64], strides = [1, 1]} : vector<8x192xf32> to vector<8x64xf32>
    %167 = vector.extract_strided_slice %165 {offsets = [0, 64], sizes = [8, 64], strides = [1, 1]} : vector<8x192xf32> to vector<8x64xf32>
    %168 = vector.extract_strided_slice %165 {offsets = [0, 128], sizes = [8, 64], strides = [1, 1]} : vector<8x192xf32> to vector<8x64xf32>
    %169 = vector.extract_strided_slice %159 {offsets = [0, 192], sizes = [8, 64], strides = [1, 1]} : vector<8x256xf32> to vector<8x64xf32>
    %170 = math.tanh %169 : vector<8x64xf32>
    %171 = arith.mulf %167, %151 : vector<8x64xf32>
    %172 = arith.mulf %166, %170 : vector<8x64xf32>
    %173 = arith.addf %171, %172 : vector<8x64xf32>
    %174 = math.tanh %173 : vector<8x64xf32>
    %175 = arith.mulf %168, %174 : vector<8x64xf32>
    %c24_93 = arith.constant 24 : index
    %c0_94 = arith.constant 0 : index
    %176 = vector.load %arg13[%c24_93, %c0_94] : memref<64x64xf32, #tpu.memory_space<vmem>>, vector<8x64xf32>
    %cst_95 = arith.constant 1.000000e+00 : f32
    %177 = vector.broadcast %cst_95 : f32 to vector<8x64xf32>
    %178 = arith.subf %177, %176 : vector<8x64xf32>
    %179 = arith.mulf %176, %173 : vector<8x64xf32>
    %180 = arith.mulf %178, %151 : vector<8x64xf32>
    %181 = arith.addf %179, %180 : vector<8x64xf32>
    %182 = arith.mulf %176, %175 : vector<8x64xf32>
    %183 = arith.mulf %178, %154 : vector<8x64xf32>
    %184 = arith.addf %182, %183 : vector<8x64xf32>
    %185 = arith.mulf %176, %175 : vector<8x64xf32>
    %c24_96 = arith.constant 24 : index
    %c0_97 = arith.constant 0 : index
    %186 = vector.load %arg10[%c24_96, %c0_97] : memref<64x64xf32, #tpu.memory_space<vmem>>, vector<8x64xf32>
    tpu.vector_store %arg10[%c24_96, %c0_97], %185 {strides = array<i32>} : memref<64x64xf32, #tpu.memory_space<vmem>>, vector<8x64xf32>,
    %c32_98 = arith.constant 32 : index
    %c0_99 = arith.constant 0 : index
    %187 = vector.load %arg11[%c32_98, %c0_99] : memref<64x256xf32, #tpu.memory_space<vmem>>, vector<8x256xf32>
    %cst_100 = arith.constant dense<0.000000e+00> : vector<8x256xf32>
    %188 = tpu.matmul %184, %64, %cst_100 {dimension_numbers = #tpu.dot_dimension_numbers<[1], [0], [0], [1], [0, 0, 1, 1], [], []>} : vector<8x64xf32>, vector<64x256xf32>, vector<8x256xf32> -> vector<8x256xf32>
    %189 = arith.addf %187, %188 : vector<8x256xf32>
    %190 = vector.extract_strided_slice %189 {offsets = [0, 0], sizes = [8, 192], strides = [1, 1]} : vector<8x256xf32> to vector<8x192xf32>
    %191 = arith.negf %190 : vector<8x192xf32>
    %192 = math.exp %191 : vector<8x192xf32>
    %cst_101 = arith.constant 1.000000e+00 : f32
    %193 = vector.broadcast %cst_101 : f32 to vector<8x192xf32>
    %194 = arith.addf %193, %192 : vector<8x192xf32>
    %195 = arith.divf %193, %194 : vector<8x192xf32>
    %196 = vector.extract_strided_slice %195 {offsets = [0, 0], sizes = [8, 64], strides = [1, 1]} : vector<8x192xf32> to vector<8x64xf32>
    %197 = vector.extract_strided_slice %195 {offsets = [0, 64], sizes = [8, 64], strides = [1, 1]} : vector<8x192xf32> to vector<8x64xf32>
    %198 = vector.extract_strided_slice %195 {offsets = [0, 128], sizes = [8, 64], strides = [1, 1]} : vector<8x192xf32> to vector<8x64xf32>
    %199 = vector.extract_strided_slice %189 {offsets = [0, 192], sizes = [8, 64], strides = [1, 1]} : vector<8x256xf32> to vector<8x64xf32>
    %200 = math.tanh %199 : vector<8x64xf32>
    %201 = arith.mulf %197, %181 : vector<8x64xf32>
    %202 = arith.mulf %196, %200 : vector<8x64xf32>
    %203 = arith.addf %201, %202 : vector<8x64xf32>
    %204 = math.tanh %203 : vector<8x64xf32>
    %205 = arith.mulf %198, %204 : vector<8x64xf32>
    %c32_102 = arith.constant 32 : index
    %c0_103 = arith.constant 0 : index
    %206 = vector.load %arg13[%c32_102, %c0_103] : memref<64x64xf32, #tpu.memory_space<vmem>>, vector<8x64xf32>
    %cst_104 = arith.constant 1.000000e+00 : f32
    %207 = vector.broadcast %cst_104 : f32 to vector<8x64xf32>
    %208 = arith.subf %207, %206 : vector<8x64xf32>
    %209 = arith.mulf %206, %203 : vector<8x64xf32>
    %210 = arith.mulf %208, %181 : vector<8x64xf32>
    %211 = arith.addf %209, %210 : vector<8x64xf32>
    %212 = arith.mulf %206, %205 : vector<8x64xf32>
    %213 = arith.mulf %208, %184 : vector<8x64xf32>
    %214 = arith.addf %212, %213 : vector<8x64xf32>
    %215 = arith.mulf %206, %205 : vector<8x64xf32>
    %c32_105 = arith.constant 32 : index
    %c0_106 = arith.constant 0 : index
    %216 = vector.load %arg10[%c32_105, %c0_106] : memref<64x64xf32, #tpu.memory_space<vmem>>, vector<8x64xf32>
    tpu.vector_store %arg10[%c32_105, %c0_106], %215 {strides = array<i32>} : memref<64x64xf32, #tpu.memory_space<vmem>>, vector<8x64xf32>,
    %c40_107 = arith.constant 40 : index
    %c0_108 = arith.constant 0 : index
    %217 = vector.load %arg11[%c40_107, %c0_108] : memref<64x256xf32, #tpu.memory_space<vmem>>, vector<8x256xf32>
    %cst_109 = arith.constant dense<0.000000e+00> : vector<8x256xf32>
    %218 = tpu.matmul %214, %64, %cst_109 {dimension_numbers = #tpu.dot_dimension_numbers<[1], [0], [0], [1], [0, 0, 1, 1], [], []>} : vector<8x64xf32>, vector<64x256xf32>, vector<8x256xf32> -> vector<8x256xf32>
    %219 = arith.addf %217, %218 : vector<8x256xf32>
    %220 = vector.extract_strided_slice %219 {offsets = [0, 0], sizes = [8, 192], strides = [1, 1]} : vector<8x256xf32> to vector<8x192xf32>
    %221 = arith.negf %220 : vector<8x192xf32>
    %222 = math.exp %221 : vector<8x192xf32>
    %cst_110 = arith.constant 1.000000e+00 : f32
    %223 = vector.broadcast %cst_110 : f32 to vector<8x192xf32>
    %224 = arith.addf %223, %222 : vector<8x192xf32>
    %225 = arith.divf %223, %224 : vector<8x192xf32>
    %226 = vector.extract_strided_slice %225 {offsets = [0, 0], sizes = [8, 64], strides = [1, 1]} : vector<8x192xf32> to vector<8x64xf32>
    %227 = vector.extract_strided_slice %225 {offsets = [0, 64], sizes = [8, 64], strides = [1, 1]} : vector<8x192xf32> to vector<8x64xf32>
    %228 = vector.extract_strided_slice %225 {offsets = [0, 128], sizes = [8, 64], strides = [1, 1]} : vector<8x192xf32> to vector<8x64xf32>
    %229 = vector.extract_strided_slice %219 {offsets = [0, 192], sizes = [8, 64], strides = [1, 1]} : vector<8x256xf32> to vector<8x64xf32>
    %230 = math.tanh %229 : vector<8x64xf32>
    %231 = arith.mulf %227, %211 : vector<8x64xf32>
    %232 = arith.mulf %226, %230 : vector<8x64xf32>
    %233 = arith.addf %231, %232 : vector<8x64xf32>
    %234 = math.tanh %233 : vector<8x64xf32>
    %235 = arith.mulf %228, %234 : vector<8x64xf32>
    %c40_111 = arith.constant 40 : index
    %c0_112 = arith.constant 0 : index
    %236 = vector.load %arg13[%c40_111, %c0_112] : memref<64x64xf32, #tpu.memory_space<vmem>>, vector<8x64xf32>
    %cst_113 = arith.constant 1.000000e+00 : f32
    %237 = vector.broadcast %cst_113 : f32 to vector<8x64xf32>
    %238 = arith.subf %237, %236 : vector<8x64xf32>
    %239 = arith.mulf %236, %233 : vector<8x64xf32>
    %240 = arith.mulf %238, %211 : vector<8x64xf32>
    %241 = arith.addf %239, %240 : vector<8x64xf32>
    %242 = arith.mulf %236, %235 : vector<8x64xf32>
    %243 = arith.mulf %238, %214 : vector<8x64xf32>
    %244 = arith.addf %242, %243 : vector<8x64xf32>
    %245 = arith.mulf %236, %235 : vector<8x64xf32>
    %c40_114 = arith.constant 40 : index
    %c0_115 = arith.constant 0 : index
    %246 = vector.load %arg10[%c40_114, %c0_115] : memref<64x64xf32, #tpu.memory_space<vmem>>, vector<8x64xf32>
    tpu.vector_store %arg10[%c40_114, %c0_115], %245 {strides = array<i32>} : memref<64x64xf32, #tpu.memory_space<vmem>>, vector<8x64xf32>,
    %c48_116 = arith.constant 48 : index
    %c0_117 = arith.constant 0 : index
    %247 = vector.load %arg11[%c48_116, %c0_117] : memref<64x256xf32, #tpu.memory_space<vmem>>, vector<8x256xf32>
    %cst_118 = arith.constant dense<0.000000e+00> : vector<8x256xf32>
    %248 = tpu.matmul %244, %64, %cst_118 {dimension_numbers = #tpu.dot_dimension_numbers<[1], [0], [0], [1], [0, 0, 1, 1], [], []>} : vector<8x64xf32>, vector<64x256xf32>, vector<8x256xf32> -> vector<8x256xf32>
    %249 = arith.addf %247, %248 : vector<8x256xf32>
    %250 = vector.extract_strided_slice %249 {offsets = [0, 0], sizes = [8, 192], strides = [1, 1]} : vector<8x256xf32> to vector<8x192xf32>
    %251 = arith.negf %250 : vector<8x192xf32>
    %252 = math.exp %251 : vector<8x192xf32>
    %cst_119 = arith.constant 1.000000e+00 : f32
    %253 = vector.broadcast %cst_119 : f32 to vector<8x192xf32>
    %254 = arith.addf %253, %252 : vector<8x192xf32>
    %255 = arith.divf %253, %254 : vector<8x192xf32>
    %256 = vector.extract_strided_slice %255 {offsets = [0, 0], sizes = [8, 64], strides = [1, 1]} : vector<8x192xf32> to vector<8x64xf32>
    %257 = vector.extract_strided_slice %255 {offsets = [0, 64], sizes = [8, 64], strides = [1, 1]} : vector<8x192xf32> to vector<8x64xf32>
    %258 = vector.extract_strided_slice %255 {offsets = [0, 128], sizes = [8, 64], strides = [1, 1]} : vector<8x192xf32> to vector<8x64xf32>
    %259 = vector.extract_strided_slice %249 {offsets = [0, 192], sizes = [8, 64], strides = [1, 1]} : vector<8x256xf32> to vector<8x64xf32>
    %260 = math.tanh %259 : vector<8x64xf32>
    %261 = arith.mulf %257, %241 : vector<8x64xf32>
    %262 = arith.mulf %256, %260 : vector<8x64xf32>
    %263 = arith.addf %261, %262 : vector<8x64xf32>
    %264 = math.tanh %263 : vector<8x64xf32>
    %265 = arith.mulf %258, %264 : vector<8x64xf32>
    %c48_120 = arith.constant 48 : index
    %c0_121 = arith.constant 0 : index
    %266 = vector.load %arg13[%c48_120, %c0_121] : memref<64x64xf32, #tpu.memory_space<vmem>>, vector<8x64xf32>
    %cst_122 = arith.constant 1.000000e+00 : f32
    %267 = vector.broadcast %cst_122 : f32 to vector<8x64xf32>
    %268 = arith.subf %267, %266 : vector<8x64xf32>
    %269 = arith.mulf %266, %263 : vector<8x64xf32>
    %270 = arith.mulf %268, %241 : vector<8x64xf32>
    %271 = arith.addf %269, %270 : vector<8x64xf32>
    %272 = arith.mulf %266, %265 : vector<8x64xf32>
    %273 = arith.mulf %268, %244 : vector<8x64xf32>
    %274 = arith.addf %272, %273 : vector<8x64xf32>
    %275 = arith.mulf %266, %265 : vector<8x64xf32>
    %c48_123 = arith.constant 48 : index
    %c0_124 = arith.constant 0 : index
    %276 = vector.load %arg10[%c48_123, %c0_124] : memref<64x64xf32, #tpu.memory_space<vmem>>, vector<8x64xf32>
    tpu.vector_store %arg10[%c48_123, %c0_124], %275 {strides = array<i32>} : memref<64x64xf32, #tpu.memory_space<vmem>>, vector<8x64xf32>,
    %c56_125 = arith.constant 56 : index
    %c0_126 = arith.constant 0 : index
    %277 = vector.load %arg11[%c56_125, %c0_126] : memref<64x256xf32, #tpu.memory_space<vmem>>, vector<8x256xf32>
    %cst_127 = arith.constant dense<0.000000e+00> : vector<8x256xf32>
    %278 = tpu.matmul %274, %64, %cst_127 {dimension_numbers = #tpu.dot_dimension_numbers<[1], [0], [0], [1], [0, 0, 1, 1], [], []>} : vector<8x64xf32>, vector<64x256xf32>, vector<8x256xf32> -> vector<8x256xf32>
    %279 = arith.addf %277, %278 : vector<8x256xf32>
    %280 = vector.extract_strided_slice %279 {offsets = [0, 0], sizes = [8, 192], strides = [1, 1]} : vector<8x256xf32> to vector<8x192xf32>
    %281 = arith.negf %280 : vector<8x192xf32>
    %282 = math.exp %281 : vector<8x192xf32>
    %cst_128 = arith.constant 1.000000e+00 : f32
    %283 = vector.broadcast %cst_128 : f32 to vector<8x192xf32>
    %284 = arith.addf %283, %282 : vector<8x192xf32>
    %285 = arith.divf %283, %284 : vector<8x192xf32>
    %286 = vector.extract_strided_slice %285 {offsets = [0, 0], sizes = [8, 64], strides = [1, 1]} : vector<8x192xf32> to vector<8x64xf32>
    %287 = vector.extract_strided_slice %285 {offsets = [0, 64], sizes = [8, 64], strides = [1, 1]} : vector<8x192xf32> to vector<8x64xf32>
    %288 = vector.extract_strided_slice %285 {offsets = [0, 128], sizes = [8, 64], strides = [1, 1]} : vector<8x192xf32> to vector<8x64xf32>
    %289 = vector.extract_strided_slice %279 {offsets = [0, 192], sizes = [8, 64], strides = [1, 1]} : vector<8x256xf32> to vector<8x64xf32>
    %290 = math.tanh %289 : vector<8x64xf32>
    %291 = arith.mulf %287, %271 : vector<8x64xf32>
    %292 = arith.mulf %286, %290 : vector<8x64xf32>
    %293 = arith.addf %291, %292 : vector<8x64xf32>
    %294 = math.tanh %293 : vector<8x64xf32>
    %295 = arith.mulf %288, %294 : vector<8x64xf32>
    %c56_129 = arith.constant 56 : index
    %c0_130 = arith.constant 0 : index
    %296 = vector.load %arg13[%c56_129, %c0_130] : memref<64x64xf32, #tpu.memory_space<vmem>>, vector<8x64xf32>
    %297 = arith.mulf %296, %295 : vector<8x64xf32>
    %c56_131 = arith.constant 56 : index
    %c0_132 = arith.constant 0 : index
    %298 = vector.load %arg10[%c56_131, %c0_132] : memref<64x64xf32, #tpu.memory_space<vmem>>, vector<8x64xf32>
    tpu.vector_store %arg10[%c56_131, %c0_132], %297 {strides = array<i32>} : memref<64x64xf32, #tpu.memory_space<vmem>>, vector<8x64xf32>,
    %c0_133 = arith.constant 0 : index
    %c0_134 = arith.constant 0 : index
    %299 = vector.load %arg10[%c0_133, %c0_134] : memref<64x64xf32, #tpu.memory_space<vmem>>, vector<8x64xf32>
    %c56_135 = arith.constant 56 : index
    %c0_136 = arith.constant 0 : index
    %300 = vector.load %arg10[%c56_135, %c0_136] : memref<64x64xf32, #tpu.memory_space<vmem>>, vector<8x64xf32>
    %301 = arith.select %21, %299, %300 : vector<8x64xi1>, vector<8x64xf32>
    %c0_137 = arith.constant 0 : index
    %c0_138 = arith.constant 0 : index
    %302 = vector.load %arg9[%c0_137, %c0_138] : memref<64x64xf32, #tpu.memory_space<vmem>>, vector<8x64xf32>
    tpu.vector_store %arg9[%c0_137, %c0_138], %301 {strides = array<i32>} : memref<64x64xf32, #tpu.memory_space<vmem>>, vector<8x64xf32>,
    %c8_139 = arith.constant 8 : index
    %c0_140 = arith.constant 0 : index
    %303 = vector.load %arg10[%c8_139, %c0_140] : memref<64x64xf32, #tpu.memory_space<vmem>>, vector<8x64xf32>
    %c48_141 = arith.constant 48 : index
    %c0_142 = arith.constant 0 : index
    %304 = vector.load %arg10[%c48_141, %c0_142] : memref<64x64xf32, #tpu.memory_space<vmem>>, vector<8x64xf32>
    %305 = arith.select %21, %303, %304 : vector<8x64xi1>, vector<8x64xf32>
    %c8_143 = arith.constant 8 : index
    %c0_144 = arith.constant 0 : index
    %306 = vector.load %arg9[%c8_143, %c0_144] : memref<64x64xf32, #tpu.memory_space<vmem>>, vector<8x64xf32>
    tpu.vector_store %arg9[%c8_143, %c0_144], %305 {strides = array<i32>} : memref<64x64xf32, #tpu.memory_space<vmem>>, vector<8x64xf32>,
    %c16_145 = arith.constant 16 : index
    %c0_146 = arith.constant 0 : index
    %307 = vector.load %arg10[%c16_145, %c0_146] : memref<64x64xf32, #tpu.memory_space<vmem>>, vector<8x64xf32>
    %c40_147 = arith.constant 40 : index
    %c0_148 = arith.constant 0 : index
    %308 = vector.load %arg10[%c40_147, %c0_148] : memref<64x64xf32, #tpu.memory_space<vmem>>, vector<8x64xf32>
    %309 = arith.select %21, %307, %308 : vector<8x64xi1>, vector<8x64xf32>
    %c16_149 = arith.constant 16 : index
    %c0_150 = arith.constant 0 : index
    %310 = vector.load %arg9[%c16_149, %c0_150] : memref<64x64xf32, #tpu.memory_space<vmem>>, vector<8x64xf32>
    tpu.vector_store %arg9[%c16_149, %c0_150], %309 {strides = array<i32>} : memref<64x64xf32, #tpu.memory_space<vmem>>, vector<8x64xf32>,
    %c24_151 = arith.constant 24 : index
    %c0_152 = arith.constant 0 : index
    %311 = vector.load %arg10[%c24_151, %c0_152] : memref<64x64xf32, #tpu.memory_space<vmem>>, vector<8x64xf32>
    %c32_153 = arith.constant 32 : index
    %c0_154 = arith.constant 0 : index
    %312 = vector.load %arg10[%c32_153, %c0_154] : memref<64x64xf32, #tpu.memory_space<vmem>>, vector<8x64xf32>
    %313 = arith.select %21, %311, %312 : vector<8x64xi1>, vector<8x64xf32>
    %c24_155 = arith.constant 24 : index
    %c0_156 = arith.constant 0 : index
    %314 = vector.load %arg9[%c24_155, %c0_156] : memref<64x64xf32, #tpu.memory_space<vmem>>, vector<8x64xf32>
    tpu.vector_store %arg9[%c24_155, %c0_156], %313 {strides = array<i32>} : memref<64x64xf32, #tpu.memory_space<vmem>>, vector<8x64xf32>,
    %c32_157 = arith.constant 32 : index
    %c0_158 = arith.constant 0 : index
    %315 = vector.load %arg10[%c32_157, %c0_158] : memref<64x64xf32, #tpu.memory_space<vmem>>, vector<8x64xf32>
    %c24_159 = arith.constant 24 : index
    %c0_160 = arith.constant 0 : index
    %316 = vector.load %arg10[%c24_159, %c0_160] : memref<64x64xf32, #tpu.memory_space<vmem>>, vector<8x64xf32>
    %317 = arith.select %21, %315, %316 : vector<8x64xi1>, vector<8x64xf32>
    %c32_161 = arith.constant 32 : index
    %c0_162 = arith.constant 0 : index
    %318 = vector.load %arg9[%c32_161, %c0_162] : memref<64x64xf32, #tpu.memory_space<vmem>>, vector<8x64xf32>
    tpu.vector_store %arg9[%c32_161, %c0_162], %317 {strides = array<i32>} : memref<64x64xf32, #tpu.memory_space<vmem>>, vector<8x64xf32>,
    %c40_163 = arith.constant 40 : index
    %c0_164 = arith.constant 0 : index
    %319 = vector.load %arg10[%c40_163, %c0_164] : memref<64x64xf32, #tpu.memory_space<vmem>>, vector<8x64xf32>
    %c16_165 = arith.constant 16 : index
    %c0_166 = arith.constant 0 : index
    %320 = vector.load %arg10[%c16_165, %c0_166] : memref<64x64xf32, #tpu.memory_space<vmem>>, vector<8x64xf32>
    %321 = arith.select %21, %319, %320 : vector<8x64xi1>, vector<8x64xf32>
    %c40_167 = arith.constant 40 : index
    %c0_168 = arith.constant 0 : index
    %322 = vector.load %arg9[%c40_167, %c0_168] : memref<64x64xf32, #tpu.memory_space<vmem>>, vector<8x64xf32>
    tpu.vector_store %arg9[%c40_167, %c0_168], %321 {strides = array<i32>} : memref<64x64xf32, #tpu.memory_space<vmem>>, vector<8x64xf32>,
    %c48_169 = arith.constant 48 : index
    %c0_170 = arith.constant 0 : index
    %323 = vector.load %arg10[%c48_169, %c0_170] : memref<64x64xf32, #tpu.memory_space<vmem>>, vector<8x64xf32>
    %c8_171 = arith.constant 8 : index
    %c0_172 = arith.constant 0 : index
    %324 = vector.load %arg10[%c8_171, %c0_172] : memref<64x64xf32, #tpu.memory_space<vmem>>, vector<8x64xf32>
    %325 = arith.select %21, %323, %324 : vector<8x64xi1>, vector<8x64xf32>
    %c48_173 = arith.constant 48 : index
    %c0_174 = arith.constant 0 : index
    %326 = vector.load %arg9[%c48_173, %c0_174] : memref<64x64xf32, #tpu.memory_space<vmem>>, vector<8x64xf32>
    tpu.vector_store %arg9[%c48_173, %c0_174], %325 {strides = array<i32>} : memref<64x64xf32, #tpu.memory_space<vmem>>, vector<8x64xf32>,
    %c56_175 = arith.constant 56 : index
    %c0_176 = arith.constant 0 : index
    %327 = vector.load %arg10[%c56_175, %c0_176] : memref<64x64xf32, #tpu.memory_space<vmem>>, vector<8x64xf32>
    %c0_177 = arith.constant 0 : index
    %c0_178 = arith.constant 0 : index
    %328 = vector.load %arg10[%c0_177, %c0_178] : memref<64x64xf32, #tpu.memory_space<vmem>>, vector<8x64xf32>
    %329 = arith.select %21, %327, %328 : vector<8x64xi1>, vector<8x64xf32>
    %c56_179 = arith.constant 56 : index
    %c0_180 = arith.constant 0 : index
    %330 = vector.load %arg9[%c56_179, %c0_180] : memref<64x64xf32, #tpu.memory_space<vmem>>, vector<8x64xf32>
    tpu.vector_store %arg9[%c56_179, %c0_180], %329 {strides = array<i32>} : memref<64x64xf32, #tpu.memory_space<vmem>>, vector<8x64xf32>,
    %c0_181 = arith.constant 0 : index
    %c0_182 = arith.constant 0 : index
    %331 = vector.load %arg9[%c0_181, %c0_182] : memref<64x64xf32, #tpu.memory_space<vmem>>, vector<64x64xf32>
    %c0_183 = arith.constant 0 : index
    %c0_184 = arith.constant 0 : index
    %332 = vector.load %arg5[%c0_183, %c0_184] : memref<128x256xf32, #tpu.memory_space<vmem>>, vector<64x256xf32>
    %cst_185 = arith.constant dense<0.000000e+00> : vector<64x256xf32>
    %333 = tpu.matmul %331, %332, %cst_185 {dimension_numbers = #tpu.dot_dimension_numbers<[1], [0], [0], [1], [0, 0, 1, 1], [], []>} : vector<64x64xf32>, vector<64x256xf32>, vector<64x256xf32> -> vector<64x256xf32>
    %c0_186 = arith.constant 0 : index
    %c0_187 = arith.constant 0 : index
    %334 = vector.load %arg7[%c0_186, %c0_187] : memref<1x256xf32, #tpu.memory_space<vmem>>, vector<1x256xf32>
    %335 = vector.broadcast %334 : vector<1x256xf32> to vector<64x256xf32>
    %336 = arith.addf %333, %335 : vector<64x256xf32>
    %c0_188 = arith.constant 0 : index
    %c0_189 = arith.constant 0 : index
    %337 = vector.load %arg11[%c0_188, %c0_189] : memref<64x256xf32, #tpu.memory_space<vmem>>, vector<64x256xf32>
    tpu.vector_store %arg11[%c0_188, %c0_189], %336 {strides = array<i32>} : memref<64x256xf32, #tpu.memory_space<vmem>>, vector<64x256xf32>,
    %c64 = arith.constant 64 : index
    %c0_190 = arith.constant 0 : index
    %338 = vector.load %arg5[%c64, %c0_190] : memref<128x256xf32, #tpu.memory_space<vmem>>, vector<64x256xf32>
    %cst_191 = arith.constant dense<0.000000e+00> : vector<64x256xf32>
    %339 = tpu.matmul %331, %338, %cst_191 {dimension_numbers = #tpu.dot_dimension_numbers<[1], [0], [0], [1], [0, 0, 1, 1], [], []>} : vector<64x64xf32>, vector<64x256xf32>, vector<64x256xf32> -> vector<64x256xf32>
    %c0_192 = arith.constant 0 : index
    %c0_193 = arith.constant 0 : index
    %340 = vector.load %arg12[%c0_192, %c0_193] : memref<64x256xf32, #tpu.memory_space<vmem>>, vector<64x256xf32>
    tpu.vector_store %arg12[%c0_192, %c0_193], %339 {strides = array<i32>} : memref<64x256xf32, #tpu.memory_space<vmem>>, vector<64x256xf32>,
    %c0_194 = arith.constant 0 : index
    %c0_195 = arith.constant 0 : index
    %341 = vector.load %arg11[%c0_194, %c0_195] : memref<64x256xf32, #tpu.memory_space<vmem>>, vector<8x256xf32>
    %c56_196 = arith.constant 56 : index
    %c0_197 = arith.constant 0 : index
    %342 = vector.load %arg12[%c56_196, %c0_197] : memref<64x256xf32, #tpu.memory_space<vmem>>, vector<8x256xf32>
    %343 = arith.addf %341, %342 : vector<8x256xf32>
    %c0_198 = arith.constant 0 : index
    %c0_199 = arith.constant 0 : index
    %344 = vector.load %arg11[%c0_198, %c0_199] : memref<64x256xf32, #tpu.memory_space<vmem>>, vector<8x256xf32>
    tpu.vector_store %arg11[%c0_198, %c0_199], %343 {strides = array<i32>} : memref<64x256xf32, #tpu.memory_space<vmem>>, vector<8x256xf32>,
    %c8_200 = arith.constant 8 : index
    %c0_201 = arith.constant 0 : index
    %345 = vector.load %arg11[%c8_200, %c0_201] : memref<64x256xf32, #tpu.memory_space<vmem>>, vector<8x256xf32>
    %c48_202 = arith.constant 48 : index
    %c0_203 = arith.constant 0 : index
    %346 = vector.load %arg12[%c48_202, %c0_203] : memref<64x256xf32, #tpu.memory_space<vmem>>, vector<8x256xf32>
    %347 = arith.addf %345, %346 : vector<8x256xf32>
    %c8_204 = arith.constant 8 : index
    %c0_205 = arith.constant 0 : index
    %348 = vector.load %arg11[%c8_204, %c0_205] : memref<64x256xf32, #tpu.memory_space<vmem>>, vector<8x256xf32>
    tpu.vector_store %arg11[%c8_204, %c0_205], %347 {strides = array<i32>} : memref<64x256xf32, #tpu.memory_space<vmem>>, vector<8x256xf32>,
    %c16_206 = arith.constant 16 : index
    %c0_207 = arith.constant 0 : index
    %349 = vector.load %arg11[%c16_206, %c0_207] : memref<64x256xf32, #tpu.memory_space<vmem>>, vector<8x256xf32>
    %c40_208 = arith.constant 40 : index
    %c0_209 = arith.constant 0 : index
    %350 = vector.load %arg12[%c40_208, %c0_209] : memref<64x256xf32, #tpu.memory_space<vmem>>, vector<8x256xf32>
    %351 = arith.addf %349, %350 : vector<8x256xf32>
    %c16_210 = arith.constant 16 : index
    %c0_211 = arith.constant 0 : index
    %352 = vector.load %arg11[%c16_210, %c0_211] : memref<64x256xf32, #tpu.memory_space<vmem>>, vector<8x256xf32>
    tpu.vector_store %arg11[%c16_210, %c0_211], %351 {strides = array<i32>} : memref<64x256xf32, #tpu.memory_space<vmem>>, vector<8x256xf32>,
    %c24_212 = arith.constant 24 : index
    %c0_213 = arith.constant 0 : index
    %353 = vector.load %arg11[%c24_212, %c0_213] : memref<64x256xf32, #tpu.memory_space<vmem>>, vector<8x256xf32>
    %c32_214 = arith.constant 32 : index
    %c0_215 = arith.constant 0 : index
    %354 = vector.load %arg12[%c32_214, %c0_215] : memref<64x256xf32, #tpu.memory_space<vmem>>, vector<8x256xf32>
    %355 = arith.addf %353, %354 : vector<8x256xf32>
    %c24_216 = arith.constant 24 : index
    %c0_217 = arith.constant 0 : index
    %356 = vector.load %arg11[%c24_216, %c0_217] : memref<64x256xf32, #tpu.memory_space<vmem>>, vector<8x256xf32>
    tpu.vector_store %arg11[%c24_216, %c0_217], %355 {strides = array<i32>} : memref<64x256xf32, #tpu.memory_space<vmem>>, vector<8x256xf32>,
    %c32_218 = arith.constant 32 : index
    %c0_219 = arith.constant 0 : index
    %357 = vector.load %arg11[%c32_218, %c0_219] : memref<64x256xf32, #tpu.memory_space<vmem>>, vector<8x256xf32>
    %c24_220 = arith.constant 24 : index
    %c0_221 = arith.constant 0 : index
    %358 = vector.load %arg12[%c24_220, %c0_221] : memref<64x256xf32, #tpu.memory_space<vmem>>, vector<8x256xf32>
    %359 = arith.addf %357, %358 : vector<8x256xf32>
    %c32_222 = arith.constant 32 : index
    %c0_223 = arith.constant 0 : index
    %360 = vector.load %arg11[%c32_222, %c0_223] : memref<64x256xf32, #tpu.memory_space<vmem>>, vector<8x256xf32>
    tpu.vector_store %arg11[%c32_222, %c0_223], %359 {strides = array<i32>} : memref<64x256xf32, #tpu.memory_space<vmem>>, vector<8x256xf32>,
    %c40_224 = arith.constant 40 : index
    %c0_225 = arith.constant 0 : index
    %361 = vector.load %arg11[%c40_224, %c0_225] : memref<64x256xf32, #tpu.memory_space<vmem>>, vector<8x256xf32>
    %c16_226 = arith.constant 16 : index
    %c0_227 = arith.constant 0 : index
    %362 = vector.load %arg12[%c16_226, %c0_227] : memref<64x256xf32, #tpu.memory_space<vmem>>, vector<8x256xf32>
    %363 = arith.addf %361, %362 : vector<8x256xf32>
    %c40_228 = arith.constant 40 : index
    %c0_229 = arith.constant 0 : index
    %364 = vector.load %arg11[%c40_228, %c0_229] : memref<64x256xf32, #tpu.memory_space<vmem>>, vector<8x256xf32>
    tpu.vector_store %arg11[%c40_228, %c0_229], %363 {strides = array<i32>} : memref<64x256xf32, #tpu.memory_space<vmem>>, vector<8x256xf32>,
    %c48_230 = arith.constant 48 : index
    %c0_231 = arith.constant 0 : index
    %365 = vector.load %arg11[%c48_230, %c0_231] : memref<64x256xf32, #tpu.memory_space<vmem>>, vector<8x256xf32>
    %c8_232 = arith.constant 8 : index
    %c0_233 = arith.constant 0 : index
    %366 = vector.load %arg12[%c8_232, %c0_233] : memref<64x256xf32, #tpu.memory_space<vmem>>, vector<8x256xf32>
    %367 = arith.addf %365, %366 : vector<8x256xf32>
    %c48_234 = arith.constant 48 : index
    %c0_235 = arith.constant 0 : index
    %368 = vector.load %arg11[%c48_234, %c0_235] : memref<64x256xf32, #tpu.memory_space<vmem>>, vector<8x256xf32>
    tpu.vector_store %arg11[%c48_234, %c0_235], %367 {strides = array<i32>} : memref<64x256xf32, #tpu.memory_space<vmem>>, vector<8x256xf32>,
    %c56_236 = arith.constant 56 : index
    %c0_237 = arith.constant 0 : index
    %369 = vector.load %arg11[%c56_236, %c0_237] : memref<64x256xf32, #tpu.memory_space<vmem>>, vector<8x256xf32>
    %c0_238 = arith.constant 0 : index
    %c0_239 = arith.constant 0 : index
    %370 = vector.load %arg12[%c0_238, %c0_239] : memref<64x256xf32, #tpu.memory_space<vmem>>, vector<8x256xf32>
    %371 = arith.addf %369, %370 : vector<8x256xf32>
    %c56_240 = arith.constant 56 : index
    %c0_241 = arith.constant 0 : index
    %372 = vector.load %arg11[%c56_240, %c0_241] : memref<64x256xf32, #tpu.memory_space<vmem>>, vector<8x256xf32>
    tpu.vector_store %arg11[%c56_240, %c0_241], %371 {strides = array<i32>} : memref<64x256xf32, #tpu.memory_space<vmem>>, vector<8x256xf32>,
    %c0_242 = arith.constant 0 : index
    %c0_243 = arith.constant 0 : index
    %373 = vector.load %arg6[%c0_242, %c0_243] : memref<64x256xf32, #tpu.memory_space<vmem>>, vector<64x256xf32>
    %cst_244 = arith.constant 0.000000e+00 : f32
    %374 = vector.broadcast %cst_244 : f32 to vector<8x64xf32>
    %cst_245 = arith.constant 0.000000e+00 : f32
    %375 = vector.broadcast %cst_245 : f32 to vector<8x64xf32>
    %c0_246 = arith.constant 0 : index
    %c0_247 = arith.constant 0 : index
    %376 = vector.load %arg11[%c0_246, %c0_247] : memref<64x256xf32, #tpu.memory_space<vmem>>, vector<8x256xf32>
    %cst_248 = arith.constant dense<0.000000e+00> : vector<8x256xf32>
    %377 = tpu.matmul %374, %373, %cst_248 {dimension_numbers = #tpu.dot_dimension_numbers<[1], [0], [0], [1], [0, 0, 1, 1], [], []>} : vector<8x64xf32>, vector<64x256xf32>, vector<8x256xf32> -> vector<8x256xf32>
    %378 = arith.addf %376, %377 : vector<8x256xf32>
    %379 = vector.extract_strided_slice %378 {offsets = [0, 0], sizes = [8, 192], strides = [1, 1]} : vector<8x256xf32> to vector<8x192xf32>
    %380 = arith.negf %379 : vector<8x192xf32>
    %381 = math.exp %380 : vector<8x192xf32>
    %cst_249 = arith.constant 1.000000e+00 : f32
    %382 = vector.broadcast %cst_249 : f32 to vector<8x192xf32>
    %383 = arith.addf %382, %381 : vector<8x192xf32>
    %384 = arith.divf %382, %383 : vector<8x192xf32>
    %385 = vector.extract_strided_slice %384 {offsets = [0, 0], sizes = [8, 64], strides = [1, 1]} : vector<8x192xf32> to vector<8x64xf32>
    %386 = vector.extract_strided_slice %384 {offsets = [0, 64], sizes = [8, 64], strides = [1, 1]} : vector<8x192xf32> to vector<8x64xf32>
    %387 = vector.extract_strided_slice %384 {offsets = [0, 128], sizes = [8, 64], strides = [1, 1]} : vector<8x192xf32> to vector<8x64xf32>
    %388 = vector.extract_strided_slice %378 {offsets = [0, 192], sizes = [8, 64], strides = [1, 1]} : vector<8x256xf32> to vector<8x64xf32>
    %389 = math.tanh %388 : vector<8x64xf32>
    %390 = arith.mulf %386, %375 : vector<8x64xf32>
    %391 = arith.mulf %385, %389 : vector<8x64xf32>
    %392 = arith.addf %390, %391 : vector<8x64xf32>
    %393 = math.tanh %392 : vector<8x64xf32>
    %394 = arith.mulf %387, %393 : vector<8x64xf32>
    %c0_250 = arith.constant 0 : index
    %c0_251 = arith.constant 0 : index
    %395 = vector.load %arg13[%c0_250, %c0_251] : memref<64x64xf32, #tpu.memory_space<vmem>>, vector<8x64xf32>
    %cst_252 = arith.constant 1.000000e+00 : f32
    %396 = vector.broadcast %cst_252 : f32 to vector<8x64xf32>
    %397 = arith.subf %396, %395 : vector<8x64xf32>
    %398 = arith.mulf %395, %392 : vector<8x64xf32>
    %399 = arith.mulf %397, %375 : vector<8x64xf32>
    %400 = arith.addf %398, %399 : vector<8x64xf32>
    %401 = arith.mulf %395, %394 : vector<8x64xf32>
    %402 = arith.mulf %397, %374 : vector<8x64xf32>
    %403 = arith.addf %401, %402 : vector<8x64xf32>
    %404 = arith.mulf %395, %394 : vector<8x64xf32>
    %c0_253 = arith.constant 0 : index
    %c0_254 = arith.constant 0 : index
    %405 = vector.load %arg10[%c0_253, %c0_254] : memref<64x64xf32, #tpu.memory_space<vmem>>, vector<8x64xf32>
    tpu.vector_store %arg10[%c0_253, %c0_254], %404 {strides = array<i32>} : memref<64x64xf32, #tpu.memory_space<vmem>>, vector<8x64xf32>,
    %c8_255 = arith.constant 8 : index
    %c0_256 = arith.constant 0 : index
    %406 = vector.load %arg11[%c8_255, %c0_256] : memref<64x256xf32, #tpu.memory_space<vmem>>, vector<8x256xf32>
    %cst_257 = arith.constant dense<0.000000e+00> : vector<8x256xf32>
    %407 = tpu.matmul %403, %373, %cst_257 {dimension_numbers = #tpu.dot_dimension_numbers<[1], [0], [0], [1], [0, 0, 1, 1], [], []>} : vector<8x64xf32>, vector<64x256xf32>, vector<8x256xf32> -> vector<8x256xf32>
    %408 = arith.addf %406, %407 : vector<8x256xf32>
    %409 = vector.extract_strided_slice %408 {offsets = [0, 0], sizes = [8, 192], strides = [1, 1]} : vector<8x256xf32> to vector<8x192xf32>
    %410 = arith.negf %409 : vector<8x192xf32>
    %411 = math.exp %410 : vector<8x192xf32>
    %cst_258 = arith.constant 1.000000e+00 : f32
    %412 = vector.broadcast %cst_258 : f32 to vector<8x192xf32>
    %413 = arith.addf %412, %411 : vector<8x192xf32>
    %414 = arith.divf %412, %413 : vector<8x192xf32>
    %415 = vector.extract_strided_slice %414 {offsets = [0, 0], sizes = [8, 64], strides = [1, 1]} : vector<8x192xf32> to vector<8x64xf32>
    %416 = vector.extract_strided_slice %414 {offsets = [0, 64], sizes = [8, 64], strides = [1, 1]} : vector<8x192xf32> to vector<8x64xf32>
    %417 = vector.extract_strided_slice %414 {offsets = [0, 128], sizes = [8, 64], strides = [1, 1]} : vector<8x192xf32> to vector<8x64xf32>
    %418 = vector.extract_strided_slice %408 {offsets = [0, 192], sizes = [8, 64], strides = [1, 1]} : vector<8x256xf32> to vector<8x64xf32>
    %419 = math.tanh %418 : vector<8x64xf32>
    %420 = arith.mulf %416, %400 : vector<8x64xf32>
    %421 = arith.mulf %415, %419 : vector<8x64xf32>
    %422 = arith.addf %420, %421 : vector<8x64xf32>
    %423 = math.tanh %422 : vector<8x64xf32>
    %424 = arith.mulf %417, %423 : vector<8x64xf32>
    %c8_259 = arith.constant 8 : index
    %c0_260 = arith.constant 0 : index
    %425 = vector.load %arg13[%c8_259, %c0_260] : memref<64x64xf32, #tpu.memory_space<vmem>>, vector<8x64xf32>
    %cst_261 = arith.constant 1.000000e+00 : f32
    %426 = vector.broadcast %cst_261 : f32 to vector<8x64xf32>
    %427 = arith.subf %426, %425 : vector<8x64xf32>
    %428 = arith.mulf %425, %422 : vector<8x64xf32>
    %429 = arith.mulf %427, %400 : vector<8x64xf32>
    %430 = arith.addf %428, %429 : vector<8x64xf32>
    %431 = arith.mulf %425, %424 : vector<8x64xf32>
    %432 = arith.mulf %427, %403 : vector<8x64xf32>
    %433 = arith.addf %431, %432 : vector<8x64xf32>
    %434 = arith.mulf %425, %424 : vector<8x64xf32>
    %c8_262 = arith.constant 8 : index
    %c0_263 = arith.constant 0 : index
    %435 = vector.load %arg10[%c8_262, %c0_263] : memref<64x64xf32, #tpu.memory_space<vmem>>, vector<8x64xf32>
    tpu.vector_store %arg10[%c8_262, %c0_263], %434 {strides = array<i32>} : memref<64x64xf32, #tpu.memory_space<vmem>>, vector<8x64xf32>,
    %c16_264 = arith.constant 16 : index
    %c0_265 = arith.constant 0 : index
    %436 = vector.load %arg11[%c16_264, %c0_265] : memref<64x256xf32, #tpu.memory_space<vmem>>, vector<8x256xf32>
    %cst_266 = arith.constant dense<0.000000e+00> : vector<8x256xf32>
    %437 = tpu.matmul %433, %373, %cst_266 {dimension_numbers = #tpu.dot_dimension_numbers<[1], [0], [0], [1], [0, 0, 1, 1], [], []>} : vector<8x64xf32>, vector<64x256xf32>, vector<8x256xf32> -> vector<8x256xf32>
    %438 = arith.addf %436, %437 : vector<8x256xf32>
    %439 = vector.extract_strided_slice %438 {offsets = [0, 0], sizes = [8, 192], strides = [1, 1]} : vector<8x256xf32> to vector<8x192xf32>
    %440 = arith.negf %439 : vector<8x192xf32>
    %441 = math.exp %440 : vector<8x192xf32>
    %cst_267 = arith.constant 1.000000e+00 : f32
    %442 = vector.broadcast %cst_267 : f32 to vector<8x192xf32>
    %443 = arith.addf %442, %441 : vector<8x192xf32>
    %444 = arith.divf %442, %443 : vector<8x192xf32>
    %445 = vector.extract_strided_slice %444 {offsets = [0, 0], sizes = [8, 64], strides = [1, 1]} : vector<8x192xf32> to vector<8x64xf32>
    %446 = vector.extract_strided_slice %444 {offsets = [0, 64], sizes = [8, 64], strides = [1, 1]} : vector<8x192xf32> to vector<8x64xf32>
    %447 = vector.extract_strided_slice %444 {offsets = [0, 128], sizes = [8, 64], strides = [1, 1]} : vector<8x192xf32> to vector<8x64xf32>
    %448 = vector.extract_strided_slice %438 {offsets = [0, 192], sizes = [8, 64], strides = [1, 1]} : vector<8x256xf32> to vector<8x64xf32>
    %449 = math.tanh %448 : vector<8x64xf32>
    %450 = arith.mulf %446, %430 : vector<8x64xf32>
    %451 = arith.mulf %445, %449 : vector<8x64xf32>
    %452 = arith.addf %450, %451 : vector<8x64xf32>
    %453 = math.tanh %452 : vector<8x64xf32>
    %454 = arith.mulf %447, %453 : vector<8x64xf32>
    %c16_268 = arith.constant 16 : index
    %c0_269 = arith.constant 0 : index
    %455 = vector.load %arg13[%c16_268, %c0_269] : memref<64x64xf32, #tpu.memory_space<vmem>>, vector<8x64xf32>
    %cst_270 = arith.constant 1.000000e+00 : f32
    %456 = vector.broadcast %cst_270 : f32 to vector<8x64xf32>
    %457 = arith.subf %456, %455 : vector<8x64xf32>
    %458 = arith.mulf %455, %452 : vector<8x64xf32>
    %459 = arith.mulf %457, %430 : vector<8x64xf32>
    %460 = arith.addf %458, %459 : vector<8x64xf32>
    %461 = arith.mulf %455, %454 : vector<8x64xf32>
    %462 = arith.mulf %457, %433 : vector<8x64xf32>
    %463 = arith.addf %461, %462 : vector<8x64xf32>
    %464 = arith.mulf %455, %454 : vector<8x64xf32>
    %c16_271 = arith.constant 16 : index
    %c0_272 = arith.constant 0 : index
    %465 = vector.load %arg10[%c16_271, %c0_272] : memref<64x64xf32, #tpu.memory_space<vmem>>, vector<8x64xf32>
    tpu.vector_store %arg10[%c16_271, %c0_272], %464 {strides = array<i32>} : memref<64x64xf32, #tpu.memory_space<vmem>>, vector<8x64xf32>,
    %c24_273 = arith.constant 24 : index
    %c0_274 = arith.constant 0 : index
    %466 = vector.load %arg11[%c24_273, %c0_274] : memref<64x256xf32, #tpu.memory_space<vmem>>, vector<8x256xf32>
    %cst_275 = arith.constant dense<0.000000e+00> : vector<8x256xf32>
    %467 = tpu.matmul %463, %373, %cst_275 {dimension_numbers = #tpu.dot_dimension_numbers<[1], [0], [0], [1], [0, 0, 1, 1], [], []>} : vector<8x64xf32>, vector<64x256xf32>, vector<8x256xf32> -> vector<8x256xf32>
    %468 = arith.addf %466, %467 : vector<8x256xf32>
    %469 = vector.extract_strided_slice %468 {offsets = [0, 0], sizes = [8, 192], strides = [1, 1]} : vector<8x256xf32> to vector<8x192xf32>
    %470 = arith.negf %469 : vector<8x192xf32>
    %471 = math.exp %470 : vector<8x192xf32>
    %cst_276 = arith.constant 1.000000e+00 : f32
    %472 = vector.broadcast %cst_276 : f32 to vector<8x192xf32>
    %473 = arith.addf %472, %471 : vector<8x192xf32>
    %474 = arith.divf %472, %473 : vector<8x192xf32>
    %475 = vector.extract_strided_slice %474 {offsets = [0, 0], sizes = [8, 64], strides = [1, 1]} : vector<8x192xf32> to vector<8x64xf32>
    %476 = vector.extract_strided_slice %474 {offsets = [0, 64], sizes = [8, 64], strides = [1, 1]} : vector<8x192xf32> to vector<8x64xf32>
    %477 = vector.extract_strided_slice %474 {offsets = [0, 128], sizes = [8, 64], strides = [1, 1]} : vector<8x192xf32> to vector<8x64xf32>
    %478 = vector.extract_strided_slice %468 {offsets = [0, 192], sizes = [8, 64], strides = [1, 1]} : vector<8x256xf32> to vector<8x64xf32>
    %479 = math.tanh %478 : vector<8x64xf32>
    %480 = arith.mulf %476, %460 : vector<8x64xf32>
    %481 = arith.mulf %475, %479 : vector<8x64xf32>
    %482 = arith.addf %480, %481 : vector<8x64xf32>
    %483 = math.tanh %482 : vector<8x64xf32>
    %484 = arith.mulf %477, %483 : vector<8x64xf32>
    %c24_277 = arith.constant 24 : index
    %c0_278 = arith.constant 0 : index
    %485 = vector.load %arg13[%c24_277, %c0_278] : memref<64x64xf32, #tpu.memory_space<vmem>>, vector<8x64xf32>
    %cst_279 = arith.constant 1.000000e+00 : f32
    %486 = vector.broadcast %cst_279 : f32 to vector<8x64xf32>
    %487 = arith.subf %486, %485 : vector<8x64xf32>
    %488 = arith.mulf %485, %482 : vector<8x64xf32>
    %489 = arith.mulf %487, %460 : vector<8x64xf32>
    %490 = arith.addf %488, %489 : vector<8x64xf32>
    %491 = arith.mulf %485, %484 : vector<8x64xf32>
    %492 = arith.mulf %487, %463 : vector<8x64xf32>
    %493 = arith.addf %491, %492 : vector<8x64xf32>
    %494 = arith.mulf %485, %484 : vector<8x64xf32>
    %c24_280 = arith.constant 24 : index
    %c0_281 = arith.constant 0 : index
    %495 = vector.load %arg10[%c24_280, %c0_281] : memref<64x64xf32, #tpu.memory_space<vmem>>, vector<8x64xf32>
    tpu.vector_store %arg10[%c24_280, %c0_281], %494 {strides = array<i32>} : memref<64x64xf32, #tpu.memory_space<vmem>>, vector<8x64xf32>,
    %c32_282 = arith.constant 32 : index
    %c0_283 = arith.constant 0 : index
    %496 = vector.load %arg11[%c32_282, %c0_283] : memref<64x256xf32, #tpu.memory_space<vmem>>, vector<8x256xf32>
    %cst_284 = arith.constant dense<0.000000e+00> : vector<8x256xf32>
    %497 = tpu.matmul %493, %373, %cst_284 {dimension_numbers = #tpu.dot_dimension_numbers<[1], [0], [0], [1], [0, 0, 1, 1], [], []>} : vector<8x64xf32>, vector<64x256xf32>, vector<8x256xf32> -> vector<8x256xf32>
    %498 = arith.addf %496, %497 : vector<8x256xf32>
    %499 = vector.extract_strided_slice %498 {offsets = [0, 0], sizes = [8, 192], strides = [1, 1]} : vector<8x256xf32> to vector<8x192xf32>
    %500 = arith.negf %499 : vector<8x192xf32>
    %501 = math.exp %500 : vector<8x192xf32>
    %cst_285 = arith.constant 1.000000e+00 : f32
    %502 = vector.broadcast %cst_285 : f32 to vector<8x192xf32>
    %503 = arith.addf %502, %501 : vector<8x192xf32>
    %504 = arith.divf %502, %503 : vector<8x192xf32>
    %505 = vector.extract_strided_slice %504 {offsets = [0, 0], sizes = [8, 64], strides = [1, 1]} : vector<8x192xf32> to vector<8x64xf32>
    %506 = vector.extract_strided_slice %504 {offsets = [0, 64], sizes = [8, 64], strides = [1, 1]} : vector<8x192xf32> to vector<8x64xf32>
    %507 = vector.extract_strided_slice %504 {offsets = [0, 128], sizes = [8, 64], strides = [1, 1]} : vector<8x192xf32> to vector<8x64xf32>
    %508 = vector.extract_strided_slice %498 {offsets = [0, 192], sizes = [8, 64], strides = [1, 1]} : vector<8x256xf32> to vector<8x64xf32>
    %509 = math.tanh %508 : vector<8x64xf32>
    %510 = arith.mulf %506, %490 : vector<8x64xf32>
    %511 = arith.mulf %505, %509 : vector<8x64xf32>
    %512 = arith.addf %510, %511 : vector<8x64xf32>
    %513 = math.tanh %512 : vector<8x64xf32>
    %514 = arith.mulf %507, %513 : vector<8x64xf32>
    %c32_286 = arith.constant 32 : index
    %c0_287 = arith.constant 0 : index
    %515 = vector.load %arg13[%c32_286, %c0_287] : memref<64x64xf32, #tpu.memory_space<vmem>>, vector<8x64xf32>
    %cst_288 = arith.constant 1.000000e+00 : f32
    %516 = vector.broadcast %cst_288 : f32 to vector<8x64xf32>
    %517 = arith.subf %516, %515 : vector<8x64xf32>
    %518 = arith.mulf %515, %512 : vector<8x64xf32>
    %519 = arith.mulf %517, %490 : vector<8x64xf32>
    %520 = arith.addf %518, %519 : vector<8x64xf32>
    %521 = arith.mulf %515, %514 : vector<8x64xf32>
    %522 = arith.mulf %517, %493 : vector<8x64xf32>
    %523 = arith.addf %521, %522 : vector<8x64xf32>
    %524 = arith.mulf %515, %514 : vector<8x64xf32>
    %c32_289 = arith.constant 32 : index
    %c0_290 = arith.constant 0 : index
    %525 = vector.load %arg10[%c32_289, %c0_290] : memref<64x64xf32, #tpu.memory_space<vmem>>, vector<8x64xf32>
    tpu.vector_store %arg10[%c32_289, %c0_290], %524 {strides = array<i32>} : memref<64x64xf32, #tpu.memory_space<vmem>>, vector<8x64xf32>,
    %c40_291 = arith.constant 40 : index
    %c0_292 = arith.constant 0 : index
    %526 = vector.load %arg11[%c40_291, %c0_292] : memref<64x256xf32, #tpu.memory_space<vmem>>, vector<8x256xf32>
    %cst_293 = arith.constant dense<0.000000e+00> : vector<8x256xf32>
    %527 = tpu.matmul %523, %373, %cst_293 {dimension_numbers = #tpu.dot_dimension_numbers<[1], [0], [0], [1], [0, 0, 1, 1], [], []>} : vector<8x64xf32>, vector<64x256xf32>, vector<8x256xf32> -> vector<8x256xf32>
    %528 = arith.addf %526, %527 : vector<8x256xf32>
    %529 = vector.extract_strided_slice %528 {offsets = [0, 0], sizes = [8, 192], strides = [1, 1]} : vector<8x256xf32> to vector<8x192xf32>
    %530 = arith.negf %529 : vector<8x192xf32>
    %531 = math.exp %530 : vector<8x192xf32>
    %cst_294 = arith.constant 1.000000e+00 : f32
    %532 = vector.broadcast %cst_294 : f32 to vector<8x192xf32>
    %533 = arith.addf %532, %531 : vector<8x192xf32>
    %534 = arith.divf %532, %533 : vector<8x192xf32>
    %535 = vector.extract_strided_slice %534 {offsets = [0, 0], sizes = [8, 64], strides = [1, 1]} : vector<8x192xf32> to vector<8x64xf32>
    %536 = vector.extract_strided_slice %534 {offsets = [0, 64], sizes = [8, 64], strides = [1, 1]} : vector<8x192xf32> to vector<8x64xf32>
    %537 = vector.extract_strided_slice %534 {offsets = [0, 128], sizes = [8, 64], strides = [1, 1]} : vector<8x192xf32> to vector<8x64xf32>
    %538 = vector.extract_strided_slice %528 {offsets = [0, 192], sizes = [8, 64], strides = [1, 1]} : vector<8x256xf32> to vector<8x64xf32>
    %539 = math.tanh %538 : vector<8x64xf32>
    %540 = arith.mulf %536, %520 : vector<8x64xf32>
    %541 = arith.mulf %535, %539 : vector<8x64xf32>
    %542 = arith.addf %540, %541 : vector<8x64xf32>
    %543 = math.tanh %542 : vector<8x64xf32>
    %544 = arith.mulf %537, %543 : vector<8x64xf32>
    %c40_295 = arith.constant 40 : index
    %c0_296 = arith.constant 0 : index
    %545 = vector.load %arg13[%c40_295, %c0_296] : memref<64x64xf32, #tpu.memory_space<vmem>>, vector<8x64xf32>
    %cst_297 = arith.constant 1.000000e+00 : f32
    %546 = vector.broadcast %cst_297 : f32 to vector<8x64xf32>
    %547 = arith.subf %546, %545 : vector<8x64xf32>
    %548 = arith.mulf %545, %542 : vector<8x64xf32>
    %549 = arith.mulf %547, %520 : vector<8x64xf32>
    %550 = arith.addf %548, %549 : vector<8x64xf32>
    %551 = arith.mulf %545, %544 : vector<8x64xf32>
    %552 = arith.mulf %547, %523 : vector<8x64xf32>
    %553 = arith.addf %551, %552 : vector<8x64xf32>
    %554 = arith.mulf %545, %544 : vector<8x64xf32>
    %c40_298 = arith.constant 40 : index
    %c0_299 = arith.constant 0 : index
    %555 = vector.load %arg10[%c40_298, %c0_299] : memref<64x64xf32, #tpu.memory_space<vmem>>, vector<8x64xf32>
    tpu.vector_store %arg10[%c40_298, %c0_299], %554 {strides = array<i32>} : memref<64x64xf32, #tpu.memory_space<vmem>>, vector<8x64xf32>,
    %c48_300 = arith.constant 48 : index
    %c0_301 = arith.constant 0 : index
    %556 = vector.load %arg11[%c48_300, %c0_301] : memref<64x256xf32, #tpu.memory_space<vmem>>, vector<8x256xf32>
    %cst_302 = arith.constant dense<0.000000e+00> : vector<8x256xf32>
    %557 = tpu.matmul %553, %373, %cst_302 {dimension_numbers = #tpu.dot_dimension_numbers<[1], [0], [0], [1], [0, 0, 1, 1], [], []>} : vector<8x64xf32>, vector<64x256xf32>, vector<8x256xf32> -> vector<8x256xf32>
    %558 = arith.addf %556, %557 : vector<8x256xf32>
    %559 = vector.extract_strided_slice %558 {offsets = [0, 0], sizes = [8, 192], strides = [1, 1]} : vector<8x256xf32> to vector<8x192xf32>
    %560 = arith.negf %559 : vector<8x192xf32>
    %561 = math.exp %560 : vector<8x192xf32>
    %cst_303 = arith.constant 1.000000e+00 : f32
    %562 = vector.broadcast %cst_303 : f32 to vector<8x192xf32>
    %563 = arith.addf %562, %561 : vector<8x192xf32>
    %564 = arith.divf %562, %563 : vector<8x192xf32>
    %565 = vector.extract_strided_slice %564 {offsets = [0, 0], sizes = [8, 64], strides = [1, 1]} : vector<8x192xf32> to vector<8x64xf32>
    %566 = vector.extract_strided_slice %564 {offsets = [0, 64], sizes = [8, 64], strides = [1, 1]} : vector<8x192xf32> to vector<8x64xf32>
    %567 = vector.extract_strided_slice %564 {offsets = [0, 128], sizes = [8, 64], strides = [1, 1]} : vector<8x192xf32> to vector<8x64xf32>
    %568 = vector.extract_strided_slice %558 {offsets = [0, 192], sizes = [8, 64], strides = [1, 1]} : vector<8x256xf32> to vector<8x64xf32>
    %569 = math.tanh %568 : vector<8x64xf32>
    %570 = arith.mulf %566, %550 : vector<8x64xf32>
    %571 = arith.mulf %565, %569 : vector<8x64xf32>
    %572 = arith.addf %570, %571 : vector<8x64xf32>
    %573 = math.tanh %572 : vector<8x64xf32>
    %574 = arith.mulf %567, %573 : vector<8x64xf32>
    %c48_304 = arith.constant 48 : index
    %c0_305 = arith.constant 0 : index
    %575 = vector.load %arg13[%c48_304, %c0_305] : memref<64x64xf32, #tpu.memory_space<vmem>>, vector<8x64xf32>
    %cst_306 = arith.constant 1.000000e+00 : f32
    %576 = vector.broadcast %cst_306 : f32 to vector<8x64xf32>
    %577 = arith.subf %576, %575 : vector<8x64xf32>
    %578 = arith.mulf %575, %572 : vector<8x64xf32>
    %579 = arith.mulf %577, %550 : vector<8x64xf32>
    %580 = arith.addf %578, %579 : vector<8x64xf32>
    %581 = arith.mulf %575, %574 : vector<8x64xf32>
    %582 = arith.mulf %577, %553 : vector<8x64xf32>
    %583 = arith.addf %581, %582 : vector<8x64xf32>
    %584 = arith.mulf %575, %574 : vector<8x64xf32>
    %c48_307 = arith.constant 48 : index
    %c0_308 = arith.constant 0 : index
    %585 = vector.load %arg10[%c48_307, %c0_308] : memref<64x64xf32, #tpu.memory_space<vmem>>, vector<8x64xf32>
    tpu.vector_store %arg10[%c48_307, %c0_308], %584 {strides = array<i32>} : memref<64x64xf32, #tpu.memory_space<vmem>>, vector<8x64xf32>,
    %c56_309 = arith.constant 56 : index
    %c0_310 = arith.constant 0 : index
    %586 = vector.load %arg11[%c56_309, %c0_310] : memref<64x256xf32, #tpu.memory_space<vmem>>, vector<8x256xf32>
    %cst_311 = arith.constant dense<0.000000e+00> : vector<8x256xf32>
    %587 = tpu.matmul %583, %373, %cst_311 {dimension_numbers = #tpu.dot_dimension_numbers<[1], [0], [0], [1], [0, 0, 1, 1], [], []>} : vector<8x64xf32>, vector<64x256xf32>, vector<8x256xf32> -> vector<8x256xf32>
    %588 = arith.addf %586, %587 : vector<8x256xf32>
    %589 = vector.extract_strided_slice %588 {offsets = [0, 0], sizes = [8, 192], strides = [1, 1]} : vector<8x256xf32> to vector<8x192xf32>
    %590 = arith.negf %589 : vector<8x192xf32>
    %591 = math.exp %590 : vector<8x192xf32>
    %cst_312 = arith.constant 1.000000e+00 : f32
    %592 = vector.broadcast %cst_312 : f32 to vector<8x192xf32>
    %593 = arith.addf %592, %591 : vector<8x192xf32>
    %594 = arith.divf %592, %593 : vector<8x192xf32>
    %595 = vector.extract_strided_slice %594 {offsets = [0, 0], sizes = [8, 64], strides = [1, 1]} : vector<8x192xf32> to vector<8x64xf32>
    %596 = vector.extract_strided_slice %594 {offsets = [0, 64], sizes = [8, 64], strides = [1, 1]} : vector<8x192xf32> to vector<8x64xf32>
    %597 = vector.extract_strided_slice %594 {offsets = [0, 128], sizes = [8, 64], strides = [1, 1]} : vector<8x192xf32> to vector<8x64xf32>
    %598 = vector.extract_strided_slice %588 {offsets = [0, 192], sizes = [8, 64], strides = [1, 1]} : vector<8x256xf32> to vector<8x64xf32>
    %599 = math.tanh %598 : vector<8x64xf32>
    %600 = arith.mulf %596, %580 : vector<8x64xf32>
    %601 = arith.mulf %595, %599 : vector<8x64xf32>
    %602 = arith.addf %600, %601 : vector<8x64xf32>
    %603 = math.tanh %602 : vector<8x64xf32>
    %604 = arith.mulf %597, %603 : vector<8x64xf32>
    %c56_313 = arith.constant 56 : index
    %c0_314 = arith.constant 0 : index
    %605 = vector.load %arg13[%c56_313, %c0_314] : memref<64x64xf32, #tpu.memory_space<vmem>>, vector<8x64xf32>
    %606 = arith.mulf %605, %604 : vector<8x64xf32>
    %c56_315 = arith.constant 56 : index
    %c0_316 = arith.constant 0 : index
    %607 = vector.load %arg10[%c56_315, %c0_316] : memref<64x64xf32, #tpu.memory_space<vmem>>, vector<8x64xf32>
    tpu.vector_store %arg10[%c56_315, %c0_316], %606 {strides = array<i32>} : memref<64x64xf32, #tpu.memory_space<vmem>>, vector<8x64xf32>,
    %c0_317 = arith.constant 0 : index
    %c0_318 = arith.constant 0 : index
    %608 = vector.load %arg10[%c0_317, %c0_318] : memref<64x64xf32, #tpu.memory_space<vmem>>, vector<8x64xf32>
    %c56_319 = arith.constant 56 : index
    %c0_320 = arith.constant 0 : index
    %609 = vector.load %arg10[%c56_319, %c0_320] : memref<64x64xf32, #tpu.memory_space<vmem>>, vector<8x64xf32>
    %610 = arith.select %21, %608, %609 : vector<8x64xi1>, vector<8x64xf32>
    %c0_321 = arith.constant 0 : index
    %c0_322 = arith.constant 0 : index
    %611 = vector.load %arg8[%c0_321, %c0_322] : memref<64x64xf32, #tpu.memory_space<vmem>>, vector<8x64xf32>
    tpu.vector_store %arg8[%c0_321, %c0_322], %610 {strides = array<i32>} : memref<64x64xf32, #tpu.memory_space<vmem>>, vector<8x64xf32>,
    %c8_323 = arith.constant 8 : index
    %c0_324 = arith.constant 0 : index
    %612 = vector.load %arg10[%c8_323, %c0_324] : memref<64x64xf32, #tpu.memory_space<vmem>>, vector<8x64xf32>
    %c48_325 = arith.constant 48 : index
    %c0_326 = arith.constant 0 : index
    %613 = vector.load %arg10[%c48_325, %c0_326] : memref<64x64xf32, #tpu.memory_space<vmem>>, vector<8x64xf32>
    %614 = arith.select %21, %612, %613 : vector<8x64xi1>, vector<8x64xf32>
    %c8_327 = arith.constant 8 : index
    %c0_328 = arith.constant 0 : index
    %615 = vector.load %arg8[%c8_327, %c0_328] : memref<64x64xf32, #tpu.memory_space<vmem>>, vector<8x64xf32>
    tpu.vector_store %arg8[%c8_327, %c0_328], %614 {strides = array<i32>} : memref<64x64xf32, #tpu.memory_space<vmem>>, vector<8x64xf32>,
    %c16_329 = arith.constant 16 : index
    %c0_330 = arith.constant 0 : index
    %616 = vector.load %arg10[%c16_329, %c0_330] : memref<64x64xf32, #tpu.memory_space<vmem>>, vector<8x64xf32>
    %c40_331 = arith.constant 40 : index
    %c0_332 = arith.constant 0 : index
    %617 = vector.load %arg10[%c40_331, %c0_332] : memref<64x64xf32, #tpu.memory_space<vmem>>, vector<8x64xf32>
    %618 = arith.select %21, %616, %617 : vector<8x64xi1>, vector<8x64xf32>
    %c16_333 = arith.constant 16 : index
    %c0_334 = arith.constant 0 : index
    %619 = vector.load %arg8[%c16_333, %c0_334] : memref<64x64xf32, #tpu.memory_space<vmem>>, vector<8x64xf32>
    tpu.vector_store %arg8[%c16_333, %c0_334], %618 {strides = array<i32>} : memref<64x64xf32, #tpu.memory_space<vmem>>, vector<8x64xf32>,
    %c24_335 = arith.constant 24 : index
    %c0_336 = arith.constant 0 : index
    %620 = vector.load %arg10[%c24_335, %c0_336] : memref<64x64xf32, #tpu.memory_space<vmem>>, vector<8x64xf32>
    %c32_337 = arith.constant 32 : index
    %c0_338 = arith.constant 0 : index
    %621 = vector.load %arg10[%c32_337, %c0_338] : memref<64x64xf32, #tpu.memory_space<vmem>>, vector<8x64xf32>
    %622 = arith.select %21, %620, %621 : vector<8x64xi1>, vector<8x64xf32>
    %c24_339 = arith.constant 24 : index
    %c0_340 = arith.constant 0 : index
    %623 = vector.load %arg8[%c24_339, %c0_340] : memref<64x64xf32, #tpu.memory_space<vmem>>, vector<8x64xf32>
    tpu.vector_store %arg8[%c24_339, %c0_340], %622 {strides = array<i32>} : memref<64x64xf32, #tpu.memory_space<vmem>>, vector<8x64xf32>,
    %c32_341 = arith.constant 32 : index
    %c0_342 = arith.constant 0 : index
    %624 = vector.load %arg10[%c32_341, %c0_342] : memref<64x64xf32, #tpu.memory_space<vmem>>, vector<8x64xf32>
    %c24_343 = arith.constant 24 : index
    %c0_344 = arith.constant 0 : index
    %625 = vector.load %arg10[%c24_343, %c0_344] : memref<64x64xf32, #tpu.memory_space<vmem>>, vector<8x64xf32>
    %626 = arith.select %21, %624, %625 : vector<8x64xi1>, vector<8x64xf32>
    %c32_345 = arith.constant 32 : index
    %c0_346 = arith.constant 0 : index
    %627 = vector.load %arg8[%c32_345, %c0_346] : memref<64x64xf32, #tpu.memory_space<vmem>>, vector<8x64xf32>
    tpu.vector_store %arg8[%c32_345, %c0_346], %626 {strides = array<i32>} : memref<64x64xf32, #tpu.memory_space<vmem>>, vector<8x64xf32>,
    %c40_347 = arith.constant 40 : index
    %c0_348 = arith.constant 0 : index
    %628 = vector.load %arg10[%c40_347, %c0_348] : memref<64x64xf32, #tpu.memory_space<vmem>>, vector<8x64xf32>
    %c16_349 = arith.constant 16 : index
    %c0_350 = arith.constant 0 : index
    %629 = vector.load %arg10[%c16_349, %c0_350] : memref<64x64xf32, #tpu.memory_space<vmem>>, vector<8x64xf32>
    %630 = arith.select %21, %628, %629 : vector<8x64xi1>, vector<8x64xf32>
    %c40_351 = arith.constant 40 : index
    %c0_352 = arith.constant 0 : index
    %631 = vector.load %arg8[%c40_351, %c0_352] : memref<64x64xf32, #tpu.memory_space<vmem>>, vector<8x64xf32>
    tpu.vector_store %arg8[%c40_351, %c0_352], %630 {strides = array<i32>} : memref<64x64xf32, #tpu.memory_space<vmem>>, vector<8x64xf32>,
    %c48_353 = arith.constant 48 : index
    %c0_354 = arith.constant 0 : index
    %632 = vector.load %arg10[%c48_353, %c0_354] : memref<64x64xf32, #tpu.memory_space<vmem>>, vector<8x64xf32>
    %c8_355 = arith.constant 8 : index
    %c0_356 = arith.constant 0 : index
    %633 = vector.load %arg10[%c8_355, %c0_356] : memref<64x64xf32, #tpu.memory_space<vmem>>, vector<8x64xf32>
    %634 = arith.select %21, %632, %633 : vector<8x64xi1>, vector<8x64xf32>
    %c48_357 = arith.constant 48 : index
    %c0_358 = arith.constant 0 : index
    %635 = vector.load %arg8[%c48_357, %c0_358] : memref<64x64xf32, #tpu.memory_space<vmem>>, vector<8x64xf32>
    tpu.vector_store %arg8[%c48_357, %c0_358], %634 {strides = array<i32>} : memref<64x64xf32, #tpu.memory_space<vmem>>, vector<8x64xf32>,
    %c56_359 = arith.constant 56 : index
    %c0_360 = arith.constant 0 : index
    %636 = vector.load %arg10[%c56_359, %c0_360] : memref<64x64xf32, #tpu.memory_space<vmem>>, vector<8x64xf32>
    %c0_361 = arith.constant 0 : index
    %c0_362 = arith.constant 0 : index
    %637 = vector.load %arg10[%c0_361, %c0_362] : memref<64x64xf32, #tpu.memory_space<vmem>>, vector<8x64xf32>
    %638 = arith.select %21, %636, %637 : vector<8x64xi1>, vector<8x64xf32>
    %c56_363 = arith.constant 56 : index
    %c0_364 = arith.constant 0 : index
    %639 = vector.load %arg8[%c56_363, %c0_364] : memref<64x64xf32, #tpu.memory_space<vmem>>, vector<8x64xf32>
    tpu.vector_store %arg8[%c56_363, %c0_364], %638 {strides = array<i32>} : memref<64x64xf32, #tpu.memory_space<vmem>>, vector<8x64xf32>,
    return
  }
}

</mosaic_0001>

<bundles_post_ra>
// kernel: tpu_custom_call.1
= control target key start
LH: loop header
LB: loop body
LE: loop exit
PB: predicated region body
PF: predicated region fallthrough
CT: control target
= control target key end

     0   :  { %13 = vsyncpa [#allocation8], 0  ;;  %s4420_s0 = inlined_call_operand.vmem [shape: s32[64,1], index: 0, kind: input, shape index: {}]   ;;  %s4421_s1 = inlined_call_operand.vmem [shape: f32[64,8], index: 1, kind: input, shape index: {}]   ;;  %s4422_s2 = inlined_call_operand.hbm [shape: f32[16,256], index: 2, kind: input, shape index: {}]   ;;  %s4423_s3 = inlined_call_operand.vmem [shape: f32[64,256], index: 3, kind: input, shape index: {}]   ;;  %s4424_s4 = inlined_call_operand.vmem [shape: f32[1,256], index: 4, kind: input, shape index: {}]   ;;  %s4425_s5 = inlined_call_operand.hbm [shape: f32[128,256], index: 5, kind: input, shape index: {}]   ;;  %s4426_s6 = inlined_call_operand.hbm [shape: f32[64,256], index: 6, kind: input, shape index: {}]   ;;  %s4427_s7 = inlined_call_operand.vmem [shape: f32[1,256], index: 7, kind: input, shape index: {}]   ;;  %s4428_s8 = inlined_call_operand.hbm [shape: f32[64,64], index: 8, kind: output, shape index: {}]  }
   0x1   :  { %14 = vsyncpa [#allocation11], 0 }
   0x2   :  { %15 = vsyncpa [#allocation9], 0  ;;  %s3465_s27 = smov [#allocation10]   ;;  %s3466_s29 = smov [#allocation7]  }
   0x3   :  { %s41_s28 = sshll.u32 %s3465_s27, 4  ;;  %s25_s30 = sshll.u32 %s3466_s29, 4  ;;  %s42_s28 = int_to_ptr.vmem [resolvable:$true] %s41_s28  ;;  %s26_s30 = int_to_ptr.vmem [resolvable:$true] %s25_s30 }
   0x4   :  { %s3387_s9 = scalar_lea.vmem %s42_s28, 4096  ;;  %p3392_p1 = scmp.lt.s32.totalorder %s42_s28, %s42_s28 }
   0x5   :  { %p3388_p0 = scmp.ne.s32.totalorder %s42_s28, %s3387_s9  ;;  %p3393_p2 = scmp.lt.s32.totalorder %s3387_s9, %s3387_s9 }
   0x7   :  { %p3394_p3 = por %p3393_p2, %p3392_p1 }
   0x9   :  { %p3395_p4 = pnand %p3394_p3, %p3388_p0 }
   0xb   :  { %3398 = shalt.err (!%p3395_p4)
}
   0xc   :  { %s3467_s10 = smov 256   ;;  %s3468_s11 = smov 16  }
   0xd   :  { %47 = dma.hbm_to_vmem [thread:$0]  %s4425_s5, 4096, %s42_s28, [#allocation11], %s3467_s10, %s3467_s10, %s3468_s11  }
   0xe   :  { %s3407_s14 = scalar_lea.vmem %s26_s30, 512  ;;  %p3412_p6 = scmp.lt.s32.totalorder %s26_s30, %s26_s30 }
   0xf   :  { %p3408_p5 = scmp.ne.s32.totalorder %s26_s30, %s3407_s14  ;;  %p3413_p7 = scmp.lt.s32.totalorder %s3407_s14, %s3407_s14 }
  0x11   :  { %p3414_p8 = por %p3413_p7, %p3412_p6 }
  0x13   :  { %p3415_p9 = pnand %p3414_p8, %p3408_p5 }
  0x15   :  { %3418 = shalt.err (!%p3415_p9)
}
  0x16   :  { %31 = dma.hbm_to_vmem [thread:$0]  %s4422_s2, 512, %s26_s30, [#allocation8], %s3467_s10, %s3467_s10, %s3468_s11  }
  0x17   :  { %s3469_s17 = smov [#allocation12]  }
  0x18   :  { %s53_s18 = sshll.u32 %s3469_s17, 4  ;;  %s54_s18 = int_to_ptr.vmem [resolvable:$true] %s53_s18 }
  0x19   :  { %s3427_s19 = scalar_lea.vmem %s54_s18, 2048  ;;  %p3432_p11 = scmp.lt.s32.totalorder %s54_s18, %s54_s18 }
  0x1a   :  { %p3428_p10 = scmp.ne.s32.totalorder %s54_s18, %s3427_s19  ;;  %p3433_p12 = scmp.lt.s32.totalorder %s3427_s19, %s3427_s19 }
  0x1c   :  { %p3434_p13 = por %p3433_p12, %p3432_p11 }
  0x1e   :  { %p3435_p0 = pnand %p3434_p13, %p3428_p10 }
  0x20   :  { %3438 = shalt.err (!%p3435_p0)
}
  0x21   :  { %59 = dma.hbm_to_vmem [thread:$0]  %s4426_s6, 2048, %s54_s18, [#allocation11], %s3467_s10, %s3467_s10, %s3468_s11  }
  0x22   :  { %3459 = dma.done.wait [#allocation8], 512  }
  0x23   :  { %3460 = vsyncadd [#allocation8], 4294966784 }
  0x24   :  { %3461 = dma.done.wait [#allocation11], 6144  }
  0x25   :  { %3462 = vsyncadd [#allocation11], 4294961152  ;;  %v3470_v0 = vmov 0.0   ;;  %v229_v1 = vld [vmem:[#allocation7 + $0x8] sm:$0xff]  ;;  %v397_v2 = vld [vmem:[#allocation7 + $0x18] sm:$0xff]  ;;  %vm242_vm0 = vcmask 64512   ;;  %v87_v29 = vlaneseq }
  0x26   :  { %331 = vmatprep.mubr.f32.mxu0 %v3470_v0  ;;  %462 = vmatprep.mubr.f32.mxu1 %v3470_v0  ;;  %v228_v3 = vld [vmem:[#allocation7] sm:$0xff]  ;;  %v396_v4 = vld [vmem:[#allocation7 + $0x10] sm:$0xff]  ;;  %v3538_v6 = vld [vmem:[%s4423_s3 + $0x78] sm:$0xff]  ;;  %s3472_s2 = smov 64   ;;  %vm211_vm3 = vcmask 523264  }
  0x27   :  { %297 = vmatprep.subr.mxu0 %v229_v1  ;;  %428 = vmatprep.subr.mxu1 %v397_v2  ;;  %v220_v5 = vld [vmem:[%s4421_s1] sm:$0xff]  ;;  %v3543_v7 = vld [vmem:[%s4423_s3 + $0x70] sm:$0xff]  ;;  %v3550_v8 = vld [vmem:[%s4423_s3 + $0x68] sm:$0xff]  ;;  %v3721_v30 = vshrl.u32 %v87_v29, 7 }
  0x28   :  { %298 = vmatpush1.msra.mxu0 %v228_v3  ;;  %429 = vmatpush1.msra.mxu1 %v396_v4  ;;  %v221_v9 = vld [vmem:[%s4421_s1 + $0x8] sm:$0xff]  ;;  %v3562_v10 = vld [vmem:[%s4423_s3 + $0x60] sm:$0xff]  ;;  %v3568_v11 = vld [vmem:[%s4423_s3 + $0x58] sm:$0xff] }
  0x29   :  { %3086 = vmatmul.mubr.msk.f32.vlgmr.msra.gmra.mxu0 %vm242_vm0, %v220_v5  ;;  %3094 = vmatmul.mubr.msk.f32.vlgmr.msra.gmra.mxu1 %vm242_vm0, %v220_v5  ;;  %v3576_v12 = vld [vmem:[%s4423_s3 + $0x50] sm:$0xff]  ;;  %v3589_v14 = vld [vmem:[%s4423_s3 + $0x48] sm:$0xff]  ;;  %v3597_v15 = vld [vmem:[%s4423_s3 + $0x40] sm:$0xff]  ;;  %v234_v31 = vsub.s32 0, %v3721_v30  ;;  %v238_v37 = vsub.s32 1, %v3721_v30 }
  0x2a   :  { %628 = vmatprep.subr.mxu0 %v3538_v6  ;;  %337 = vmatprep.mubr.f32.mxu0 %v3470_v0  ;;  %v222_v13 = vld [vmem:[%s4421_s1 + $0x10] sm:$0xff]  ;;  %v223_v16 = vld [vmem:[%s4421_s1 + $0x18] sm:$0xff]  ;;  %v224_v19 = vld [vmem:[%s4421_s1 + $0x20] sm:$0xff] }
  0x2b   :  { %629 = vmatpush1.msra.mxu0 %v3543_v7  ;;  %468 = vmatprep.mubr.f32.mxu1 %v3470_v0  ;;  %v3610_v17 = vld [vmem:[%s4423_s3 + $0x38] sm:$0xff]  ;;  %v3618_v18 = vld [vmem:[%s4423_s3 + $0x30] sm:$0xff]  ;;  %v3631_v20 = vld [vmem:[%s4423_s3 + $0x28] sm:$0xff] }
  0x2c   :  { %630 = vmatprep.subr.mxu0 %v3550_v8  ;;  %748 = vmatprep.subr.mxu1 %v3538_v6  ;;  %v3639_v21 = vld [vmem:[%s4423_s3 + $0x20] sm:$0xff]  ;;  %v225_v22 = vld [vmem:[%s4421_s1 + $0x28] sm:$0xff]  ;;  %v3652_v23 = vld [vmem:[%s4423_s3 + $0x18] sm:$0xff] }
  0x2d   :  { %3087 = vmatmul.mubr.msk.f32.gmra.mxu0 %vm242_vm0, %v221_v9  ;;  %3095 = vmatmul.mubr.msk.f32.gmra.mxu1 %vm242_vm0, %v221_v9  ;;  %v3660_v24 = vld [vmem:[%s4423_s3 + $0x10] sm:$0xff]  ;;  %v3673_v26 = vld [vmem:[%s4423_s3 + $0x8] sm:$0xff]  ;;  %v3681_v27 = vld [vmem:[%s4423_s3] sm:$0xff] }
  0x2e   :  { %631 = vmatpush1.msra.mxu0 %v3562_v10  ;;  %343 = vmatprep.mubr.f32.mxu0 %v3470_v0  ;;  %v226_v25 = vld [vmem:[%s4421_s1 + $0x30] sm:$0xff]  ;;  %v227_v28 = vld [vmem:[%s4421_s1 + $0x38] sm:$0xff]  ;;  %v230_v32 = vld [vmem:[%s4424_s4] sm:$0x3] }
  0x2f   :  { %474 = vmatprep.mubr.f32.mxu1 %v3470_v0  ;;  %632 = vmatprep.subr.mxu0 %v3568_v11  ;;  %v235_v33 = vrot.slane %v230_v32, %v234_v31  ;;  %v239_v42 = vrot.slane %v230_v32, %v238_v37 }
  0x30   :  { %633 = vmatpush1.msra.mxu0 %v3576_v12  ;;  %749 = vmatpush1.msra.mxu1 %v3543_v7 }
  0x31   :  { %3088 = vmatmul.mubr.msk.f32.gmra.mxu0 %vm242_vm0, %v222_v13  ;;  %3096 = vmatmul.mubr.msk.f32.gmra.mxu1 %vm242_vm0, %v222_v13 }
  0x32   :  { %349 = vmatprep.mubr.f32.mxu0 %v3470_v0  ;;  %480 = vmatprep.mubr.f32.mxu1 %v3470_v0 }
  0x33   :  { %634 = vmatprep.subr.mxu0 %v3589_v14  ;;  %750 = vmatprep.subr.mxu1 %v3550_v8 }
  0x34   :  { %635 = vmatpush1.msra.mxu0 %v3597_v15  ;;  %751 = vmatpush1.msra.mxu1 %v3562_v10 }
  0x35   :  { %3089 = vmatmul.mubr.msk.f32.gmra.mxu0 %vm242_vm0, %v223_v16  ;;  %3097 = vmatmul.mubr.msk.f32.gmra.mxu1 %vm242_vm0, %v223_v16 }
  0x36   :  { %355 = vmatprep.mubr.f32.mxu0 %v3470_v0  ;;  %486 = vmatprep.mubr.f32.mxu1 %v3470_v0 }
  0x37   :  { %636 = vmatprep.subr.mxu0 %v3610_v17  ;;  %752 = vmatprep.subr.mxu1 %v3568_v11 }
  0x38   :  { %637 = vmatpush1.msra.mxu0 %v3618_v18  ;;  %753 = vmatpush1.msra.mxu1 %v3576_v12 }
  0x39   :  { %3090 = vmatmul.mubr.msk.f32.gmra.mxu0 %vm242_vm0, %v224_v19  ;;  %3098 = vmatmul.mubr.msk.f32.gmra.mxu1 %vm242_vm0, %v224_v19 }
  0x3a   :  { %361 = vmatprep.mubr.f32.mxu0 %v3470_v0  ;;  %492 = vmatprep.mubr.f32.mxu1 %v3470_v0 }
  0x3b   :  { %638 = vmatprep.subr.mxu0 %v3631_v20  ;;  %754 = vmatprep.subr.mxu1 %v3589_v14 }
  0x3c   :  { %639 = vmatpush1.msra.mxu0 %v3639_v21  ;;  %755 = vmatpush1.msra.mxu1 %v3597_v15 }
  0x3d   :  { %3091 = vmatmul.mubr.msk.f32.gmra.mxu0 %vm242_vm0, %v225_v22  ;;  %3099 = vmatmul.mubr.msk.f32.gmra.mxu1 %vm242_vm0, %v225_v22 }
  0x3e   :  { %367 = vmatprep.mubr.f32.mxu0 %v3470_v0  ;;  %498 = vmatprep.mubr.f32.mxu1 %v3470_v0 }
  0x3f   :  { %640 = vmatprep.subr.mxu0 %v3652_v23  ;;  %756 = vmatprep.subr.mxu1 %v3610_v17 }
  0x40   :  { %641 = vmatpush1.msra.mxu0 %v3660_v24  ;;  %757 = vmatpush1.msra.mxu1 %v3618_v18 }
  0x41   :  { %3092 = vmatmul.mubr.msk.f32.gmra.mxu0 %vm242_vm0, %v226_v25  ;;  %3100 = vmatmul.mubr.msk.f32.gmra.mxu1 %vm242_vm0, %v226_v25 }
  0x42   :  { %373 = vmatprep.mubr.f32.mxu0 %v3470_v0  ;;  %504 = vmatprep.mubr.f32.mxu1 %v3470_v0 }
  0x43   :  { %642 = vmatprep.subr.mxu0 %v3673_v26  ;;  %758 = vmatprep.subr.mxu1 %v3631_v20 }
  0x44   :  { %643 = vmatpush1.msra.mxu0 %v3681_v27  ;;  %759 = vmatpush1.msra.mxu1 %v3639_v21 }
  0x45   :  { %3093 = vmatmul.mubr.msk.f32.gmra.mxu0 %vm242_vm0, %v227_v28  ;;  %3101 = vmatmul.mubr.msk.f32.gmra.mxu1 %vm242_vm0, %v227_v28 }
  0x46   :  { %676 = vmatprep.mubr.f32.mxu0 %v3470_v0  ;;  %760 = vmatprep.subr.mxu1 %v3652_v23 }
  0x47   :  { %761 = vmatpush1.msra.mxu1 %v3660_v24  ;;  %796 = vmatprep.mubr.f32.mxu1 %v3470_v0 }
  0x48   :  { %762 = vmatprep.subr.mxu1 %v3673_v26  ;;  %873 = vmatprep.subr.mxu0 %v3538_v6 }
  0x49   :  { %677 = vmatmul.mubr.f32.vlgmr.msra.gmra.mxu0 %v3470_v0  ;;  %763 = vmatpush1.msra.mxu1 %v3681_v27 }
  0x4a   :  { %874 = vmatpush1.msra.mxu0 %v3543_v7  ;;  %921 = vmatprep.mubr.f32.mxu0 %v3470_v0 }
  0x4b   :  { %875 = vmatprep.subr.mxu0 %v3550_v8  ;;  %998 = vmatprep.subr.mxu1 %v3538_v6 }
  0x4c   :  { %876 = vmatpush1.msra.mxu0 %v3562_v10 }
  0x4d   :  { %877 = vmatprep.subr.mxu0 %v3568_v11 }
  0x4e   :  { %878 = vmatpush1.msra.mxu0 %v3576_v12 }
  0x4f   :  { %879 = vmatprep.subr.mxu0 %v3589_v14 }
  0x50   :  { %880 = vmatpush1.msra.mxu0 %v3597_v15 }
  0x51   :  { %881 = vmatprep.subr.mxu0 %v3610_v17 }
  0x52   :  { %882 = vmatpush1.msra.mxu0 %v3618_v18 }
  0x53   :  { %883 = vmatprep.subr.mxu0 %v3631_v20 }
  0x54   :  { %884 = vmatpush1.msra.mxu0 %v3639_v21 }
  0x55   :  { %885 = vmatprep.subr.mxu0 %v3652_v23 }
  0x56   :  { %886 = vmatpush1.msra.mxu0 %v3660_v24 }
  0x57   :  { %887 = vmatprep.subr.mxu0 %v3673_v26 }
  0x58   :  { %888 = vmatpush1.msra.mxu0 %v3681_v27 }
  0x59   :  { %1123 = vmatprep.subr.mxu0 %v3538_v6 }
  0xe9   :  { %v333_v34 = vpop.f32.mrf.mxu0  ;;  %v464_v35 = vpop.f32.mrf.mxu1 }
  0xea   :  { %v334_v36 = vadd.f32 %v333_v34, %v235_v33 }
  0xeb   :  { %v335_v38 = vpop.f32.mrf.mxu0  ;;  %v466_v39 = vpop.f32.mrf.mxu1 }
  0xed   :  { %v339_v40 = vpop.f32.mrf.mxu0  ;;  %v470_v41 = vpop.f32.mrf.mxu1 }
  0xee   :  { %v340_v43 = vadd.f32 %v339_v40, %v235_v33 }
  0xef   :  { %v341_v44 = vpop.f32.mrf.mxu0  ;;  %v472_v45 = vpop.f32.mrf.mxu1 }
  0xf0   :  { %v342_v46 = vadd.f32 %v341_v44, %v239_v42 }
  0xf1   :  { %v345_v47 = vpop.f32.mrf.mxu0  ;;  %v476_v48 = vpop.f32.mrf.mxu1 }
  0xf2   :  { %v346_v49 = vadd.f32 %v345_v47, %v235_v33 }
  0xf3   :  { %v347_v50 = vpop.f32.mrf.mxu0  ;;  %v478_v51 = vpop.f32.mrf.mxu1 }
  0xf4   :  { %v348_v52 = vadd.f32 %v347_v50, %v239_v42 }
  0xf5   :  { %v351_v53 = vpop.f32.mrf.mxu0  ;;  %v482_v54 = vpop.f32.mrf.mxu1 }
  0xf6   :  { %v352_v55 = vadd.f32 %v351_v53, %v235_v33 }
  0xf7   :  { %v353_v56 = vpop.f32.mrf.mxu0  ;;  %v484_v57 = vpop.f32.mrf.mxu1 }
  0xf8   :  { %v354_v58 = vadd.f32 %v353_v56, %v239_v42 }
  0xf9   :  { %v357_v59 = vpop.f32.mrf.mxu0  ;;  %v488_v60 = vpop.f32.mrf.mxu1 }
  0xfa   :  { %v358_v61 = vadd.f32 %v357_v59, %v235_v33  ;;  %v3732_v62 = vadd.f32 %v488_v60, %v352_v55 }
  0xfb   :  { %v359_v63 = vpop.f32.mrf.mxu0  ;;  %v490_v1 = vpop.f32.mrf.mxu1 }
  0xfc   :  { %v360_v2 = vadd.f32 %v359_v63, %v239_v42  ;;  %v3734_v3 = vadd.f32 %v490_v1, %v354_v58  ;;  %v3736_v4 = vadd.f32 %v482_v54, %v358_v61  ;;  %v336_v1 = vadd.f32 %v335_v38, %v239_v42 }
  0xfd   :  { %v363_v5 = vpop.f32.mrf.mxu0  ;;  %v494_v9 = vpop.f32.mrf.mxu1 }
  0xfe   :  { %v364_v13 = vadd.f32 %v363_v5, %v235_v33  ;;  %v3738_v16 = vadd.f32 %v494_v9, %v346_v49  ;;  %v3740_v19 = vadd.f32 %v484_v57, %v360_v2 }
  0xff   :  { %v365_v22 = vpop.f32.mrf.mxu0  ;;  %v496_v25 = vpop.f32.mrf.mxu1 }
 0x100   :  { %v366_v28 = vadd.f32 %v365_v22, %v239_v42  ;;  %v3742_v32 = vadd.f32 %v496_v25, %v348_v52  ;;  %v3744_v34 = vadd.f32 %v476_v48, %v364_v13 }
 0x101   :  { %v369_v40 = vpop.f32.mrf.mxu0  ;;  %v500_v44 = vpop.f32.mrf.mxu1 }
 0x102   :  { %v370_v47 = vadd.f32 %v369_v40, %v235_v33  ;;  %v3746_v50 = vadd.f32 %v500_v44, %v340_v43  ;;  %v3748_v53 = vadd.f32 %v478_v51, %v366_v28  ;;  %v3766_v44 = vand.u32 127, %v87_v29 }
 0x103   :  { %v371_v54 = vpop.f32.mrf.mxu0  ;;  %v502_v55 = vpop.f32.mrf.mxu1 }
 0x104   :  { %v372_v49 = vadd.f32 %v371_v54, %v239_v42  ;;  %v3750_v56 = vadd.f32 %v502_v55, %v342_v46  ;;  %v3752_v57 = vadd.f32 %v470_v41, %v370_v47  ;;  %vm202_vm2 = vcmp.lt.s32.totalorder %v3766_v44, 32 }
 0x105   :  { %v375_v58 = vpop.f32.mrf.mxu0  ;;  %v506_v59 = vpop.f32.mrf.mxu1 }
 0x106   :  { %v376_v52 = vadd.f32 %v375_v58, %v235_v33  ;;  %v531_v60 = vadd.f32 %v506_v59, %v334_v36  ;;  %v3754_v48 = vadd.f32 %v472_v45, %v372_v49  ;;  %v71_v33 = vld [vmem:[%s4420_s0] sm:$0xff]  ;;  %v3471_v36 = vmov 0  }
 0x107   :  { %v377_v61 = vpop.f32.mrf.mxu0  ;;  %v508_v63 = vpop.f32.mrf.mxu1  ;;  %3175 = vset.pattern.permute.xlu1 %v3471_v36  ;;  %v79_v45 = vmul.u32 8, %v71_v33  ;;  %3176 = vset.pattern.permute.xlu0 %v3471_v36  ;;  %v72_v33 = vld [vmem:[%s4420_s0 + $0x8] sm:$0xff] }
 0x108   :  { %v378_v43 = vadd.f32 %v377_v61, %v239_v42  ;;  %v3756_v2 = vadd.f32 %v464_v35, %v376_v52  ;;  %v532_v5 = vadd.f32 %v508_v63, %v336_v1 }
 0x109   :  { %v678_v51 = vpop.f32.mrf.mxu0  ;;  %97 = vperm.xlu1 %3175, %v79_v45   ;;  %v144_v38 = vsub.s32 64, %v79_v45  ;;  %v80_v45 = vmul.u32 8, %v72_v33 }
 0x10a   :  { %v683_v9 = vadd.f32 %v678_v51, %v531_v60  ;;  %v3758_v13 = vadd.f32 %v466_v39, %v378_v43 }
 0x10b   :  { %v680_v46 = vpop.f32.mrf.mxu0 }
 0x10c   :  { %v684_v41 = vadd.f32 %v680_v46, %v532_v5  ;;  %v3102_v39 = vmul.f32 -1.442695, %v683_v9 }
 0x10d   :  { %153 = vperm.xlu1 %3175, %v144_v38  }
 0x10e   :  { %3177 = vtanh.f32 %v684_v41  ;;  %v3103_v61 = vmul.f32 -1.442695, %v684_v41 }
 0x10f   :  { %3179 = vpow2.f32 %v3102_v39 }
 0x11b   :  { %v3178_v35 = vpop.eup %3177 }
 0x11c   :  { %700 = vrot.lane.b32.xlu0 %v3178_v35, %s3472_s2  ;;  %v3180_v42 = vpop.eup %3179 }
 0x11d   :  { %v691_v22 = vadd.f32 1.0, %v3180_v42 }
 0x11f   :  { %3181 = vrcp.f32 %v691_v22 }
 0x12c   :  { %v3182_v25 = vpop.eup %3181 }
 0x12d   :  { %v698_v29 = vmul.f32 0.0, %v3182_v25 }
 0x184   :  { %v98_v47 = vpop.permute.xlu1 %97 }
 0x185   :  { %vm120_vm1 = vcmp.lt.s32.totalorder %v3721_v30, %v98_v47 }
 0x186   :  { %v3070_v54 = vsel %vm120_vm1, 1.0, %v3470_v0 }
 0x188   :  { %v154_v55 = vpop.permute.xlu1 %153 }
 0x189   :  { %vm176_vm4 = vcmp.ge.s32.totalorder %v3721_v30, %v154_v55 }
 0x18a   :  { %v3078_v49 = vsel %vm176_vm4, 1.0, %v3470_v0 }
 0x18b   :  { %v203_v58 = vsel %vm202_vm2, %v3070_v54, %v3078_v49 }
 0x18c   :  { %212 = vst.msk [vmem:[#allocation6] sm:$0xff] %vm211_vm3, %v203_v58 }
 0x18e   :  { %v701_v28 = vpop.permute.xlu0 %700 }
 0x18f   :  { %v703_v40 = vmul.f32 %v3182_v25, %v701_v28 }
 0x191   :  { %705 = vrot.lane.b32.xlu0 %v703_v40, %s3472_s2 }
 0x193   :  { %v715_v63 = vld [vmem:[#allocation6] sm:$0xff] }
 0x194   :  { %v716_v43 = vsub.f32 1.0, %v715_v63 }
 0x196   :  { %v722_v5 = vmul.f32 0.0, %v716_v43 }
 0x203   :  { %v706_v59 = vpop.permute.xlu0 %705 }
 0x204   :  { %v708_v52 = vadd.f32 %v706_v59, %v698_v29 }
 0x206   :  { %3183 = vtanh.f32 %v708_v52  ;;  %718 = vrot.lane.b32.xlu1 %v708_v52, %s3472_s2  ;;  %v145_v52 = vsub.s32 64, %v80_v45 }
 0x207   :  { %3185 = vpow2.f32 %v3103_v61 }
 0x213   :  { %v3184_v60 = vpop.eup %3183 }
 0x214   :  { %711 = vrot.lane.b32.xlu0 %v3184_v60, %s3472_s2  ;;  %v3186_v1 = vpop.eup %3185 }
 0x215   :  { %v692_v51 = vadd.f32 1.0, %v3186_v1 }
 0x217   :  { %3187 = vrcp.f32 %v692_v51 }
 0x224   :  { %v3188_v41 = vpop.eup %3187 }
 0x278   :  { %v719_v9 = vpop.permute.xlu1 %718 }
 0x279   :  { %v721_v46 = vmul.f32 %v719_v9, %v715_v63 }
 0x27b   :  { %v3781_v36 = vadd.f32 %v722_v5, %v721_v46 }
 0x27d   :  { %819 = vrot.lane.b32.xlu1 %v3781_v36, %s3472_s2 }
 0x281   :  { %100 = vperm.xlu1 %3175, %v80_v45  }
 0x286   :  { %v712_v38 = vpop.permute.xlu0 %711 }
 0x287   :  { %v714_v35 = vmul.f32 %v3188_v41, %v712_v38 }
 0x289   :  { %v724_v39 = vmul.f32 %v715_v63, %v714_v35  ;;  %v89_v63 = vadd.s32 8, %v3721_v30 }
 0x28b   :  { %v3785_v42 = vadd.f32 %v724_v39, %v722_v5  ;;  %726 = vst.msk [vmem:[#allocation3] sm:$0xff] %vm211_vm3, %v724_v39 }
 0x28d   :  { %3104 = vmatmul.mubr.msk.f32.vlgmr.msra.gmra.mxu1 %vm211_vm3, %v3785_v42 }
 0x28e   :  { %999 = vmatpush1.msra.mxu1 %v3543_v7  ;;  %1046 = vmatprep.mubr.f32.mxu1 %v3470_v0 }
 0x28f   :  { %1000 = vmatprep.subr.mxu1 %v3550_v8 }
 0x290   :  { %1001 = vmatpush1.msra.mxu1 %v3562_v10 }
 0x291   :  { %1002 = vmatprep.subr.mxu1 %v3568_v11 }
 0x292   :  { %1003 = vmatpush1.msra.mxu1 %v3576_v12 }
 0x293   :  { %1004 = vmatprep.subr.mxu1 %v3589_v14 }
 0x294   :  { %1005 = vmatpush1.msra.mxu1 %v3597_v15 }
 0x295   :  { %1006 = vmatprep.subr.mxu1 %v3610_v17 }
 0x296   :  { %1007 = vmatpush1.msra.mxu1 %v3618_v18 }
 0x297   :  { %1008 = vmatprep.subr.mxu1 %v3631_v20 }
 0x298   :  { %1009 = vmatpush1.msra.mxu1 %v3639_v21 }
 0x299   :  { %1010 = vmatprep.subr.mxu1 %v3652_v23 }
 0x29a   :  { %1011 = vmatpush1.msra.mxu1 %v3660_v24 }
 0x29b   :  { %1012 = vmatprep.subr.mxu1 %v3673_v26 }
 0x29c   :  { %1013 = vmatpush1.msra.mxu1 %v3681_v27 }
 0x29d   :  { %1248 = vmatprep.subr.mxu1 %v3538_v6 }
 0x34d   :  { %v798_v22 = vpop.f32.mrf.mxu1 }
 0x34e   :  { %v803_v25 = vadd.f32 %v798_v22, %v3746_v50  ;;  %v820_v50 = vpop.permute.xlu1 %819 }
 0x34f   :  { %v800_v28 = vpop.f32.mrf.mxu1 }
 0x350   :  { %v804_v40 = vadd.f32 %v800_v28, %v3750_v56  ;;  %v3105_v54 = vmul.f32 -1.442695, %v803_v25 }
 0x352   :  { %3189 = vtanh.f32 %v804_v40  ;;  %v101_v1 = vpop.permute.xlu1 %100  ;;  %v3106_v33 = vmul.f32 -1.442695, %v804_v40 }
 0x353   :  { %3191 = vpow2.f32 %v3105_v54  ;;  %vm121_vm5 = vcmp.lt.s32.totalorder %v89_v63, %v101_v1 }
 0x354   :  { %v3071_v51 = vsel %vm121_vm5, 1.0, %v3470_v0 }
 0x35f   :  { %v3190_v47 = vpop.eup %3189 }
 0x360   :  { %824 = vrot.lane.b32.xlu0 %v3190_v47, %s3472_s2  ;;  %v3192_v55 = vpop.eup %3191 }
 0x361   :  { %v811_v49 = vadd.f32 1.0, %v3192_v55 }
 0x363   :  { %3193 = vrcp.f32 %v811_v49 }
 0x370   :  { %v3194_v58 = vpop.eup %3193 }
 0x371   :  { %v822_v60 = vmul.f32 %v3194_v58, %v820_v50 }
 0x3d2   :  { %v825_v29 = vpop.permute.xlu0 %824 }
 0x3d3   :  { %v827_v59 = vmul.f32 %v3194_v58, %v825_v29  ;;  %v73_v58 = vld [vmem:[%s4420_s0 + $0x10] sm:$0xff] }
 0x3d5   :  { %829 = vrot.lane.b32.xlu0 %v827_v59, %s3472_s2 }
 0x3d9   :  { %156 = vperm.xlu0 %3176, %v145_v52  }
 0x447   :  { %v830_v61 = vpop.permute.xlu0 %829 }
 0x448   :  { %v832_v56 = vadd.f32 %v830_v61, %v822_v60 }
 0x44a   :  { %3195 = vtanh.f32 %v832_v56 }
 0x44b   :  { %3197 = vpow2.f32 %v3106_v33  ;;  %v90_v33 = vadd.s32 16, %v3721_v30 }
 0x454   :  { %v157_v43 = vpop.permute.xlu0 %156 }
 0x455   :  { %vm177_vm6 = vcmp.ge.s32.totalorder %v89_v63, %v157_v43 }
 0x456   :  { %v3079_v5 = vsel %vm177_vm6, 1.0, %v3470_v0 }
 0x457   :  { %v3196_v9 = vpop.eup %3195  ;;  %v204_v46 = vsel %vm202_vm2, %v3071_v51, %v3079_v5 }
 0x458   :  { %213 = vst.msk [vmem:[#allocation6 + $0x8] sm:$0xff] %vm211_vm3, %v204_v46  ;;  %835 = vrot.lane.b32.xlu1 %v3196_v9, %s3472_s2  ;;  %v3198_v45 = vpop.eup %3197 }
 0x459   :  { %v812_v41 = vadd.f32 1.0, %v3198_v45 }
 0x45b   :  { %3199 = vrcp.f32 %v812_v41 }
 0x45c   :  { %842 = vrot.lane.b32.xlu1 %v832_v56, %s3472_s2 }
 0x45f   :  { %v839_v38 = vld [vmem:[#allocation6 + $0x8] sm:$0xff] }
 0x460   :  { %v840_v35 = vsub.f32 1.0, %v839_v38 }
 0x462   :  { %v849_v28 = vmul.f32 %v840_v35, %v3785_v42  ;;  %v846_v49 = vmul.f32 %v840_v35, %v3781_v36  ;;  %v81_v42 = vmul.u32 8, %v73_v58 }
 0x464   :  { %v146_v5 = vsub.s32 64, %v81_v42 }
 0x468   :  { %v3200_v39 = vpop.eup %3199 }
 0x4ca   :  { %v836_v22 = vpop.permute.xlu1 %835 }
 0x4cb   :  { %v838_v25 = vmul.f32 %v3200_v39, %v836_v22 }
 0x4cd   :  { %v848_v47 = vmul.f32 %v839_v38, %v838_v25 }
 0x4ce   :  { %v843_v54 = vpop.permute.xlu1 %842 }
 0x4cf   :  { %v3820_v55 = vadd.f32 %v849_v28, %v848_v47  ;;  %851 = vst.msk [vmem:[#allocation3 + $0x8] sm:$0xff] %vm211_vm3, %v848_v47  ;;  %v845_v40 = vmul.f32 %v843_v54, %v839_v38 }
 0x4d1   :  { %v3827_v29 = vadd.f32 %v846_v49, %v845_v40  ;;  %3107 = vmatmul.mubr.msk.f32.vlgmr.msra.gmra.mxu0 %vm211_vm3, %v3820_v55 }
 0x4d2   :  { %1124 = vmatpush1.msra.mxu0 %v3543_v7  ;;  %1171 = vmatprep.mubr.f32.mxu0 %v3470_v0 }
 0x4d3   :  { %944 = vrot.lane.b32.xlu1 %v3827_v29, %s3472_s2  ;;  %1125 = vmatprep.subr.mxu0 %v3550_v8 }
 0x4d4   :  { %1126 = vmatpush1.msra.mxu0 %v3562_v10 }
 0x4d5   :  { %1127 = vmatprep.subr.mxu0 %v3568_v11 }
 0x4d6   :  { %1128 = vmatpush1.msra.mxu0 %v3576_v12 }
 0x4d7   :  { %103 = vperm.xlu1 %3175, %v81_v42   ;;  %1129 = vmatprep.subr.mxu0 %v3589_v14 }
 0x4d8   :  { %1130 = vmatpush1.msra.mxu0 %v3597_v15 }
 0x4d9   :  { %1131 = vmatprep.subr.mxu0 %v3610_v17 }
 0x4da   :  { %1132 = vmatpush1.msra.mxu0 %v3618_v18 }
 0x4db   :  { %1133 = vmatprep.subr.mxu0 %v3631_v20 }
 0x4dc   :  { %1134 = vmatpush1.msra.mxu0 %v3639_v21 }
 0x4dd   :  { %1135 = vmatprep.subr.mxu0 %v3652_v23 }
 0x4de   :  { %1136 = vmatpush1.msra.mxu0 %v3660_v24 }
 0x4df   :  { %1137 = vmatprep.subr.mxu0 %v3673_v26 }
 0x4e0   :  { %1138 = vmatpush1.msra.mxu0 %v3681_v27 }
 0x4e1   :  { %1373 = vmatprep.subr.mxu0 %v3538_v6 }
 0x591   :  { %v923_v36 = vpop.f32.mrf.mxu0 }
 0x592   :  { %v928_v59 = vadd.f32 %v923_v36, %v3738_v16  ;;  %v945_v16 = vpop.permute.xlu1 %944  ;;  %v74_v36 = vld [vmem:[%s4420_s0 + $0x18] sm:$0xff] }
 0x593   :  { %v925_v52 = vpop.f32.mrf.mxu0 }
 0x594   :  { %v929_v50 = vadd.f32 %v925_v52, %v3742_v32  ;;  %v3108_v61 = vmul.f32 -1.442695, %v928_v59  ;;  %v82_v52 = vmul.u32 8, %v74_v36 }
 0x596   :  { %3201 = vtanh.f32 %v929_v50  ;;  %v104_v45 = vpop.permute.xlu1 %103  ;;  %v3109_v25 = vmul.f32 -1.442695, %v929_v50 }
 0x597   :  { %3203 = vpow2.f32 %v3108_v61  ;;  %vm122_vm7 = vcmp.lt.s32.totalorder %v90_v33, %v104_v45 }
 0x598   :  { %v3072_v38 = vsel %vm122_vm7, 1.0, %v3470_v0 }
 0x5a3   :  { %v3202_v60 = vpop.eup %3201 }
 0x5a4   :  { %949 = vrot.lane.b32.xlu0 %v3202_v60, %s3472_s2  ;;  %v3204_v56 = vpop.eup %3203 }
 0x5a5   :  { %v936_v63 = vadd.f32 1.0, %v3204_v56 }
 0x5a7   :  { %3205 = vrcp.f32 %v936_v63 }
 0x5b4   :  { %v3206_v1 = vpop.eup %3205 }
 0x5b5   :  { %v947_v9 = vmul.f32 %v3206_v1, %v945_v16 }
 0x616   :  { %v950_v43 = vpop.permute.xlu0 %949 }
 0x617   :  { %v952_v51 = vmul.f32 %v3206_v1, %v950_v43 }
 0x619   :  { %954 = vrot.lane.b32.xlu0 %v952_v51, %s3472_s2 }
 0x61d   :  { %159 = vperm.xlu0 %3176, %v146_v5  }
 0x68b   :  { %v955_v46 = vpop.permute.xlu0 %954 }
 0x68c   :  { %v957_v32 = vadd.f32 %v955_v46, %v947_v9 }
 0x68e   :  { %3207 = vtanh.f32 %v957_v32  ;;  %967 = vrot.lane.b32.xlu0 %v957_v32, %s3472_s2 }
 0x68f   :  { %3209 = vpow2.f32 %v3109_v25 }
 0x698   :  { %v160_v41 = vpop.permute.xlu0 %159 }
 0x699   :  { %vm178_vm8 = vcmp.ge.s32.totalorder %v90_v33, %v160_v41 }
 0x69a   :  { %v3080_v35 = vsel %vm178_vm8, 1.0, %v3470_v0 }
 0x69b   :  { %v3208_v39 = vpop.eup %3207  ;;  %v205_v22 = vsel %vm202_vm2, %v3072_v38, %v3080_v35  ;;  %v91_v35 = vadd.s32 24, %v3721_v30 }
 0x69c   :  { %214 = vst.msk [vmem:[#allocation6 + $0x10] sm:$0xff] %vm211_vm3, %v205_v22  ;;  %960 = vrot.lane.b32.xlu1 %v3208_v39, %s3472_s2  ;;  %v3210_v28 = vpop.eup %3209 }
 0x69d   :  { %v937_v54 = vadd.f32 1.0, %v3210_v28 }
 0x69f   :  { %3211 = vrcp.f32 %v937_v54 }
 0x6a3   :  { %v964_v47 = vld [vmem:[#allocation6 + $0x10] sm:$0xff] }
 0x6a4   :  { %v965_v49 = vsub.f32 1.0, %v964_v47 }
 0x6a6   :  { %v971_v42 = vmul.f32 %v965_v49, %v3827_v29  ;;  %v974_v56 = vmul.f32 %v965_v49, %v3820_v55 }
 0x6ac   :  { %v3212_v50 = vpop.eup %3211 }
 0x700   :  { %v968_v40 = vpop.permute.xlu0 %967 }
 0x701   :  { %v970_v58 = vmul.f32 %v968_v40, %v964_v47 }
 0x703   :  { %v3866_v59 = vadd.f32 %v971_v42, %v970_v58 }
 0x705   :  { %1069 = vrot.lane.b32.xlu0 %v3866_v59, %s3472_s2 }
 0x709   :  { %106 = vperm.xlu0 %3176, %v82_v52  }
 0x70e   :  { %v961_v60 = vpop.permute.xlu1 %960 }
 0x70f   :  { %v963_v61 = vmul.f32 %v3212_v50, %v961_v60 }
 0x711   :  { %v973_v63 = vmul.f32 %v964_v47, %v963_v61  ;;  %v75_v61 = vld [vmem:[%s4420_s0 + $0x20] sm:$0xff] }
 0x713   :  { %v3871_v1 = vadd.f32 %v974_v56, %v973_v63  ;;  %976 = vst.msk [vmem:[#allocation3 + $0x10] sm:$0xff] %vm211_vm3, %v973_v63  ;;  %v83_v63 = vmul.u32 8, %v75_v61 }
 0x715   :  { %3110 = vmatmul.mubr.msk.f32.vlgmr.msra.gmra.mxu1 %vm211_vm3, %v3871_v1 }
 0x716   :  { %1249 = vmatpush1.msra.mxu1 %v3543_v7  ;;  %1296 = vmatprep.mubr.f32.mxu1 %v3470_v0 }
 0x717   :  { %1250 = vmatprep.subr.mxu1 %v3550_v8 }
 0x718   :  { %1251 = vmatpush1.msra.mxu1 %v3562_v10 }
 0x719   :  { %1252 = vmatprep.subr.mxu1 %v3568_v11 }
 0x71a   :  { %1253 = vmatpush1.msra.mxu1 %v3576_v12 }
 0x71b   :  { %1254 = vmatprep.subr.mxu1 %v3589_v14 }
 0x71c   :  { %1255 = vmatpush1.msra.mxu1 %v3597_v15 }
 0x71d   :  { %1256 = vmatprep.subr.mxu1 %v3610_v17 }
 0x71e   :  { %1257 = vmatpush1.msra.mxu1 %v3618_v18 }
 0x71f   :  { %1258 = vmatprep.subr.mxu1 %v3631_v20 }
 0x720   :  { %1259 = vmatpush1.msra.mxu1 %v3639_v21 }
 0x721   :  { %1260 = vmatprep.subr.mxu1 %v3652_v23 }
 0x722   :  { %1261 = vmatpush1.msra.mxu1 %v3660_v24 }
 0x723   :  { %1262 = vmatprep.subr.mxu1 %v3673_v26 }
 0x724   :  { %1263 = vmatpush1.msra.mxu1 %v3681_v27 }
 0x725   :  { %1498 = vmatprep.subr.mxu1 %v3538_v6  ;;  %v147_v6 = vsub.s32 64, %v82_v52 }
 0x7d5   :  { %v1048_v55 = vpop.f32.mrf.mxu1 }
 0x7d6   :  { %v1053_v29 = vadd.f32 %v1048_v55, %v3732_v62  ;;  %v1070_v62 = vpop.permute.xlu0 %1069 }
 0x7d7   :  { %v1050_v43 = vpop.f32.mrf.mxu1 }
 0x7d8   :  { %v1054_v51 = vadd.f32 %v1050_v43, %v3734_v3  ;;  %v3111_v16 = vmul.f32 -1.442695, %v1053_v29 }
 0x7da   :  { %3213 = vtanh.f32 %v1054_v51  ;;  %v107_v39 = vpop.permute.xlu0 %106  ;;  %v3112_v49 = vmul.f32 -1.442695, %v1054_v51 }
 0x7db   :  { %3215 = vpow2.f32 %v3111_v16  ;;  %vm123_vm9 = vcmp.lt.s32.totalorder %v91_v35, %v107_v39 }
 0x7dc   :  { %v3073_v25 = vsel %vm123_vm9, 1.0, %v3470_v0 }
 0x7e7   :  { %v3214_v5 = vpop.eup %3213 }
 0x7e8   :  { %1074 = vrot.lane.b32.xlu1 %v3214_v5, %s3472_s2  ;;  %v3216_v9 = vpop.eup %3215 }
 0x7e9   :  { %v1061_v46 = vadd.f32 1.0, %v3216_v9 }
 0x7eb   :  { %3217 = vrcp.f32 %v1061_v46 }
 0x7f8   :  { %v3218_v32 = vpop.eup %3217 }
 0x7f9   :  { %v1072_v41 = vmul.f32 %v3218_v32, %v1070_v62 }
 0x85a   :  { %v1075_v33 = vpop.permute.xlu1 %1074 }
 0x85b   :  { %v1077_v45 = vmul.f32 %v3218_v32, %v1075_v33  ;;  %v92_v32 = vadd.s32 32, %v3721_v30 }
 0x85d   :  { %1079 = vrot.lane.b32.xlu1 %v1077_v45, %s3472_s2 }
 0x861   :  { %162 = vperm.xlu1 %3175, %v147_v6  }
 0x8cf   :  { %v1080_v38 = vpop.permute.xlu1 %1079 }
 0x8d0   :  { %v1082_v3 = vadd.f32 %v1080_v38, %v1072_v41 }
 0x8d2   :  { %3219 = vtanh.f32 %v1082_v3  ;;  %1092 = vrot.lane.b32.xlu1 %v1082_v3, %s3472_s2 }
 0x8d3   :  { %3221 = vpow2.f32 %v3112_v49  ;;  %v76_v49 = vld [vmem:[%s4420_s0 + $0x28] sm:$0xff] }
 0x8dc   :  { %v163_v22 = vpop.permute.xlu1 %162 }
 0x8dd   :  { %vm179_vm10 = vcmp.ge.s32.totalorder %v91_v35, %v163_v22 }
 0x8de   :  { %v3081_v28 = vsel %vm179_vm10, 1.0, %v3470_v0 }
 0x8df   :  { %v3220_v47 = vpop.eup %3219  ;;  %v206_v54 = vsel %vm202_vm2, %v3073_v25, %v3081_v28 }
 0x8e0   :  { %215 = vst.msk [vmem:[#allocation6 + $0x18] sm:$0xff] %vm211_vm3, %v206_v54  ;;  %1085 = vrot.lane.b32.xlu0 %v3220_v47, %s3472_s2  ;;  %v3222_v40 = vpop.eup %3221 }
 0x8e1   :  { %v1062_v42 = vadd.f32 1.0, %v3222_v40 }
 0x8e3   :  { %3223 = vrcp.f32 %v1062_v42 }
 0x8e7   :  { %v1089_v58 = vld [vmem:[#allocation6 + $0x18] sm:$0xff] }
 0x8e8   :  { %v1090_v36 = vsub.f32 1.0, %v1089_v58 }
 0x8ea   :  { %v1096_v50 = vmul.f32 %v1090_v36, %v3866_v59  ;;  %v1099_v5 = vmul.f32 %v1090_v36, %v3871_v1  ;;  %v148_v1 = vsub.s32 64, %v83_v63 }
 0x8f0   :  { %v3224_v55 = vpop.eup %3223 }
 0x944   :  { %v1093_v52 = vpop.permute.xlu1 %1092 }
 0x945   :  { %v1095_v60 = vmul.f32 %v1093_v52, %v1089_v58 }
 0x947   :  { %v3909_v56 = vadd.f32 %v1096_v50, %v1095_v60 }
 0x949   :  { %1194 = vrot.lane.b32.xlu1 %v3909_v56, %s3472_s2 }
 0x94d   :  { %109 = vperm.xlu1 %3175, %v83_v63   ;;  %v3370_v63 = vld [vmem:[%s4423_s3 + $0x68] sm:$0xff] }
 0x952   :  { %v1086_v29 = vpop.permute.xlu0 %1085 }
 0x953   :  { %v1088_v43 = vmul.f32 %v3224_v55, %v1086_v29  ;;  %v3371_v55 = vld [vmem:[%s4423_s3 + $0x60] sm:$0xff]  ;;  %v3372_v29 = vld [vmem:[%s4423_s3 + $0x58] sm:$0xff] }
 0x955   :  { %v1098_v51 = vmul.f32 %v1089_v58, %v1088_v43  ;;  %v84_v58 = vmul.u32 8, %v76_v49 }
 0x957   :  { %v3914_v16 = vadd.f32 %v1099_v5, %v1098_v51  ;;  %1101 = vst.msk [vmem:[#allocation3 + $0x18] sm:$0xff] %vm211_vm3, %v1098_v51  ;;  %v3373_v5 = vld [vmem:[%s4423_s3 + $0x50] sm:$0xff] }
 0x959   :  { %3113 = vmatmul.mubr.msk.f32.vlgmr.msra.gmra.mxu0 %vm211_vm3, %v3914_v16 }
 0x95a   :  { %1374 = vmatpush1.msra.mxu0 %v3543_v7  ;;  %1421 = vmatprep.mubr.f32.mxu0 %v3470_v0 }
 0x95b   :  { %1375 = vmatprep.subr.mxu0 %v3550_v8 }
 0x95c   :  { %1376 = vmatpush1.msra.mxu0 %v3562_v10 }
 0x95d   :  { %1377 = vmatprep.subr.mxu0 %v3568_v11 }
 0x95e   :  { %1378 = vmatpush1.msra.mxu0 %v3576_v12  ;;  %v1604_v43 = vld [vmem:[#allocation3 + $0x18] sm:$0xff] }
 0x95f   :  { %1379 = vmatprep.subr.mxu0 %v3589_v14 }
 0x960   :  { %1380 = vmatpush1.msra.mxu0 %v3597_v15 }
 0x961   :  { %1381 = vmatprep.subr.mxu0 %v3610_v17 }
 0x962   :  { %1382 = vmatpush1.msra.mxu0 %v3618_v18 }
 0x963   :  { %1383 = vmatprep.subr.mxu0 %v3631_v20 }
 0x964   :  { %1384 = vmatpush1.msra.mxu0 %v3639_v21 }
 0x965   :  { %1385 = vmatprep.subr.mxu0 %v3652_v23 }
 0x966   :  { %1386 = vmatpush1.msra.mxu0 %v3660_v24 }
 0x967   :  { %1387 = vmatprep.subr.mxu0 %v3673_v26 }
 0x968   :  { %1388 = vmatpush1.msra.mxu0 %v3681_v27 }
 0xa19   :  { %v1173_v7 = vpop.f32.mrf.mxu0 }
 0xa1a   :  { %v1178_v8 = vadd.f32 %v1173_v7, %v3736_v4  ;;  %v1195_v4 = vpop.permute.xlu1 %1194 }
 0xa1b   :  { %v1175_v10 = vpop.f32.mrf.mxu0 }
 0xa1c   :  { %v1179_v11 = vadd.f32 %v1175_v10, %v3740_v19  ;;  %v3114_v14 = vmul.f32 -1.442695, %v1178_v8  ;;  %v3375_v10 = vld [vmem:[%s4423_s3 + $0x40] sm:$0xff] }
 0xa1e   :  { %3225 = vtanh.f32 %v1179_v11  ;;  %v110_v33 = vpop.permute.xlu1 %109  ;;  %v3115_v3 = vmul.f32 -1.442695, %v1179_v11  ;;  %v3376_v11 = vld [vmem:[%s4423_s3 + $0x38] sm:$0xff] }
 0xa1f   :  { %3227 = vpow2.f32 %v3114_v14  ;;  %vm124_vm11 = vcmp.lt.s32.totalorder %v92_v32, %v110_v33  ;;  %v3378_v14 = vld [vmem:[%s4423_s3 + $0x28] sm:$0xff] }
 0xa20   :  { %v3074_v6 = vsel %vm124_vm11, 1.0, %v3470_v0 }
 0xa2b   :  { %v3226_v12 = vpop.eup %3225 }
 0xa2c   :  { %1199 = vrot.lane.b32.xlu0 %v3226_v12, %s3472_s2  ;;  %v3228_v15 = vpop.eup %3227  ;;  %v3377_v12 = vld [vmem:[%s4423_s3 + $0x30] sm:$0xff] }
 0xa2d   :  { %v1186_v17 = vadd.f32 1.0, %v3228_v15 }
 0xa2f   :  { %3229 = vrcp.f32 %v1186_v17 }
 0xa3c   :  { %v3230_v18 = vpop.eup %3229 }
 0xa3d   :  { %v1197_v9 = vmul.f32 %v3230_v18, %v1195_v4 }
 0xa9e   :  { %v1200_v20 = vpop.permute.xlu0 %1199 }
 0xa9f   :  { %v1202_v59 = vmul.f32 %v3230_v18, %v1200_v20 }
 0xaa1   :  { %1204 = vrot.lane.b32.xlu0 %v1202_v59, %s3472_s2 }
 0xaa5   :  { %165 = vperm.xlu0 %3176, %v148_v1  }
 0xb13   :  { %v1205_v46 = vpop.permute.xlu0 %1204 }
 0xb14   :  { %v1207_v19 = vadd.f32 %v1205_v46, %v1197_v9 }
 0xb16   :  { %3231 = vtanh.f32 %v1207_v19  ;;  %1217 = vrot.lane.b32.xlu0 %v1207_v19, %s3472_s2  ;;  %v93_v19 = vadd.s32 40, %v3721_v30 }
 0xb17   :  { %3233 = vpow2.f32 %v3115_v3 }
 0xb20   :  { %v166_v45 = vpop.permute.xlu0 %165 }
 0xb21   :  { %vm180_vm12 = vcmp.ge.s32.totalorder %v92_v32, %v166_v45 }
 0xb22   :  { %v3082_v62 = vsel %vm180_vm12, 1.0, %v3470_v0 }
 0xb23   :  { %v3232_v41 = vpop.eup %3231  ;;  %v207_v38 = vsel %vm202_vm2, %v3074_v6, %v3082_v62 }
 0xb24   :  { %216 = vst.msk [vmem:[#allocation6 + $0x20] sm:$0xff] %vm211_vm3, %v207_v38  ;;  %1210 = vrot.lane.b32.xlu1 %v3232_v41, %s3472_s2  ;;  %v3234_v35 = vpop.eup %3233 }
 0xb25   :  { %v1187_v22 = vadd.f32 1.0, %v3234_v35 }
 0xb27   :  { %3235 = vrcp.f32 %v1187_v22 }
 0xb2b   :  { %v1214_v39 = vld [vmem:[#allocation6 + $0x20] sm:$0xff] }
 0xb2c   :  { %v1215_v25 = vsub.f32 1.0, %v1214_v39 }
 0xb2e   :  { %v1221_v47 = vmul.f32 %v1215_v25, %v3909_v56  ;;  %v1224_v60 = vmul.f32 %v1215_v25, %v3914_v16  ;;  %v3369_v56 = vld [vmem:[%s4423_s3 + $0x70] sm:$0xff]  ;;  %v3374_v16 = vld [vmem:[%s4423_s3 + $0x48] sm:$0xff] }
 0xb34   :  { %v3236_v42 = vpop.eup %3235 }
 0xb88   :  { %v1218_v28 = vpop.permute.xlu0 %1217 }
 0xb89   :  { %v1220_v54 = vmul.f32 %v1218_v28, %v1214_v39 }
 0xb8b   :  { %v3951_v40 = vadd.f32 %v1221_v47, %v1220_v54  ;;  %v77_v54 = vld [vmem:[%s4420_s0 + $0x30] sm:$0xff] }
 0xb8d   :  { %1319 = vrot.lane.b32.xlu0 %v3951_v40, %s3472_s2 }
 0xb91   :  { %112 = vperm.xlu0 %3176, %v84_v58  }
 0xb96   :  { %v1211_v36 = vpop.permute.xlu1 %1210 }
 0xb97   :  { %v1213_v52 = vmul.f32 %v3236_v42, %v1211_v36 }
 0xb99   :  { %v1223_v50 = vmul.f32 %v1214_v39, %v1213_v52 }
 0xb9b   :  { %v3956_v61 = vadd.f32 %v1224_v60, %v1223_v50  ;;  %1226 = vst.msk [vmem:[#allocation3 + $0x20] sm:$0xff] %vm211_vm3, %v1223_v50 }
 0xb9d   :  { %3116 = vmatmul.mubr.msk.f32.vlgmr.msra.gmra.mxu1 %vm211_vm3, %v3956_v61 }
 0xb9e   :  { %1499 = vmatpush1.msra.mxu1 %v3369_v56  ;;  %1546 = vmatprep.mubr.f32.mxu1 %v3470_v0 }
 0xb9f   :  { %1500 = vmatprep.subr.mxu1 %v3370_v63 }
 0xba0   :  { %1501 = vmatpush1.msra.mxu1 %v3371_v55 }
 0xba1   :  { %1502 = vmatprep.subr.mxu1 %v3372_v29 }
 0xba2   :  { %v1605_v51 = vld [vmem:[#allocation3 + $0x20] sm:$0xff]  ;;  %1503 = vmatpush1.msra.mxu1 %v3373_v5 }
 0xba3   :  { %1504 = vmatprep.subr.mxu1 %v3374_v16  ;;  %v1606_v7 = vsel %vm202_vm2, %v1604_v43, %v1605_v51  ;;  %v1610_v8 = vsel %vm202_vm2, %v1605_v51, %v1604_v43 }
 0xba4   :  { %1505 = vmatpush1.msra.mxu1 %v3375_v10  ;;  %1607 = vst.msk [vmem:[#allocation2 + $0x18] sm:$0xff] %vm211_vm3, %v1606_v7  ;;  %1611 = vst.msk [vmem:[#allocation2 + $0x20] sm:$0xff] %vm211_vm3, %v1610_v8 }
 0xba5   :  { %1506 = vmatprep.subr.mxu1 %v3376_v11 }
 0xba6   :  { %1507 = vmatpush1.msra.mxu1 %v3377_v12 }
 0xba7   :  { %1508 = vmatprep.subr.mxu1 %v3378_v14 }
 0xba8   :  { %1509 = vmatpush1.msra.mxu1 %v3639_v21 }
 0xba9   :  { %1510 = vmatprep.subr.mxu1 %v3652_v23 }
 0xbaa   :  { %1511 = vmatpush1.msra.mxu1 %v3660_v24 }
 0xbab   :  { %1512 = vmatprep.subr.mxu1 %v3673_v26 }
 0xbac   :  { %1513 = vmatpush1.msra.mxu1 %v3681_v27  ;;  %v149_v27 = vsub.s32 64, %v84_v58  ;;  %v85_v58 = vmul.u32 8, %v77_v54 }
 0xc5d   :  { %v1298_v15 = vpop.f32.mrf.mxu1 }
 0xc5e   :  { %v1303_v17 = vadd.f32 %v1298_v15, %v3744_v34  ;;  %v1320_v34 = vpop.permute.xlu0 %1319  ;;  %v150_v15 = vsub.s32 64, %v85_v58 }
 0xc5f   :  { %v1300_v18 = vpop.f32.mrf.mxu1 }
 0xc60   :  { %v1304_v20 = vadd.f32 %v1300_v18, %v3748_v53  ;;  %v3117_v1 = vmul.f32 -1.442695, %v1303_v17 }
 0xc62   :  { %3237 = vtanh.f32 %v1304_v20  ;;  %v113_v32 = vpop.permute.xlu0 %112  ;;  %v3118_v38 = vmul.f32 -1.442695, %v1304_v20  ;;  %v94_v20 = vadd.s32 48, %v3721_v30 }
 0xc63   :  { %3239 = vpow2.f32 %v3117_v1  ;;  %vm125_vm13 = vcmp.lt.s32.totalorder %v93_v19, %v113_v32 }
 0xc64   :  { %v3075_v45 = vsel %vm125_vm13, 1.0, %v3470_v0 }
 0xc6f   :  { %v3238_v59 = vpop.eup %3237 }
 0xc70   :  { %1324 = vrot.lane.b32.xlu1 %v3238_v59, %s3472_s2  ;;  %v3240_v21 = vpop.eup %3239 }
 0xc71   :  { %v1311_v23 = vadd.f32 1.0, %v3240_v21 }
 0xc73   :  { %3241 = vrcp.f32 %v1311_v23 }
 0xc80   :  { %v3242_v24 = vpop.eup %3241 }
 0xc81   :  { %v1322_v9 = vmul.f32 %v3242_v24, %v1320_v34 }
 0xce2   :  { %v1325_v4 = vpop.permute.xlu1 %1324 }
 0xce3   :  { %v1327_v26 = vmul.f32 %v3242_v24, %v1325_v4 }
 0xce5   :  { %1329 = vrot.lane.b32.xlu1 %v1327_v26, %s3472_s2 }
 0xce9   :  { %168 = vperm.xlu1 %3175, %v149_v27  }
 0xd57   :  { %v1330_v46 = vpop.permute.xlu1 %1329 }
 0xd58   :  { %v1332_v53 = vadd.f32 %v1330_v46, %v1322_v9 }
 0xd5a   :  { %3243 = vtanh.f32 %v1332_v53  ;;  %1342 = vrot.lane.b32.xlu1 %v1332_v53, %s3472_s2 }
 0xd5b   :  { %3245 = vpow2.f32 %v3118_v38 }
 0xd64   :  { %v169_v33 = vpop.permute.xlu1 %168 }
 0xd65   :  { %vm181_vm14 = vcmp.ge.s32.totalorder %v93_v19, %v169_v33  ;;  %v78_v33 = vld [vmem:[%s4420_s0 + $0x38] sm:$0xff] }
 0xd66   :  { %v3083_v6 = vsel %vm181_vm14, 1.0, %v3470_v0 }
 0xd67   :  { %v3244_v62 = vpop.eup %3243  ;;  %v208_v41 = vsel %vm202_vm2, %v3075_v45, %v3083_v6  ;;  %v86_v6 = vmul.u32 8, %v78_v33  ;;  %v1817_v33 = vld [vmem:[#allocation10 + $0xa0] sm:$0xff] }
 0xd68   :  { %217 = vst.msk [vmem:[#allocation6 + $0x28] sm:$0xff] %vm211_vm3, %v208_v41  ;;  %1335 = vrot.lane.b32.xlu0 %v3244_v62, %s3472_s2  ;;  %v3246_v3 = vpop.eup %3245 }
 0xd69   :  { %v1312_v39 = vadd.f32 1.0, %v3246_v3 }
 0xd6b   :  { %3247 = vrcp.f32 %v1312_v39 }
 0xd6f   :  { %v1339_v35 = vld [vmem:[#allocation6 + $0x28] sm:$0xff] }
 0xd70   :  { %v1340_v22 = vsub.f32 1.0, %v1339_v35 }
 0xd72   :  { %v1346_v28 = vmul.f32 %v1340_v22, %v3951_v40  ;;  %v1349_v60 = vmul.f32 %v1340_v22, %v3956_v61  ;;  %v1600_v40 = vld [vmem:[#allocation3 + $0x10] sm:$0xff]  ;;  %v1596_v22 = vld [vmem:[#allocation3 + $0x8] sm:$0xff] }
 0xd78   :  { %v3248_v42 = vpop.eup %3247 }
 0xdcc   :  { %v1343_v25 = vpop.permute.xlu1 %1342 }
 0xdcd   :  { %v1345_v47 = vmul.f32 %v1343_v25, %v1339_v35 }
 0xdcf   :  { %v1347_v49 = vadd.f32 %v1346_v28, %v1345_v47 }
 0xdd1   :  { %1444 = vrot.lane.b32.xlu1 %v1347_v49, %s3472_s2 }
 0xdd5   :  { %115 = vperm.xlu1 %3175, %v85_v58  }
 0xdda   :  { %v1336_v36 = vpop.permute.xlu0 %1335 }
 0xddb   :  { %v1338_v52 = vmul.f32 %v3248_v42, %v1336_v36 }
 0xddd   :  { %v1348_v50 = vmul.f32 %v1339_v35, %v1338_v52 }
 0xddf   :  { %v4021_v56 = vadd.f32 %v1349_v60, %v1348_v50  ;;  %1351 = vst.msk [vmem:[#allocation3 + $0x28] sm:$0xff] %vm211_vm3, %v1348_v50 }
 0xde1   :  { %3119 = vmatmul.mubr.msk.f32.vlgmr.msra.gmra.mxu0 %vm211_vm3, %v4021_v56 }
 0xde2   :  { %1748 = vmatprep.mubr.f32.mxu0 %v3470_v0 }
 0xde6   :  { %v1601_v63 = vld [vmem:[#allocation3 + $0x28] sm:$0xff] }
 0xde7   :  { %v1602_v55 = vsel %vm202_vm2, %v1600_v40, %v1601_v63  ;;  %v1614_v29 = vsel %vm202_vm2, %v1601_v63, %v1600_v40 }
 0xde8   :  { %1603 = vst.msk [vmem:[#allocation2 + $0x10] sm:$0xff] %vm211_vm3, %v1602_v55  ;;  %1615 = vst.msk [vmem:[#allocation2 + $0x28] sm:$0xff] %vm211_vm3, %v1614_v29 }
 0xea1   :  { %v1423_v61 = vpop.f32.mrf.mxu0 }
 0xea2   :  { %v1428_v43 = vadd.f32 %v1423_v61, %v3752_v57  ;;  %v1445_v57 = vpop.permute.xlu1 %1444 }
 0xea3   :  { %v1425_v51 = vpop.f32.mrf.mxu0 }
 0xea4   :  { %v1429_v5 = vadd.f32 %v1425_v51, %v3754_v48  ;;  %v3120_v7 = vmul.f32 -1.442695, %v1428_v43  ;;  %v95_v43 = vadd.s32 56, %v3721_v30  ;;  %v1647_v51 = vld [vmem:[#allocation10 + $0x78] sm:$0xff] }
 0xea5   :  { %1700 = vmatprep.subr.mxu0 %v1647_v51  ;;  %v4110_v51 = vld [vmem:[#allocation12 + $0x48] sm:$0xff] }
 0xea6   :  { %3249 = vtanh.f32 %v1429_v5  ;;  %v116_v59 = vpop.permute.xlu1 %115  ;;  %v3121_v26 = vmul.f32 -1.442695, %v1429_v5  ;;  %v1828_v5 = vld [vmem:[#allocation10 + $0xf8] sm:$0xff] }
 0xea7   :  { %3251 = vpow2.f32 %v3120_v7  ;;  %vm126_vm15 = vcmp.lt.s32.totalorder %v94_v20, %v116_v59  ;;  %1845 = vmatprep.subr.mxu1 %v1828_v5  ;;  %v1646_v7 = vld [vmem:[#allocation10 + $0x70] sm:$0xff]  ;;  %v1822_v59 = vld [vmem:[#allocation10 + $0xc8] sm:$0xff]  ;;  %v4115_v5 = vld [vmem:[#allocation12 + $0x40] sm:$0xff] }
 0xea8   :  { %v3076_v21 = vsel %vm126_vm15, 1.0, %v3470_v0  ;;  %1701 = vmatpush1.msra.mxu0 %v1646_v7  ;;  %v4122_v7 = vld [vmem:[#allocation12 + $0x38] sm:$0xff] }
 0xeb3   :  { %v3250_v16 = vpop.eup %3249 }
 0xeb4   :  { %1449 = vrot.lane.b32.xlu0 %v3250_v16, %s3472_s2  ;;  %v3252_v8 = vpop.eup %3251 }
 0xeb5   :  { %v1436_v10 = vadd.f32 1.0, %v3252_v8  ;;  %v1827_v8 = vld [vmem:[#allocation10 + $0xf0] sm:$0xff] }
 0xeb7   :  { %3253 = vrcp.f32 %v1436_v10  ;;  %v1645_v10 = vld [vmem:[#allocation10 + $0x68] sm:$0xff] }
 0xeb8   :  { %1702 = vmatprep.subr.mxu0 %v1645_v10  ;;  %v1628_v10 = vld [vmem:[#allocation2 + $0x20] sm:$0xff] }
 0xec4   :  { %v3254_v11 = vpop.eup %3253 }
 0xec5   :  { %v1447_v17 = vmul.f32 %v3254_v11, %v1445_v57  ;;  %v1824_v57 = vld [vmem:[#allocation10 + $0xd8] sm:$0xff] }
 0xf26   :  { %v1450_v12 = vpop.permute.xlu0 %1449 }
 0xf27   :  { %v1452_v14 = vmul.f32 %v3254_v11, %v1450_v12  ;;  %v1826_v11 = vld [vmem:[#allocation10 + $0xe8] sm:$0xff]  ;;  %v1644_v12 = vld [vmem:[#allocation10 + $0x60] sm:$0xff] }
 0xf28   :  { %1703 = vmatpush1.msra.mxu0 %v1644_v12  ;;  %v4139_v12 = vld [vmem:[#allocation12 + $0x20] sm:$0xff] }
 0xf29   :  { %1454 = vrot.lane.b32.xlu0 %v1452_v14, %s3472_s2  ;;  %v1825_v14 = vld [vmem:[#allocation10 + $0xe0] sm:$0xff] }
 0xf2d   :  { %171 = vperm.xlu0 %3176, %v150_v15   ;;  %v1643_v15 = vld [vmem:[#allocation10 + $0x58] sm:$0xff] }
 0xf2e   :  { %1704 = vmatprep.subr.mxu0 %v1643_v15  ;;  %v4146_v15 = vld [vmem:[#allocation12 + $0x18] sm:$0xff] }
 0xf9b   :  { %v1455_v18 = vpop.permute.xlu0 %1454 }
 0xf9c   :  { %v1457_v48 = vadd.f32 %v1455_v18, %v1447_v17  ;;  %v1642_v18 = vld [vmem:[#allocation10 + $0x50] sm:$0xff] }
 0xf9d   :  { %1705 = vmatpush1.msra.mxu0 %v1642_v18  ;;  %v4158_v18 = vld [vmem:[#allocation12 + $0x8] sm:$0xff] }
 0xf9e   :  { %3255 = vtanh.f32 %v1457_v48  ;;  %1467 = vrot.lane.b32.xlu0 %v1457_v48, %s3472_s2  ;;  %v1823_v48 = vld [vmem:[#allocation10 + $0xd0] sm:$0xff] }
 0xf9f   :  { %3257 = vpow2.f32 %v3121_v26 }
 0xfa8   :  { %v172_v1 = vpop.permute.xlu0 %171 }
 0xfa9   :  { %vm182_vm0 = vcmp.ge.s32.totalorder %v94_v20, %v172_v1  ;;  %v1641_v20 = vld [vmem:[#allocation10 + $0x48] sm:$0xff] }
 0xfaa   :  { %v3084_v23 = vsel %vm182_vm0, 1.0, %v3470_v0  ;;  %1706 = vmatprep.subr.mxu0 %v1641_v20 }
 0xfab   :  { %v3256_v24 = vpop.eup %3255  ;;  %v209_v4 = vsel %vm202_vm2, %v3076_v21, %v3084_v23  ;;  %v1640_v23 = vld [vmem:[#allocation10 + $0x40] sm:$0xff] }
 0xfac   :  { %218 = vst.msk [vmem:[#allocation6 + $0x30] sm:$0xff] %vm211_vm3, %v209_v4  ;;  %1460 = vrot.lane.b32.xlu1 %v3256_v24, %s3472_s2  ;;  %v3258_v27 = vpop.eup %3257  ;;  %v1821_v24 = vld [vmem:[#allocation10 + $0xc0] sm:$0xff]  ;;  %v1639_v4 = vld [vmem:[#allocation10 + $0x38] sm:$0xff]  ;;  %1707 = vmatpush1.msra.mxu0 %v1640_v23 }
 0xfad   :  { %v1437_v9 = vadd.f32 1.0, %v3258_v27  ;;  %1708 = vmatprep.subr.mxu0 %v1639_v4 }
 0xfaf   :  { %3259 = vrcp.f32 %v1437_v9  ;;  %v1638_v9 = vld [vmem:[#allocation10 + $0x30] sm:$0xff] }
 0xfb0   :  { %1709 = vmatpush1.msra.mxu0 %v1638_v9 }
 0xfb3   :  { %v1464_v34 = vld [vmem:[#allocation6 + $0x30] sm:$0xff] }
 0xfb4   :  { %v1465_v46 = vsub.f32 1.0, %v1464_v34 }
 0xfb6   :  { %v1471_v19 = vmul.f32 %v1465_v46, %v1347_v49  ;;  %v1474_v35 = vmul.f32 %v1465_v46, %v4021_v56  ;;  %v1819_v46 = vld [vmem:[#allocation10 + $0xb0] sm:$0xff] }
 0xfbc   :  { %v3260_v62 = vpop.eup %3259 }
0x1010   :  { %v1468_v53 = vpop.permute.xlu0 %1467 }
0x1011   :  { %v1470_v32 = vmul.f32 %v1468_v53, %v1464_v34  ;;  %v1637_v53 = vld [vmem:[#allocation10 + $0x28] sm:$0xff] }
0x1012   :  { %1710 = vmatprep.subr.mxu0 %v1637_v53 }
0x1013   :  { %v1472_v45 = vadd.f32 %v1471_v19, %v1470_v32  ;;  %v1818_v19 = vld [vmem:[#allocation10 + $0xa8] sm:$0xff]  ;;  %v1636_v32 = vld [vmem:[#allocation10 + $0x20] sm:$0xff] }
0x1014   :  { %1711 = vmatpush1.msra.mxu0 %v1636_v32 }
0x1015   :  { %1569 = vrot.lane.b32.xlu0 %v1472_v45, %s3472_s2  ;;  %v1635_v45 = vld [vmem:[#allocation10 + $0x18] sm:$0xff] }
0x1016   :  { %1712 = vmatprep.subr.mxu0 %v1635_v45 }
0x1019   :  { %118 = vperm.xlu0 %3176, %v86_v6  }
0x101e   :  { %v1461_v41 = vpop.permute.xlu1 %1460 }
0x101f   :  { %v1463_v38 = vmul.f32 %v3260_v62, %v1461_v41  ;;  %v1634_v62 = vld [vmem:[#allocation10 + $0x10] sm:$0xff] }
0x1020   :  { %v1815_v41 = vld [vmem:[#allocation10 + $0x90] sm:$0xff]  ;;  %1713 = vmatpush1.msra.mxu0 %v1634_v62 }
0x1021   :  { %v1473_v3 = vmul.f32 %v1464_v34, %v1463_v38  ;;  %v1820_v34 = vld [vmem:[#allocation10 + $0xb8] sm:$0xff]  ;;  %v1633_v38 = vld [vmem:[#allocation10 + $0x8] sm:$0xff] }
0x1022   :  { %1714 = vmatprep.subr.mxu0 %v1633_v38 }
0x1023   :  { %v1475_v39 = vadd.f32 %v1474_v35, %v1473_v3  ;;  %1476 = vst.msk [vmem:[#allocation3 + $0x30] sm:$0xff] %vm211_vm3, %v1473_v3  ;;  %v1814_v3 = vld [vmem:[#allocation10 + $0x88] sm:$0xff]  ;;  %v1632_v35 = vld [vmem:[#allocation10] sm:$0xff] }
0x1024   :  { %1715 = vmatpush1.msra.mxu0 %v1632_v35 }
0x1025   :  { %3122 = vmatmul.mubr.msk.f32.vlgmr.msra.gmra.mxu1 %vm211_vm3, %v1475_v39  ;;  %v1813_v39 = vld [vmem:[#allocation10 + $0x80] sm:$0xff] }
0x1026   :  { %1893 = vmatprep.mubr.f32.mxu1 %v3470_v0  ;;  %1846 = vmatpush1.msra.mxu1 %v1827_v8  ;;  %v4127_v8 = vld [vmem:[#allocation12 + $0x30] sm:$0xff] }
0x1027   :  { %1847 = vmatprep.subr.mxu1 %v1826_v11  ;;  %v4134_v11 = vld [vmem:[#allocation12 + $0x28] sm:$0xff] }
0x1028   :  { %1848 = vmatpush1.msra.mxu1 %v1825_v14  ;;  %v1629_v14 = vld [vmem:[#allocation2 + $0x28] sm:$0xff] }
0x1029   :  { %1849 = vmatprep.subr.mxu1 %v1824_v57  ;;  %v4151_v57 = vld [vmem:[#allocation12 + $0x10] sm:$0xff] }
0x102a   :  { %v1597_v25 = vld [vmem:[#allocation3 + $0x30] sm:$0xff]  ;;  %1850 = vmatpush1.msra.mxu1 %v1823_v48  ;;  %v4163_v48 = vld [vmem:[#allocation12] sm:$0xff] }
0x102b   :  { %v1598_v28 = vsel %vm202_vm2, %v1596_v22, %v1597_v25  ;;  %v1618_v47 = vsel %vm202_vm2, %v1597_v25, %v1596_v22  ;;  %1851 = vmatprep.subr.mxu1 %v1822_v59  ;;  %v4073_v22 = vld [vmem:[#allocation12 + $0x78] sm:$0xff]  ;;  %v1648_v59 = vld [vmem:[%s4427_s7] sm:$0x3]  ;;  %s3473_s7 = smov [#allocation13]  }
0x102c   :  { %1599 = vst.msk [vmem:[#allocation2 + $0x8] sm:$0xff] %vm211_vm3, %v1598_v28  ;;  %1619 = vst.msk [vmem:[#allocation2 + $0x30] sm:$0xff] %vm211_vm3, %v1618_v47  ;;  %1852 = vmatpush1.msra.mxu1 %v1821_v24  ;;  %2056 = vmatprep.subr.mxu0 %v4073_v22  ;;  %v1653_v4 = vrot.slane %v1648_v59, %v234_v31  ;;  %s3057_s28 = sshll.u32 %s3473_s7, 4  ;;  %s3058_s28 = int_to_ptr.vmem [resolvable:$true] %s3057_s28 }
0x102d   :  { %1853 = vmatprep.subr.mxu1 %v1820_v34  ;;  %v1657_v34 = vrot.slane %v1648_v59, %v238_v37  ;;  %p3444_p2 = scmp.lt.s32.totalorder %s3058_s28, %s3058_s28 }
0x102e   :  { %1854 = vmatpush1.msra.mxu1 %v1819_v46 }
0x102f   :  { %1855 = vmatprep.subr.mxu1 %v1818_v19 }
0x1030   :  { %1856 = vmatpush1.msra.mxu1 %v1817_v33 }
0x1087   :  { %v1570_v55 = vpop.permute.xlu0 %1569 }
0x1094   :  { %v119_v16 = vpop.permute.xlu0 %118 }
0x1095   :  { %vm127_vm1 = vcmp.lt.s32.totalorder %v95_v43, %v119_v16  ;;  %v1627_v16 = vld [vmem:[#allocation2 + $0x18] sm:$0xff] }
0x1096   :  { %v3077_v1 = vsel %vm127_vm1, 1.0, %v3470_v0 }
0x10e5   :  { %v1548_v54 = vpop.f32.mrf.mxu1 }
0x10e6   :  { %v1553_v49 = vadd.f32 %v1548_v54, %v3756_v2  ;;  %v151_v2 = vsub.s32 64, %v86_v6  ;;  %v1816_v6 = vld [vmem:[#allocation10 + $0x98] sm:$0xff] }
0x10e7   :  { %v1550_v58 = vpop.f32.mrf.mxu1  ;;  %1857 = vmatprep.subr.mxu1 %v1816_v6 }
0x10e8   :  { %v4061_v42 = vadd.f32 %v1550_v58, %v3758_v13  ;;  %v3123_v52 = vmul.f32 -1.442695, %v1553_v49  ;;  %1858 = vmatpush1.msra.mxu1 %v1815_v41 }
0x10e9   :  { %1859 = vmatprep.subr.mxu1 %v1814_v3 }
0x10ea   :  { %3261 = vtanh.f32 %v4061_v42  ;;  %1860 = vmatpush1.msra.mxu1 %v1813_v39  ;;  %v3124_v25 = vmul.f32 -1.442695, %v4061_v42  ;;  %v4085_v42 = vld [vmem:[#allocation12 + $0x70] sm:$0xff] }
0x10eb   :  { %3263 = vpow2.f32 %v3123_v52  ;;  %2176 = vmatprep.subr.mxu1 %v4073_v22 }
0x10f7   :  { %v3262_v36 = vpop.eup %3261 }
0x10f8   :  { %1574 = vrot.lane.b32.xlu1 %v3262_v36, %s3472_s2  ;;  %v3264_v50 = vpop.eup %3263 }
0x10f9   :  { %v1561_v60 = vadd.f32 1.0, %v3264_v50  ;;  %v1592_v50 = vld [vmem:[#allocation3] sm:$0xff] }
0x10fb   :  { %3265 = vrcp.f32 %v1561_v60 }
0x1108   :  { %v3266_v56 = vpop.eup %3265 }
0x1109   :  { %v1572_v13 = vmul.f32 %v3266_v56, %v1570_v55  ;;  %v4091_v55 = vld [vmem:[#allocation12 + $0x60] sm:$0xff] }
0x116a   :  { %v1575_v40 = vpop.permute.xlu1 %1574 }
0x116b   :  { %v1577_v63 = vmul.f32 %v3266_v56, %v1575_v40 }
0x116d   :  { %1579 = vrot.lane.b32.xlu1 %v1577_v63, %s3472_s2 }
0x1171   :  { %174 = vperm.xlu1 %3175, %v151_v2   ;;  %v4087_v2 = vld [vmem:[#allocation12 + $0x68] sm:$0xff] }
0x11df   :  { %v1580_v29 = vpop.permute.xlu1 %1579 }
0x11e0   :  { %v1582_v61 = vadd.f32 %v1580_v29, %v1572_v13  ;;  %v1625_v13 = vld [vmem:[#allocation2 + $0x8] sm:$0xff]  ;;  %v4098_v29 = vld [vmem:[#allocation12 + $0x58] sm:$0xff] }
0x11e2   :  { %3267 = vtanh.f32 %v1582_v61  ;;  %v4103_v61 = vld [vmem:[#allocation12 + $0x50] sm:$0xff] }
0x11e3   :  { %3269 = vpow2.f32 %v3124_v25 }
0x11ec   :  { %v175_v17 = vpop.permute.xlu1 %174 }
0x11ed   :  { %vm183_vm4 = vcmp.ge.s32.totalorder %v95_v43, %v175_v17  ;;  %v1626_v43 = vld [vmem:[#allocation2 + $0x10] sm:$0xff] }
0x11ee   :  { %v3085_v21 = vsel %vm183_vm4, 1.0, %v3470_v0  ;;  %v1630_v17 = vld [vmem:[#allocation2 + $0x30] sm:$0xff] }
0x11ef   :  { %v3268_v26 = vpop.eup %3267  ;;  %v210_v27 = vsel %vm202_vm2, %v3077_v1, %v3085_v21 }
0x11f0   :  { %219 = vst.msk [vmem:[#allocation6 + $0x38] sm:$0xff] %vm211_vm3, %v210_v27  ;;  %1585 = vrot.lane.b32.xlu0 %v3268_v26, %s3472_s2  ;;  %v3270_v28 = vpop.eup %3269 }
0x11f1   :  { %v1562_v47 = vadd.f32 1.0, %v3270_v28 }
0x11f3   :  { %3271 = vrcp.f32 %v1562_v47 }
0x11f7   :  { %v1589_v36 = vld [vmem:[#allocation6 + $0x38] sm:$0xff] }
0x1200   :  { %v3272_v54 = vpop.eup %3271 }
0x1262   :  { %v1586_v49 = vpop.permute.xlu0 %1585 }
0x1263   :  { %v1588_v58 = vmul.f32 %v3272_v54, %v1586_v49 }
0x1265   :  { %v1590_v52 = vmul.f32 %v1589_v36, %v1588_v58 }
0x1267   :  { %1591 = vst.msk [vmem:[#allocation3 + $0x38] sm:$0xff] %vm211_vm3, %v1590_v52 }
0x126e   :  { %v1593_v60 = vld [vmem:[#allocation3 + $0x38] sm:$0xff] }
0x126f   :  { %v1594_v56 = vsel %vm202_vm2, %v1592_v50, %v1593_v60  ;;  %v1622_v40 = vsel %vm202_vm2, %v1593_v60, %v1592_v50 }
0x1270   :  { %1595 = vst.msk [vmem:[#allocation2] sm:$0xff] %vm211_vm3, %v1594_v56  ;;  %1623 = vst.msk [vmem:[#allocation2 + $0x38] sm:$0xff] %vm211_vm3, %v1622_v40 }
0x1277   :  { %v1624_v63 = vld [vmem:[#allocation2] sm:$0xff]  ;;  %v1631_v20 = vld [vmem:[#allocation2 + $0x38] sm:$0xff] }
0x1278   :  { %3125 = vmatmul.mubr.msk.f32.vlgmr.msra.gmra.mxu0 %vm211_vm3, %v1624_v63  ;;  %3133 = vmatmul.mubr.msk.f32.vlgmr.msra.gmra.mxu1 %vm211_vm3, %v1624_v63 }
0x1279   :  { %2057 = vmatpush1.msra.mxu0 %v4085_v42  ;;  %1754 = vmatprep.mubr.f32.mxu0 %v3470_v0 }
0x127a   :  { %1899 = vmatprep.mubr.f32.mxu1 %v3470_v0  ;;  %2058 = vmatprep.subr.mxu0 %v4087_v2 }
0x127b   :  { %2059 = vmatpush1.msra.mxu0 %v4091_v55  ;;  %2177 = vmatpush1.msra.mxu1 %v4085_v42 }
0x127c   :  { %3126 = vmatmul.mubr.msk.f32.gmra.mxu0 %vm211_vm3, %v1625_v13  ;;  %3134 = vmatmul.mubr.msk.f32.gmra.mxu1 %vm211_vm3, %v1625_v13 }
0x127d   :  { %1760 = vmatprep.mubr.f32.mxu0 %v3470_v0  ;;  %1905 = vmatprep.mubr.f32.mxu1 %v3470_v0 }
0x127e   :  { %2060 = vmatprep.subr.mxu0 %v4098_v29  ;;  %2178 = vmatprep.subr.mxu1 %v4087_v2 }
0x127f   :  { %2061 = vmatpush1.msra.mxu0 %v4103_v61  ;;  %2179 = vmatpush1.msra.mxu1 %v4091_v55 }
0x1280   :  { %3127 = vmatmul.mubr.msk.f32.gmra.mxu0 %vm211_vm3, %v1626_v43  ;;  %3135 = vmatmul.mubr.msk.f32.gmra.mxu1 %vm211_vm3, %v1626_v43 }
0x1281   :  { %1766 = vmatprep.mubr.f32.mxu0 %v3470_v0  ;;  %1911 = vmatprep.mubr.f32.mxu1 %v3470_v0 }
0x1282   :  { %2062 = vmatprep.subr.mxu0 %v4110_v51  ;;  %2180 = vmatprep.subr.mxu1 %v4098_v29 }
0x1283   :  { %2063 = vmatpush1.msra.mxu0 %v4115_v5  ;;  %2181 = vmatpush1.msra.mxu1 %v4103_v61 }
0x1284   :  { %3128 = vmatmul.mubr.msk.f32.gmra.mxu0 %vm211_vm3, %v1627_v16  ;;  %3136 = vmatmul.mubr.msk.f32.gmra.mxu1 %vm211_vm3, %v1627_v16 }
0x1285   :  { %1772 = vmatprep.mubr.f32.mxu0 %v3470_v0  ;;  %1917 = vmatprep.mubr.f32.mxu1 %v3470_v0 }
0x1286   :  { %2064 = vmatprep.subr.mxu0 %v4122_v7  ;;  %2182 = vmatprep.subr.mxu1 %v4110_v51 }
0x1287   :  { %2065 = vmatpush1.msra.mxu0 %v4127_v8  ;;  %2183 = vmatpush1.msra.mxu1 %v4115_v5 }
0x1288   :  { %3129 = vmatmul.mubr.msk.f32.gmra.mxu0 %vm211_vm3, %v1628_v10  ;;  %3137 = vmatmul.mubr.msk.f32.gmra.mxu1 %vm211_vm3, %v1628_v10 }
0x1289   :  { %1778 = vmatprep.mubr.f32.mxu0 %v3470_v0  ;;  %1923 = vmatprep.mubr.f32.mxu1 %v3470_v0 }
0x128a   :  { %2066 = vmatprep.subr.mxu0 %v4134_v11  ;;  %2184 = vmatprep.subr.mxu1 %v4122_v7 }
0x128b   :  { %2067 = vmatpush1.msra.mxu0 %v4139_v12  ;;  %2185 = vmatpush1.msra.mxu1 %v4127_v8 }
0x128c   :  { %3130 = vmatmul.mubr.msk.f32.gmra.mxu0 %vm211_vm3, %v1629_v14  ;;  %3138 = vmatmul.mubr.msk.f32.gmra.mxu1 %vm211_vm3, %v1629_v14 }
0x128d   :  { %1784 = vmatprep.mubr.f32.mxu0 %v3470_v0  ;;  %1929 = vmatprep.mubr.f32.mxu1 %v3470_v0 }
0x128e   :  { %2068 = vmatprep.subr.mxu0 %v4146_v15  ;;  %2186 = vmatprep.subr.mxu1 %v4134_v11 }
0x128f   :  { %2069 = vmatpush1.msra.mxu0 %v4151_v57  ;;  %2187 = vmatpush1.msra.mxu1 %v4139_v12 }
0x1290   :  { %3131 = vmatmul.mubr.msk.f32.gmra.mxu0 %vm211_vm3, %v1630_v17  ;;  %3139 = vmatmul.mubr.msk.f32.gmra.mxu1 %vm211_vm3, %v1630_v17 }
0x1291   :  { %1790 = vmatprep.mubr.f32.mxu0 %v3470_v0  ;;  %1935 = vmatprep.mubr.f32.mxu1 %v3470_v0 }
0x1292   :  { %2070 = vmatprep.subr.mxu0 %v4158_v18  ;;  %2188 = vmatprep.subr.mxu1 %v4146_v15 }
0x1293   :  { %2071 = vmatpush1.msra.mxu0 %v4163_v48  ;;  %2189 = vmatpush1.msra.mxu1 %v4151_v57 }
0x1294   :  { %3132 = vmatmul.mubr.msk.f32.gmra.mxu0 %vm211_vm3, %v1631_v20  ;;  %3140 = vmatmul.mubr.msk.f32.gmra.mxu1 %vm211_vm3, %v1631_v20 }
0x1295   :  { %2104 = vmatprep.mubr.f32.mxu0 %v3470_v0  ;;  %2190 = vmatprep.subr.mxu1 %v4158_v18 }
0x1296   :  { %2191 = vmatpush1.msra.mxu1 %v4163_v48  ;;  %2224 = vmatprep.mubr.f32.mxu1 %v3470_v0 }
0x1297   :  { %2301 = vmatprep.subr.mxu0 %v4073_v22  ;;  %2426 = vmatprep.subr.mxu1 %v4073_v22 }
0x1298   :  { %2105 = vmatmul.mubr.f32.vlgmr.msra.gmra.mxu0 %v3470_v0 }
0x1299   :  { %2302 = vmatpush1.msra.mxu0 %v4085_v42  ;;  %2349 = vmatprep.mubr.f32.mxu0 %v3470_v0 }
0x129a   :  { %2303 = vmatprep.subr.mxu0 %v4087_v2 }
0x129b   :  { %2304 = vmatpush1.msra.mxu0 %v4091_v55 }
0x129c   :  { %2305 = vmatprep.subr.mxu0 %v4098_v29 }
0x129d   :  { %2306 = vmatpush1.msra.mxu0 %v4103_v61 }
0x129e   :  { %2307 = vmatprep.subr.mxu0 %v4110_v51 }
0x129f   :  { %2308 = vmatpush1.msra.mxu0 %v4115_v5 }
0x12a0   :  { %2309 = vmatprep.subr.mxu0 %v4122_v7 }
0x12a1   :  { %2310 = vmatpush1.msra.mxu0 %v4127_v8 }
0x12a2   :  { %2311 = vmatprep.subr.mxu0 %v4134_v11 }
0x12a3   :  { %2312 = vmatpush1.msra.mxu0 %v4139_v12 }
0x12a4   :  { %2313 = vmatprep.subr.mxu0 %v4146_v15 }
0x12a5   :  { %2314 = vmatpush1.msra.mxu0 %v4151_v57 }
0x12a6   :  { %2315 = vmatprep.subr.mxu0 %v4158_v18 }
0x12a7   :  { %2316 = vmatpush1.msra.mxu0 %v4163_v48 }
0x12a8   :  { %2551 = vmatprep.subr.mxu0 %v4073_v22 }
0x1338   :  { %v1750_v1 = vpop.f32.mrf.mxu0  ;;  %v1895_v21 = vpop.f32.mrf.mxu1 }
0x133a   :  { %v1752_v23 = vpop.f32.mrf.mxu0  ;;  %v4200_v24 = vpop.f32.mrf.mxu1 }
0x133c   :  { %v1756_v26 = vpop.f32.mrf.mxu0  ;;  %v1901_v27 = vpop.f32.mrf.mxu1 }
0x133d   :  { %v1757_v9 = vadd.f32 %v1756_v26, %v1653_v4 }
0x133e   :  { %v1758_v46 = vpop.f32.mrf.mxu0  ;;  %v1903_v53 = vpop.f32.mrf.mxu1 }
0x133f   :  { %v1759_v19 = vadd.f32 %v1758_v46, %v1657_v34 }
0x1340   :  { %v1762_v32 = vpop.f32.mrf.mxu0  ;;  %v1907_v33 = vpop.f32.mrf.mxu1 }
0x1341   :  { %v1763_v45 = vadd.f32 %v1762_v32, %v1653_v4 }
0x1342   :  { %v1764_v6 = vpop.f32.mrf.mxu0  ;;  %v1909_v62 = vpop.f32.mrf.mxu1 }
0x1343   :  { %v1765_v41 = vadd.f32 %v1764_v6, %v1657_v34 }
0x1344   :  { %v1768_v38 = vpop.f32.mrf.mxu0  ;;  %v1913_v3 = vpop.f32.mrf.mxu1 }
0x1345   :  { %v1769_v35 = vadd.f32 %v1768_v38, %v1653_v4 }
0x1346   :  { %v1770_v39 = vpop.f32.mrf.mxu0  ;;  %v1915_v31 = vpop.f32.mrf.mxu1 }
0x1347   :  { %v1771_v25 = vadd.f32 %v1770_v39, %v1657_v34 }
0x1348   :  { %v1774_v28 = vpop.f32.mrf.mxu0  ;;  %v1919_v47 = vpop.f32.mrf.mxu1 }
0x1349   :  { %v1775_v30 = vadd.f32 %v1774_v28, %v1653_v4  ;;  %v4206_v37 = vadd.f32 %v1919_v47, %v1769_v35 }
0x134a   :  { %v1776_v54 = vpop.f32.mrf.mxu0  ;;  %v1921_v49 = vpop.f32.mrf.mxu1 }
0x134b   :  { %v1777_v58 = vadd.f32 %v1776_v54, %v1657_v34  ;;  %v4208_v36 = vadd.f32 %v1921_v49, %v1771_v25  ;;  %v4210_v52 = vadd.f32 %v1913_v3, %v1775_v30 }
0x134c   :  { %v1780_v50 = vpop.f32.mrf.mxu0  ;;  %v1925_v60 = vpop.f32.mrf.mxu1 }
0x134d   :  { %v1781_v56 = vadd.f32 %v1780_v50, %v1653_v4  ;;  %v4212_v40 = vadd.f32 %v1925_v60, %v1763_v45  ;;  %v4214_v63 = vadd.f32 %v1915_v31, %v1777_v58  ;;  %v1751_v45 = vadd.f32 %v1750_v1, %v1653_v4 }
0x134e   :  { %v1782_v13 = vpop.f32.mrf.mxu0  ;;  %v1927_v43 = vpop.f32.mrf.mxu1 }
0x134f   :  { %v1783_v16 = vadd.f32 %v1782_v13, %v1657_v34  ;;  %v4216_v10 = vadd.f32 %v1927_v43, %v1765_v41  ;;  %v4218_v14 = vadd.f32 %v1907_v33, %v1781_v56 }
0x1350   :  { %v1786_v17 = vpop.f32.mrf.mxu0  ;;  %v1931_v20 = vpop.f32.mrf.mxu1 }
0x1351   :  { %v1787_v59 = vadd.f32 %v1786_v17, %v1653_v4  ;;  %v4220_v26 = vadd.f32 %v1931_v20, %v1757_v9  ;;  %v4222_v46 = vadd.f32 %v1909_v62, %v1783_v16  ;;  %v1753_v9 = vadd.f32 %v1752_v23, %v1657_v34  ;;  %v2143_v20 = vld [vmem:[#allocation6] sm:$0xff] }
0x1352   :  { %v1788_v32 = vpop.f32.mrf.mxu0  ;;  %v1933_v6 = vpop.f32.mrf.mxu1 }
0x1353   :  { %v1789_v38 = vadd.f32 %v1788_v32, %v1657_v34  ;;  %v4224_v3 = vadd.f32 %v1933_v6, %v1759_v19  ;;  %v4226_v35 = vadd.f32 %v1901_v27, %v1787_v59  ;;  %v2144_v32 = vsub.f32 1.0, %v2143_v20 }
0x1354   :  { %v1792_v39 = vpop.f32.mrf.mxu0  ;;  %v1937_v41 = vpop.f32.mrf.mxu1 }
0x1355   :  { %v1793_v31 = vadd.f32 %v1792_v39, %v1653_v4  ;;  %v1962_v33 = vadd.f32 %v1937_v41, %v1751_v45  ;;  %v4228_v25 = vadd.f32 %v1903_v53, %v1789_v38  ;;  %v2150_v45 = vmul.f32 0.0, %v2144_v32 }
0x1356   :  { %v1794_v28 = vpop.f32.mrf.mxu0  ;;  %v1939_v47 = vpop.f32.mrf.mxu1 }
0x1357   :  { %v1795_v30 = vadd.f32 %v1794_v28, %v1657_v34  ;;  %v4230_v62 = vadd.f32 %v1895_v21, %v1793_v31  ;;  %v1963_v49 = vadd.f32 %v1939_v47, %v1753_v9 }
0x1358   :  { %v2106_v54 = vpop.f32.mrf.mxu0 }
0x1359   :  { %v2111_v1 = vadd.f32 %v2106_v54, %v1962_v33  ;;  %v4233_v19 = vadd.f32 %v4200_v24, %v1795_v30 }
0x135a   :  { %v2108_v27 = vpop.f32.mrf.mxu0 }
0x135b   :  { %v2112_v58 = vadd.f32 %v2108_v27, %v1963_v49  ;;  %v3141_v4 = vmul.f32 -1.442695, %v2111_v1 }
0x135d   :  { %3273 = vtanh.f32 %v2112_v58  ;;  %v3142_v16 = vmul.f32 -1.442695, %v2112_v58 }
0x135e   :  { %3275 = vpow2.f32 %v3141_v4 }
0x136a   :  { %v3274_v50 = vpop.eup %3273 }
0x136b   :  { %2128 = vrot.lane.b32.xlu1 %v3274_v50, %s3472_s2  ;;  %v3276_v53 = vpop.eup %3275 }
0x136c   :  { %v2119_v60 = vadd.f32 1.0, %v3276_v53 }
0x136e   :  { %3277 = vrcp.f32 %v2119_v60 }
0x137b   :  { %v3278_v23 = vpop.eup %3277 }
0x137c   :  { %v2126_v56 = vmul.f32 0.0, %v3278_v23 }
0x13dd   :  { %v2129_v21 = vpop.permute.xlu1 %2128 }
0x13de   :  { %v2131_v34 = vmul.f32 %v3278_v23, %v2129_v21 }
0x13e0   :  { %2133 = vrot.lane.b32.xlu0 %v2131_v34, %s3472_s2 }
0x1452   :  { %v2134_v13 = vpop.permute.xlu0 %2133 }
0x1453   :  { %v2136_v24 = vadd.f32 %v2134_v13, %v2126_v56 }
0x1455   :  { %3279 = vtanh.f32 %v2136_v24  ;;  %2146 = vrot.lane.b32.xlu0 %v2136_v24, %s3472_s2  ;;  %v2267_v24 = vld [vmem:[#allocation6 + $0x8] sm:$0xff] }
0x1456   :  { %3281 = vpow2.f32 %v3142_v16  ;;  %v2268_v16 = vsub.f32 1.0, %v2267_v24 }
0x1462   :  { %v3280_v43 = vpop.eup %3279 }
0x1463   :  { %2139 = vrot.lane.b32.xlu1 %v3280_v43, %s3472_s2  ;;  %v3282_v17 = vpop.eup %3281 }
0x1464   :  { %v2120_v59 = vadd.f32 1.0, %v3282_v17 }
0x1466   :  { %3283 = vrcp.f32 %v2120_v59 }
0x1473   :  { %v3284_v41 = vpop.eup %3283 }
0x14c7   :  { %v2147_v6 = vpop.permute.xlu0 %2146 }
0x14c8   :  { %v2149_v38 = vmul.f32 %v2147_v6, %v2143_v20 }
0x14ca   :  { %v2151_v39 = vadd.f32 %v2150_v45, %v2149_v38 }
0x14cc   :  { %2247 = vrot.lane.b32.xlu0 %v2151_v39, %s3472_s2 }
0x14d5   :  { %v2140_v31 = vpop.permute.xlu1 %2139 }
0x14d6   :  { %v2142_v33 = vmul.f32 %v3284_v41, %v2140_v31 }
0x14d8   :  { %v2152_v28 = vmul.f32 %v2143_v20, %v2142_v33  ;;  %v2274_v20 = vmul.f32 %v2268_v16, %v2151_v39 }
0x14da   :  { %v2153_v47 = vadd.f32 %v2152_v28, %v2150_v45  ;;  %2154 = vst.msk [vmem:[#allocation3] sm:$0xff] %vm211_vm3, %v2152_v28 }
0x14dc   :  { %3143 = vmatmul.mubr.msk.f32.vlgmr.msra.gmra.mxu1 %vm211_vm3, %v2153_v47  ;;  %v2277_v41 = vmul.f32 %v2268_v16, %v2153_v47 }
0x14dd   :  { %2427 = vmatpush1.msra.mxu1 %v4085_v42  ;;  %2474 = vmatprep.mubr.f32.mxu1 %v3470_v0 }
0x14de   :  { %2428 = vmatprep.subr.mxu1 %v4087_v2 }
0x14df   :  { %2429 = vmatpush1.msra.mxu1 %v4091_v55 }
0x14e0   :  { %2430 = vmatprep.subr.mxu1 %v4098_v29 }
0x14e1   :  { %2431 = vmatpush1.msra.mxu1 %v4103_v61 }
0x14e2   :  { %2432 = vmatprep.subr.mxu1 %v4110_v51 }
0x14e3   :  { %2433 = vmatpush1.msra.mxu1 %v4115_v5 }
0x14e4   :  { %2434 = vmatprep.subr.mxu1 %v4122_v7 }
0x14e5   :  { %2435 = vmatpush1.msra.mxu1 %v4127_v8 }
0x14e6   :  { %2436 = vmatprep.subr.mxu1 %v4134_v11 }
0x14e7   :  { %2437 = vmatpush1.msra.mxu1 %v4139_v12 }
0x14e8   :  { %2438 = vmatprep.subr.mxu1 %v4146_v15 }
0x14e9   :  { %2439 = vmatpush1.msra.mxu1 %v4151_v57 }
0x14ea   :  { %2440 = vmatprep.subr.mxu1 %v4158_v18 }
0x14eb   :  { %2441 = vmatpush1.msra.mxu1 %v4163_v48 }
0x14ec   :  { %2676 = vmatprep.subr.mxu1 %v4073_v22 }
0x153e   :  { %v2248_v23 = vpop.permute.xlu0 %2247 }
0x159c   :  { %v2226_v9 = vpop.f32.mrf.mxu1 }
0x159d   :  { %v2231_v30 = vadd.f32 %v2226_v9, %v4220_v26 }
0x159e   :  { %v2228_v54 = vpop.f32.mrf.mxu1 }
0x159f   :  { %v2232_v49 = vadd.f32 %v2228_v54, %v4224_v3  ;;  %v3144_v27 = vmul.f32 -1.442695, %v2231_v30 }
0x15a1   :  { %3285 = vtanh.f32 %v2232_v49  ;;  %v3145_v56 = vmul.f32 -1.442695, %v2232_v49 }
0x15a2   :  { %3287 = vpow2.f32 %v3144_v27 }
0x15ae   :  { %v3286_v1 = vpop.eup %3285 }
0x15af   :  { %2252 = vrot.lane.b32.xlu1 %v3286_v1, %s3472_s2  ;;  %v3288_v58 = vpop.eup %3287 }
0x15b0   :  { %v2239_v50 = vadd.f32 1.0, %v3288_v58 }
0x15b2   :  { %3289 = vrcp.f32 %v2239_v50 }
0x15bf   :  { %v3290_v4 = vpop.eup %3289 }
0x15c0   :  { %v2250_v21 = vmul.f32 %v3290_v4, %v2248_v23 }
0x1621   :  { %v2253_v53 = vpop.permute.xlu1 %2252 }
0x1622   :  { %v2255_v60 = vmul.f32 %v3290_v4, %v2253_v53 }
0x1624   :  { %2257 = vrot.lane.b32.xlu1 %v2255_v60, %s3472_s2 }
0x1696   :  { %v2258_v26 = vpop.permute.xlu1 %2257 }
0x1697   :  { %v2260_v34 = vadd.f32 %v2258_v26, %v2250_v21  ;;  %v2392_v26 = vld [vmem:[#allocation6 + $0x10] sm:$0xff] }
0x1699   :  { %3291 = vtanh.f32 %v2260_v34  ;;  %2270 = vrot.lane.b32.xlu1 %v2260_v34, %s3472_s2 }
0x169a   :  { %3293 = vpow2.f32 %v3145_v56 }
0x16a6   :  { %v3292_v3 = vpop.eup %3291 }
0x16a7   :  { %2263 = vrot.lane.b32.xlu0 %v3292_v3, %s3472_s2  ;;  %v3294_v13 = vpop.eup %3293  ;;  %v2393_v3 = vsub.f32 1.0, %v2392_v26 }
0x16a8   :  { %v2240_v43 = vadd.f32 1.0, %v3294_v13 }
0x16aa   :  { %3295 = vrcp.f32 %v2240_v43 }
0x16b7   :  { %v3296_v6 = vpop.eup %3295 }
0x170b   :  { %v2271_v17 = vpop.permute.xlu1 %2270 }
0x170c   :  { %v2273_v59 = vmul.f32 %v2271_v17, %v2267_v24 }
0x170e   :  { %v2275_v32 = vadd.f32 %v2274_v20, %v2273_v59 }
0x1710   :  { %2372 = vrot.lane.b32.xlu1 %v2275_v32, %s3472_s2  ;;  %v2399_v13 = vmul.f32 %v2393_v3, %v2275_v32 }
0x1719   :  { %v2264_v45 = vpop.permute.xlu0 %2263 }
0x171a   :  { %v2266_v38 = vmul.f32 %v3296_v6, %v2264_v45 }
0x171c   :  { %v2276_v31 = vmul.f32 %v2267_v24, %v2266_v38 }
0x171e   :  { %v2278_v33 = vadd.f32 %v2277_v41, %v2276_v31  ;;  %2279 = vst.msk [vmem:[#allocation3 + $0x8] sm:$0xff] %vm211_vm3, %v2276_v31 }
0x1720   :  { %3146 = vmatmul.mubr.msk.f32.vlgmr.msra.gmra.mxu0 %vm211_vm3, %v2278_v33  ;;  %v2402_v59 = vmul.f32 %v2393_v3, %v2278_v33 }
0x1721   :  { %2552 = vmatpush1.msra.mxu0 %v4085_v42  ;;  %2599 = vmatprep.mubr.f32.mxu0 %v3470_v0 }
0x1722   :  { %2553 = vmatprep.subr.mxu0 %v4087_v2 }
0x1723   :  { %2554 = vmatpush1.msra.mxu0 %v4091_v55 }
0x1724   :  { %2555 = vmatprep.subr.mxu0 %v4098_v29 }
0x1725   :  { %2556 = vmatpush1.msra.mxu0 %v4103_v61 }
0x1726   :  { %2557 = vmatprep.subr.mxu0 %v4110_v51 }
0x1727   :  { %2558 = vmatpush1.msra.mxu0 %v4115_v5 }
0x1728   :  { %2559 = vmatprep.subr.mxu0 %v4122_v7 }
0x1729   :  { %2560 = vmatpush1.msra.mxu0 %v4127_v8 }
0x172a   :  { %2561 = vmatprep.subr.mxu0 %v4134_v11 }
0x172b   :  { %2562 = vmatpush1.msra.mxu0 %v4139_v12 }
0x172c   :  { %2563 = vmatprep.subr.mxu0 %v4146_v15 }
0x172d   :  { %2564 = vmatpush1.msra.mxu0 %v4151_v57 }
0x172e   :  { %2565 = vmatprep.subr.mxu0 %v4158_v18 }
0x172f   :  { %2566 = vmatpush1.msra.mxu0 %v4163_v48 }
0x1730   :  { %2801 = vmatprep.subr.mxu0 %v4073_v22 }
0x1782   :  { %v2373_v4 = vpop.permute.xlu1 %2372 }
0x17e0   :  { %v2351_v39 = vpop.f32.mrf.mxu0 }
0x17e1   :  { %v2356_v28 = vadd.f32 %v2351_v39, %v4212_v40 }
0x17e2   :  { %v2353_v47 = vpop.f32.mrf.mxu0 }
0x17e3   :  { %v2357_v9 = vadd.f32 %v2353_v47, %v4216_v10  ;;  %v3147_v54 = vmul.f32 -1.442695, %v2356_v28 }
0x17e5   :  { %3297 = vtanh.f32 %v2357_v9  ;;  %v3148_v23 = vmul.f32 -1.442695, %v2357_v9 }
0x17e6   :  { %3299 = vpow2.f32 %v3147_v54 }
0x17f2   :  { %v3298_v30 = vpop.eup %3297 }
0x17f3   :  { %2377 = vrot.lane.b32.xlu0 %v3298_v30, %s3472_s2  ;;  %v3300_v49 = vpop.eup %3299 }
0x17f4   :  { %v2364_v1 = vadd.f32 1.0, %v3300_v49 }
0x17f6   :  { %3301 = vrcp.f32 %v2364_v1 }
0x1803   :  { %v3302_v27 = vpop.eup %3301 }
0x1804   :  { %v2375_v53 = vmul.f32 %v3302_v27, %v2373_v4 }
0x1865   :  { %v2378_v58 = vpop.permute.xlu0 %2377 }
0x1866   :  { %v2380_v50 = vmul.f32 %v3302_v27, %v2378_v58 }
0x1868   :  { %2382 = vrot.lane.b32.xlu0 %v2380_v50, %s3472_s2  ;;  %v2517_v50 = vld [vmem:[#allocation6 + $0x18] sm:$0xff] }
0x18da   :  { %v2383_v40 = vpop.permute.xlu0 %2382 }
0x18db   :  { %v2385_v60 = vadd.f32 %v2383_v40, %v2375_v53  ;;  %v2518_v53 = vsub.f32 1.0, %v2517_v50 }
0x18dd   :  { %3303 = vtanh.f32 %v2385_v60  ;;  %2395 = vrot.lane.b32.xlu0 %v2385_v60, %s3472_s2 }
0x18de   :  { %3305 = vpow2.f32 %v3148_v23 }
0x18ea   :  { %v3304_v10 = vpop.eup %3303 }
0x18eb   :  { %2388 = vrot.lane.b32.xlu1 %v3304_v10, %s3472_s2  ;;  %v3306_v21 = vpop.eup %3305 }
0x18ec   :  { %v2365_v34 = vadd.f32 1.0, %v3306_v21 }
0x18ee   :  { %3307 = vrcp.f32 %v2365_v34 }
0x18fb   :  { %v3308_v16 = vpop.eup %3307 }
0x194f   :  { %v2396_v56 = vpop.permute.xlu0 %2395 }
0x1950   :  { %v2398_v24 = vmul.f32 %v2396_v56, %v2392_v26 }
0x1952   :  { %v2400_v43 = vadd.f32 %v2399_v13, %v2398_v24 }
0x1954   :  { %2497 = vrot.lane.b32.xlu0 %v2400_v43, %s3472_s2  ;;  %v2524_v60 = vmul.f32 %v2518_v53, %v2400_v43 }
0x195d   :  { %v2389_v17 = vpop.permute.xlu1 %2388 }
0x195e   :  { %v2391_v20 = vmul.f32 %v3308_v16, %v2389_v17 }
0x1960   :  { %v2401_v6 = vmul.f32 %v2392_v26, %v2391_v20 }
0x1962   :  { %v2403_v45 = vadd.f32 %v2402_v59, %v2401_v6  ;;  %2404 = vst.msk [vmem:[#allocation3 + $0x10] sm:$0xff] %vm211_vm3, %v2401_v6 }
0x1964   :  { %3149 = vmatmul.mubr.msk.f32.vlgmr.msra.gmra.mxu1 %vm211_vm3, %v2403_v45  ;;  %v2527_v3 = vmul.f32 %v2518_v53, %v2403_v45 }
0x1965   :  { %2677 = vmatpush1.msra.mxu1 %v4085_v42  ;;  %2724 = vmatprep.mubr.f32.mxu1 %v3470_v0 }
0x1966   :  { %2678 = vmatprep.subr.mxu1 %v4087_v2 }
0x1967   :  { %2679 = vmatpush1.msra.mxu1 %v4091_v55 }
0x1968   :  { %2680 = vmatprep.subr.mxu1 %v4098_v29 }
0x1969   :  { %2681 = vmatpush1.msra.mxu1 %v4103_v61 }
0x196a   :  { %2682 = vmatprep.subr.mxu1 %v4110_v51 }
0x196b   :  { %2683 = vmatpush1.msra.mxu1 %v4115_v5 }
0x196c   :  { %2684 = vmatprep.subr.mxu1 %v4122_v7 }
0x196d   :  { %2685 = vmatpush1.msra.mxu1 %v4127_v8 }
0x196e   :  { %2686 = vmatprep.subr.mxu1 %v4134_v11 }
0x196f   :  { %2687 = vmatpush1.msra.mxu1 %v4139_v12 }
0x1970   :  { %2688 = vmatprep.subr.mxu1 %v4146_v15 }
0x1971   :  { %2689 = vmatpush1.msra.mxu1 %v4151_v57 }
0x1972   :  { %2690 = vmatprep.subr.mxu1 %v4158_v18 }
0x1973   :  { %2691 = vmatpush1.msra.mxu1 %v4163_v48 }
0x1974   :  { %2926 = vmatprep.subr.mxu1 %v4073_v22 }
0x19c6   :  { %v2498_v22 = vpop.permute.xlu0 %2497 }
0x1a24   :  { %v2476_v32 = vpop.f32.mrf.mxu1 }
0x1a25   :  { %v2481_v38 = vadd.f32 %v2476_v32, %v4206_v37 }
0x1a26   :  { %v2478_v41 = vpop.f32.mrf.mxu1 }
0x1a27   :  { %v2482_v31 = vadd.f32 %v2478_v41, %v4208_v36  ;;  %v3150_v39 = vmul.f32 -1.442695, %v2481_v38 }
0x1a29   :  { %3309 = vtanh.f32 %v2482_v31  ;;  %v3151_v27 = vmul.f32 -1.442695, %v2482_v31 }
0x1a2a   :  { %3311 = vpow2.f32 %v3150_v39 }
0x1a36   :  { %v3310_v33 = vpop.eup %3309 }
0x1a37   :  { %2502 = vrot.lane.b32.xlu1 %v3310_v33, %s3472_s2  ;;  %v3312_v28 = vpop.eup %3311 }
0x1a38   :  { %v2489_v47 = vadd.f32 1.0, %v3312_v28 }
0x1a3a   :  { %3313 = vrcp.f32 %v2489_v47 }
0x1a47   :  { %v3314_v9 = vpop.eup %3313 }
0x1a48   :  { %v2500_v49 = vmul.f32 %v3314_v9, %v2498_v22 }
0x1aa9   :  { %v2503_v30 = vpop.permute.xlu1 %2502 }
0x1aaa   :  { %v2505_v54 = vmul.f32 %v3314_v9, %v2503_v30  ;;  %v2642_v9 = vld [vmem:[#allocation6 + $0x20] sm:$0xff] }
0x1aac   :  { %2507 = vrot.lane.b32.xlu1 %v2505_v54, %s3472_s2  ;;  %v2643_v54 = vsub.f32 1.0, %v2642_v9 }
0x1b1e   :  { %v2508_v37 = vpop.permute.xlu1 %2507 }
0x1b1f   :  { %v2510_v1 = vadd.f32 %v2508_v37, %v2500_v49 }
0x1b21   :  { %3315 = vtanh.f32 %v2510_v1  ;;  %2520 = vrot.lane.b32.xlu1 %v2510_v1, %s3472_s2 }
0x1b22   :  { %3317 = vpow2.f32 %v3151_v27 }
0x1b2e   :  { %v3316_v36 = vpop.eup %3315 }
0x1b2f   :  { %2513 = vrot.lane.b32.xlu0 %v3316_v36, %s3472_s2  ;;  %v3318_v58 = vpop.eup %3317 }
0x1b30   :  { %v2490_v4 = vadd.f32 1.0, %v3318_v58 }
0x1b32   :  { %3319 = vrcp.f32 %v2490_v4 }
0x1b3f   :  { %v3320_v21 = vpop.eup %3319 }
0x1b93   :  { %v2521_v40 = vpop.permute.xlu1 %2520 }
0x1b94   :  { %v2523_v10 = vmul.f32 %v2521_v40, %v2517_v50 }
0x1b96   :  { %v2525_v23 = vadd.f32 %v2524_v60, %v2523_v10 }
0x1b98   :  { %2622 = vrot.lane.b32.xlu1 %v2525_v23, %s3472_s2  ;;  %v2649_v49 = vmul.f32 %v2643_v54, %v2525_v23 }
0x1ba1   :  { %v2514_v26 = vpop.permute.xlu0 %2513 }
0x1ba2   :  { %v2516_v34 = vmul.f32 %v3320_v21, %v2514_v26  ;;  %v2767_v21 = vld [vmem:[#allocation6 + $0x28] sm:$0xff] }
0x1ba4   :  { %v2526_v56 = vmul.f32 %v2517_v50, %v2516_v34  ;;  %v2768_v34 = vsub.f32 1.0, %v2767_v21 }
0x1ba6   :  { %v2528_v13 = vadd.f32 %v2527_v3, %v2526_v56  ;;  %2529 = vst.msk [vmem:[#allocation3 + $0x18] sm:$0xff] %vm211_vm3, %v2526_v56 }
0x1ba8   :  { %3152 = vmatmul.mubr.msk.f32.vlgmr.msra.gmra.mxu0 %vm211_vm3, %v2528_v13  ;;  %v2652_v50 = vmul.f32 %v2643_v54, %v2528_v13 }
0x1ba9   :  { %2802 = vmatpush1.msra.mxu0 %v4085_v42  ;;  %2849 = vmatprep.mubr.f32.mxu0 %v3470_v0 }
0x1baa   :  { %2803 = vmatprep.subr.mxu0 %v4087_v2 }
0x1bab   :  { %2804 = vmatpush1.msra.mxu0 %v4091_v55 }
0x1bac   :  { %2805 = vmatprep.subr.mxu0 %v4098_v29 }
0x1bad   :  { %2806 = vmatpush1.msra.mxu0 %v4103_v61  ;;  %v3032_v40 = vld [vmem:[#allocation3 + $0x18] sm:$0xff] }
0x1bae   :  { %2807 = vmatprep.subr.mxu0 %v4110_v51 }
0x1baf   :  { %2808 = vmatpush1.msra.mxu0 %v4115_v5 }
0x1bb0   :  { %2809 = vmatprep.subr.mxu0 %v4122_v7 }
0x1bb1   :  { %2810 = vmatpush1.msra.mxu0 %v4127_v8 }
0x1bb2   :  { %2811 = vmatprep.subr.mxu0 %v4134_v11 }
0x1bb3   :  { %2812 = vmatpush1.msra.mxu0 %v4139_v12 }
0x1bb4   :  { %2813 = vmatprep.subr.mxu0 %v4146_v15 }
0x1bb5   :  { %2814 = vmatpush1.msra.mxu0 %v4151_v57 }
0x1bb6   :  { %2815 = vmatprep.subr.mxu0 %v4158_v18 }
0x1bb7   :  { %2816 = vmatpush1.msra.mxu0 %v4163_v48 }
0x1c0a   :  { %v2623_v31 = vpop.permute.xlu1 %2622 }
0x1c68   :  { %v2601_v24 = vpop.f32.mrf.mxu0 }
0x1c69   :  { %v2606_v43 = vadd.f32 %v2601_v24, %v4210_v52 }
0x1c6a   :  { %v2603_v16 = vpop.f32.mrf.mxu0 }
0x1c6b   :  { %v2607_v17 = vadd.f32 %v2603_v16, %v4214_v63  ;;  %v3153_v59 = vmul.f32 -1.442695, %v2606_v43 }
0x1c6d   :  { %3321 = vtanh.f32 %v2607_v17  ;;  %v3154_v28 = vmul.f32 -1.442695, %v2607_v17 }
0x1c6e   :  { %3323 = vpow2.f32 %v3153_v59 }
0x1c7a   :  { %v3322_v20 = vpop.eup %3321 }
0x1c7b   :  { %2627 = vrot.lane.b32.xlu0 %v3322_v20, %s3472_s2  ;;  %v3324_v6 = vpop.eup %3323 }
0x1c7c   :  { %v2614_v45 = vadd.f32 1.0, %v3324_v6 }
0x1c7e   :  { %3325 = vrcp.f32 %v2614_v45  ;;  %v3028_v45 = vld [vmem:[#allocation3 + $0x10] sm:$0xff] }
0x1c8b   :  { %v3326_v32 = vpop.eup %3325 }
0x1c8c   :  { %v2625_v33 = vmul.f32 %v3326_v32, %v2623_v31 }
0x1ced   :  { %v2628_v38 = vpop.permute.xlu0 %2627 }
0x1cee   :  { %v2630_v41 = vmul.f32 %v3326_v32, %v2628_v38 }
0x1cf0   :  { %2632 = vrot.lane.b32.xlu0 %v2630_v41, %s3472_s2 }
0x1d62   :  { %v2633_v52 = vpop.permute.xlu0 %2632 }
0x1d63   :  { %v2635_v39 = vadd.f32 %v2633_v52, %v2625_v33 }
0x1d65   :  { %3327 = vtanh.f32 %v2635_v39  ;;  %2645 = vrot.lane.b32.xlu0 %v2635_v39, %s3472_s2 }
0x1d66   :  { %3329 = vpow2.f32 %v3154_v28 }
0x1d72   :  { %v3328_v63 = vpop.eup %3327 }
0x1d73   :  { %2638 = vrot.lane.b32.xlu1 %v3328_v63, %s3472_s2  ;;  %v3330_v47 = vpop.eup %3329 }
0x1d74   :  { %v2615_v30 = vadd.f32 1.0, %v3330_v47 }
0x1d76   :  { %3331 = vrcp.f32 %v2615_v30 }
0x1d83   :  { %v3332_v36 = vpop.eup %3331 }
0x1dd7   :  { %v2646_v22 = vpop.permute.xlu0 %2645 }
0x1dd8   :  { %v2648_v37 = vmul.f32 %v2646_v22, %v2642_v9 }
0x1dda   :  { %v4342_v1 = vadd.f32 %v2649_v49, %v2648_v37 }
0x1ddc   :  { %2747 = vrot.lane.b32.xlu0 %v4342_v1, %s3472_s2  ;;  %v2774_v56 = vmul.f32 %v2768_v34, %v4342_v1 }
0x1de5   :  { %v2639_v27 = vpop.permute.xlu1 %2638 }
0x1de6   :  { %v2641_v58 = vmul.f32 %v3332_v36, %v2639_v27 }
0x1de8   :  { %v2651_v4 = vmul.f32 %v2642_v9, %v2641_v58  ;;  %v2892_v58 = vld [vmem:[#allocation6 + $0x30] sm:$0xff] }
0x1dea   :  { %v4346_v53 = vadd.f32 %v2652_v50, %v2651_v4  ;;  %2654 = vst.msk [vmem:[#allocation3 + $0x20] sm:$0xff] %vm211_vm3, %v2651_v4  ;;  %v2893_v4 = vsub.f32 1.0, %v2892_v58 }
0x1dec   :  { %3155 = vmatmul.mubr.msk.f32.vlgmr.msra.gmra.mxu1 %vm211_vm3, %v4346_v53  ;;  %v2777_v20 = vmul.f32 %v2768_v34, %v4346_v53 }
0x1ded   :  { %2927 = vmatpush1.msra.mxu1 %v4085_v42  ;;  %2974 = vmatprep.mubr.f32.mxu1 %v3470_v0 }
0x1dee   :  { %2928 = vmatprep.subr.mxu1 %v4087_v2 }
0x1def   :  { %2929 = vmatpush1.msra.mxu1 %v4091_v55 }
0x1df0   :  { %2930 = vmatprep.subr.mxu1 %v4098_v29 }
0x1df1   :  { %2931 = vmatpush1.msra.mxu1 %v4103_v61  ;;  %v3033_v60 = vld [vmem:[#allocation3 + $0x20] sm:$0xff] }
0x1df2   :  { %2932 = vmatprep.subr.mxu1 %v4110_v51  ;;  %v3034_v10 = vsel %vm202_vm2, %v3032_v40, %v3033_v60  ;;  %v3038_v42 = vsel %vm202_vm2, %v3033_v60, %v3032_v40 }
0x1df3   :  { %2933 = vmatpush1.msra.mxu1 %v4115_v5  ;;  %3035 = vst.msk [vmem:[#allocation13 + $0x18] sm:$0xff] %vm211_vm3, %v3034_v10  ;;  %3039 = vst.msk [vmem:[#allocation13 + $0x20] sm:$0xff] %vm211_vm3, %v3038_v42 }
0x1df4   :  { %2934 = vmatprep.subr.mxu1 %v4122_v7 }
0x1df5   :  { %2935 = vmatpush1.msra.mxu1 %v4127_v8 }
0x1df6   :  { %2936 = vmatprep.subr.mxu1 %v4134_v11 }
0x1df7   :  { %2937 = vmatpush1.msra.mxu1 %v4139_v12 }
0x1df8   :  { %2938 = vmatprep.subr.mxu1 %v4146_v15 }
0x1df9   :  { %2939 = vmatpush1.msra.mxu1 %v4151_v57 }
0x1dfa   :  { %2940 = vmatprep.subr.mxu1 %v4158_v18 }
0x1dfb   :  { %2941 = vmatpush1.msra.mxu1 %v4163_v48 }
0x1e4e   :  { %v2748_v15 = vpop.permute.xlu0 %2747 }
0x1eac   :  { %v2726_v0 = vpop.f32.mrf.mxu1 }
0x1ead   :  { %v2731_v2 = vadd.f32 %v2726_v0, %v4218_v14 }
0x1eae   :  { %v2728_v55 = vpop.f32.mrf.mxu1 }
0x1eaf   :  { %v2732_v29 = vadd.f32 %v2728_v55, %v4222_v46  ;;  %v3156_v51 = vmul.f32 -1.442695, %v2731_v2 }
0x1eb1   :  { %3333 = vtanh.f32 %v2732_v29  ;;  %v3157_v46 = vmul.f32 -1.442695, %v2732_v29 }
0x1eb2   :  { %3335 = vpow2.f32 %v3156_v51  ;;  %v3024_v51 = vld [vmem:[#allocation3 + $0x8] sm:$0xff] }
0x1ebe   :  { %v3334_v61 = vpop.eup %3333 }
0x1ebf   :  { %2752 = vrot.lane.b32.xlu1 %v3334_v61, %s3472_s2  ;;  %v3336_v5 = vpop.eup %3335 }
0x1ec0   :  { %v2739_v7 = vadd.f32 1.0, %v3336_v5 }
0x1ec2   :  { %3337 = vrcp.f32 %v2739_v7 }
0x1ecf   :  { %v3338_v8 = vpop.eup %3337 }
0x1ed0   :  { %v2750_v57 = vmul.f32 %v3338_v8, %v2748_v15 }
0x1f31   :  { %v2753_v11 = vpop.permute.xlu1 %2752 }
0x1f32   :  { %v2755_v12 = vmul.f32 %v3338_v8, %v2753_v11 }
0x1f34   :  { %2757 = vrot.lane.b32.xlu1 %v2755_v12, %s3472_s2 }
0x1fa6   :  { %v2758_v18 = vpop.permute.xlu1 %2757 }
0x1fa7   :  { %v2760_v48 = vadd.f32 %v2758_v18, %v2750_v57 }
0x1fa9   :  { %3339 = vtanh.f32 %v2760_v48  ;;  %2770 = vrot.lane.b32.xlu1 %v2760_v48, %s3472_s2 }
0x1faa   :  { %3341 = vpow2.f32 %v3157_v46 }
0x1fb6   :  { %v3340_v14 = vpop.eup %3339 }
0x1fb7   :  { %2763 = vrot.lane.b32.xlu0 %v3340_v14, %s3472_s2  ;;  %v3342_v23 = vpop.eup %3341 }
0x1fb8   :  { %v2740_v26 = vadd.f32 1.0, %v3342_v23 }
0x1fba   :  { %3343 = vrcp.f32 %v2740_v26 }
0x1fc7   :  { %v3344_v43 = vpop.eup %3343 }
0x201b   :  { %v2771_v3 = vpop.permute.xlu1 %2770 }
0x201c   :  { %v2773_v13 = vmul.f32 %v2771_v3, %v2767_v21 }
0x201e   :  { %v2775_v24 = vadd.f32 %v2774_v56, %v2773_v13 }
0x2020   :  { %2872 = vrot.lane.b32.xlu1 %v2775_v24, %s3472_s2  ;;  %v2899_v40 = vmul.f32 %v2893_v4, %v2775_v24 }
0x2029   :  { %v2764_v16 = vpop.permute.xlu0 %2763 }
0x202a   :  { %v2766_v17 = vmul.f32 %v3344_v43, %v2764_v16 }
0x202c   :  { %v2776_v59 = vmul.f32 %v2767_v21, %v2766_v17 }
0x202e   :  { %v2778_v6 = vadd.f32 %v2777_v20, %v2776_v59  ;;  %2779 = vst.msk [vmem:[#allocation3 + $0x28] sm:$0xff] %vm211_vm3, %v2776_v59  ;;  %v3017_v59 = vld [vmem:[#allocation6 + $0x38] sm:$0xff] }
0x2030   :  { %3158 = vmatmul.mubr.msk.f32.vlgmr.msra.gmra.mxu0 %vm211_vm3, %v2778_v6  ;;  %v2902_v55 = vmul.f32 %v2893_v4, %v2778_v6 }
0x2035   :  { %v3029_v32 = vld [vmem:[#allocation3 + $0x28] sm:$0xff] }
0x2036   :  { %v3030_v38 = vsel %vm202_vm2, %v3028_v45, %v3029_v32  ;;  %v3042_v41 = vsel %vm202_vm2, %v3029_v32, %v3028_v45  ;;  %v3020_v45 = vld [vmem:[#allocation3] sm:$0xff] }
0x2037   :  { %3031 = vst.msk [vmem:[#allocation13 + $0x10] sm:$0xff] %vm211_vm3, %v3030_v38  ;;  %3043 = vst.msk [vmem:[#allocation13 + $0x28] sm:$0xff] %vm211_vm3, %v3042_v41 }
0x2092   :  { %v2873_v49 = vpop.permute.xlu1 %2872 }
0x20f0   :  { %v2851_v31 = vpop.f32.mrf.mxu0 }
0x20f1   :  { %v2856_v33 = vadd.f32 %v2851_v31, %v4226_v35 }
0x20f2   :  { %v2853_v52 = vpop.f32.mrf.mxu0 }
0x20f3   :  { %v2857_v39 = vadd.f32 %v2853_v52, %v4228_v25  ;;  %v3159_v28 = vmul.f32 -1.442695, %v2856_v33 }
0x20f5   :  { %3345 = vtanh.f32 %v2857_v39  ;;  %v3160_v36 = vmul.f32 -1.442695, %v2857_v39 }
0x20f6   :  { %3347 = vpow2.f32 %v3159_v28 }
0x2102   :  { %v3346_v63 = vpop.eup %3345 }
0x2103   :  { %2877 = vrot.lane.b32.xlu0 %v3346_v63, %s3472_s2  ;;  %v3348_v47 = vpop.eup %3347 }
0x2104   :  { %v2864_v9 = vadd.f32 1.0, %v3348_v47 }
0x2106   :  { %3349 = vrcp.f32 %v2864_v9 }
0x2113   :  { %v3350_v30 = vpop.eup %3349 }
0x2114   :  { %v2875_v37 = vmul.f32 %v3350_v30, %v2873_v49 }
0x2175   :  { %v2878_v54 = vpop.permute.xlu0 %2877 }
0x2176   :  { %v2880_v22 = vmul.f32 %v3350_v30, %v2878_v54 }
0x2178   :  { %2882 = vrot.lane.b32.xlu0 %v2880_v22, %s3472_s2 }
0x21ea   :  { %v2883_v35 = vpop.permute.xlu0 %2882 }
0x21eb   :  { %v2885_v1 = vadd.f32 %v2883_v35, %v2875_v37 }
0x21ed   :  { %3351 = vtanh.f32 %v2885_v1  ;;  %2895 = vrot.lane.b32.xlu0 %v2885_v1, %s3472_s2 }
0x21ee   :  { %3353 = vpow2.f32 %v3160_v36 }
0x21fa   :  { %v3352_v25 = vpop.eup %3351 }
0x21fb   :  { %2888 = vrot.lane.b32.xlu1 %v3352_v25, %s3472_s2  ;;  %v3354_v27 = vpop.eup %3353 }
0x21fc   :  { %v2865_v50 = vadd.f32 1.0, %v3354_v27 }
0x21fe   :  { %3355 = vrcp.f32 %v2865_v50 }
0x220b   :  { %v3356_v42 = vpop.eup %3355 }
0x225f   :  { %v2896_v53 = vpop.permute.xlu0 %2895 }
0x2260   :  { %v2898_v60 = vmul.f32 %v2896_v53, %v2892_v58 }
0x2262   :  { %v2900_v10 = vadd.f32 %v2899_v40, %v2898_v60 }
0x2264   :  { %2997 = vrot.lane.b32.xlu0 %v2900_v10, %s3472_s2 }
0x226d   :  { %v2889_v0 = vpop.permute.xlu1 %2888 }
0x226e   :  { %v2891_v2 = vmul.f32 %v3356_v42, %v2889_v0 }
0x2270   :  { %v2901_v29 = vmul.f32 %v2892_v58, %v2891_v2 }
0x2272   :  { %v2903_v61 = vadd.f32 %v2902_v55, %v2901_v29  ;;  %2904 = vst.msk [vmem:[#allocation3 + $0x30] sm:$0xff] %vm211_vm3, %v2901_v29 }
0x2274   :  { %3161 = vmatmul.mubr.msk.f32.vlgmr.msra.gmra.mxu1 %vm211_vm3, %v2903_v61 }
0x2279   :  { %v3025_v5 = vld [vmem:[#allocation3 + $0x30] sm:$0xff] }
0x227a   :  { %v3026_v7 = vsel %vm202_vm2, %v3024_v51, %v3025_v5  ;;  %v3046_v8 = vsel %vm202_vm2, %v3025_v5, %v3024_v51 }
0x227b   :  { %3027 = vst.msk [vmem:[#allocation13 + $0x8] sm:$0xff] %vm211_vm3, %v3026_v7  ;;  %3047 = vst.msk [vmem:[#allocation13 + $0x30] sm:$0xff] %vm211_vm3, %v3046_v8 }
0x22d6   :  { %v2998_v34 = vpop.permute.xlu0 %2997 }
0x2334   :  { %v2976_v11 = vpop.f32.mrf.mxu1 }
0x2335   :  { %v2981_v12 = vadd.f32 %v2976_v11, %v4230_v62 }
0x2336   :  { %v2978_v15 = vpop.f32.mrf.mxu1 }
0x2337   :  { %v2982_v57 = vadd.f32 %v2978_v15, %v4233_v19  ;;  %v3162_v48 = vmul.f32 -1.442695, %v2981_v12 }
0x2339   :  { %3357 = vtanh.f32 %v2982_v57  ;;  %v3163_v13 = vmul.f32 -1.442695, %v2982_v57 }
0x233a   :  { %3359 = vpow2.f32 %v3162_v48 }
0x2346   :  { %v3358_v18 = vpop.eup %3357 }
0x2347   :  { %3002 = vrot.lane.b32.xlu1 %v3358_v18, %s3472_s2  ;;  %v3360_v14 = vpop.eup %3359 }
0x2348   :  { %v2989_v46 = vadd.f32 1.0, %v3360_v14 }
0x234a   :  { %3361 = vrcp.f32 %v2989_v46 }
0x2357   :  { %v3362_v23 = vpop.eup %3361 }
0x2358   :  { %v3000_v3 = vmul.f32 %v3362_v23, %v2998_v34 }
0x23b9   :  { %v3003_v21 = vpop.permute.xlu1 %3002 }
0x23ba   :  { %v3005_v26 = vmul.f32 %v3362_v23, %v3003_v21 }
0x23bc   :  { %3007 = vrot.lane.b32.xlu1 %v3005_v26, %s3472_s2 }
0x242e   :  { %v3008_v62 = vpop.permute.xlu1 %3007 }
0x242f   :  { %v3010_v56 = vadd.f32 %v3008_v62, %v3000_v3 }
0x2431   :  { %3363 = vtanh.f32 %v3010_v56 }
0x2432   :  { %3365 = vpow2.f32 %v3163_v13 }
0x243e   :  { %v3364_v19 = vpop.eup %3363 }
0x243f   :  { %3013 = vrot.lane.b32.xlu0 %v3364_v19, %s3472_s2  ;;  %v3366_v24 = vpop.eup %3365  ;;  %s3439_s2 = scalar_lea.vmem %s3058_s28, 1024 }
0x2440   :  { %v2990_v43 = vadd.f32 1.0, %v3366_v24  ;;  %p3440_p1 = scmp.ne.s32.totalorder %s3058_s28, %s3439_s2  ;;  %p3445_p3 = scmp.lt.s32.totalorder %s3439_s2, %s3439_s2 }
0x2442   :  { %3367 = vrcp.f32 %v2990_v43  ;;  %p3446_p4 = por %p3445_p3, %p3444_p2 }
0x2444   :  { %p3447_p5 = pnand %p3446_p4, %p3440_p1 }
0x244f   :  { %v3368_v16 = vpop.eup %3367 }
0x24b1   :  { %v3014_v17 = vpop.permute.xlu0 %3013 }
0x24b2   :  { %v3016_v20 = vmul.f32 %v3368_v16, %v3014_v17 }
0x24b4   :  { %v3018_v6 = vmul.f32 %v3017_v59, %v3016_v20 }
0x24b6   :  { %3019 = vst.msk [vmem:[#allocation3 + $0x38] sm:$0xff] %vm211_vm3, %v3018_v6 }
0x24bd   :  { %v3021_v32 = vld [vmem:[#allocation3 + $0x38] sm:$0xff] }
0x24be   :  { %v3022_v38 = vsel %vm202_vm2, %v3020_v45, %v3021_v32  ;;  %v3050_v41 = vsel %vm202_vm2, %v3021_v32, %v3020_v45 }
0x24bf   :  { %3023 = vst.msk [vmem:[#allocation13] sm:$0xff] %vm211_vm3, %v3022_v38  ;;  %3051 = vst.msk [vmem:[#allocation13 + $0x38] sm:$0xff] %vm211_vm3, %v3050_v41 }
0x24c0   :  { %3450 = shalt.err (!%p3447_p5)
}
0x24c1   :  { %s3474_s29 = smov 128   ;;  %s3475_s30 = smov 8  }
0x24c2   :  { %3063 = dma.vmem_to_hbm [thread:$0]  %s3058_s28, 1024, %s4428_s8, [#allocation9], %s3474_s29, %s3474_s29, %s3475_s30  }
0x24c3   :  { %3463 = dma.done.wait [#allocation9], 1024  }
0x24c4   :  { %3464 = vsyncadd [#allocation9], 4294966272 }
0x24c5   :  { %3067 = vsyncpa [#allocation8], 1 }
0x24c6   :  { %3068 = vsyncpa [#allocation11], 1 }
0x24c7   :  { %3069 = vsyncpa [#allocation9], 1 }

</bundles_post_ra>
